<compile_context>
chip_gen: v7x
topology: tpu7x:2x2x1
jax: 0.10.0
libtpu: 0.0.40
codegen_flags: <defaults>
</compile_context>

<pallas_src>
import functools

import jax
import jax.numpy as jnp
from jax import lax
from jax.experimental import pallas as pl
from jax.experimental.pallas import tpu as pltpu

EEG_CH = 14             # conv2 kernel is (14, 1) -> input must have 14 EEG channels
K1 = 25                 # temporal conv kernel
POOL_K = 51
POOL_S = 5
KE = K1 + POOL_K - 1    # 75: effective fused conv1+avgpool temporal kernel
NF = 40                 # feature channels
EMB = 40                # embedding size
BN_EPS = 1e-5


def _elu(y):
    # clamp the exp argument so large positives never generate inf before the select
    return jnp.where(y > 0, y, jnp.exp(jnp.minimum(y, 0.0)) - 1.0)


def _patch_embed_kernel(x_ref, band_ref, b1_ref, bd2_ref, b2_ref, bdp_ref,
                        bp_ref, o_ref, *, BB):
    T = x_ref.shape[-1]
    WNF = band_ref.shape[-1]

    # ---- Conv2d(1,40,(1,25)) + AvgPool2d((1,51),(1,5)) + BN1 affine ---------
    # All folded into one (T, W*40) band matrix -> a single MXU matmul.
    x = x_ref[...].reshape(EEG_CH * BB, T)          # free merge (BB % 8 == 0)
    y1 = jnp.dot(x, band_ref[...], preferred_element_type=jnp.float32)
    y1 = _elu(y1 + b1_ref[...])                     # (14*BB, W*40), rows = (chan, batch)

    # ---- Conv2d(40,40,(14,1)) + BN2 affine ----------------------------------
    # 14 accumulated matmuls on contiguous, sublane-aligned row slices using
    # block-diagonal I_W (x) W2_c weights -> no relayout of y1.
    acc = jnp.zeros((BB, WNF), jnp.float32)
    for c in range(EEG_CH):
        acc = acc + jnp.dot(y1[c * BB:(c + 1) * BB, :], bd2_ref[c],
                            preferred_element_type=jnp.float32)
    y2 = _elu(acc + b2_ref[...])                    # (BB, W*40)
    # Dropout(0.5) is identity in eval mode.

    # ---- projection Conv2d(40, emb, (1,1)) + Rearrange 'b e h w -> b (h w) e'
    # Block-diagonal I_W (x) Wp keeps lanes = (window, emb) -> lane-dense store.
    out = jnp.dot(y2, bdp_ref[...], preferred_element_type=jnp.float32)
    o_ref[...] = (out + bp_ref[...]).astype(o_ref.dtype)   # (BB, W*EMB)


def patch_embedding(x, packed_params, *, block_b=None):
    B, C, T = x.shape
    assert C == EEG_CH, "conv2 kernel (14,1) requires 14 EEG channels"
    band1 = packed_params[0]
    assert band1.shape[0] == T, "packed params were built for a different T"
    WNF = band1.shape[1]
    W = WNF // NF
    assert W >= 1

    if block_b is None:
        # Largest batch block (multiple of 8) that still leaves >= 2 grid
        # steps (v7x megacore) whenever B >= 16; tiny batches get one padded
        # 8-row block.  Override block_b for per-generation tuning.
        block_b = 8
        for cand in (64, 32, 16, 8):
            if pl.cdiv(B, cand) >= 2:
                block_b = cand
                break
    assert block_b % 8 == 0, "block_b must be a multiple of 8 (sublane tile)"

    # One-time HBM-side layout: (B,14,T) -> (14,B,T), pad batch to block_b.
    Bp = pl.cdiv(B, block_b) * block_b
    xt = jnp.transpose(x, (1, 0, 2))
    if Bp != B:
        xt = jnp.pad(xt, ((0, 0), (0, Bp - B), (0, 0)))

    kern = functools.partial(_patch_embed_kernel, BB=block_b)

    def full_spec(a):
        return pl.BlockSpec(a.shape, lambda b, _n=a.ndim: (0,) * _n)

    out_flat = pl.pallas_call(
        kern,
        out_shape=jax.ShapeDtypeStruct((Bp, W * EMB), jnp.float32),
        grid=(Bp // block_b,),
        in_specs=[pl.BlockSpec((EEG_CH, block_b, T), lambda b: (0, b, 0))]
                 + [full_spec(a) for a in packed_params],
        out_specs=pl.BlockSpec((block_b, W * EMB), lambda b: (b, 0)),
        compiler_params=pltpu.CompilerParams(dimension_semantics=("parallel",)),
    )(xt, *packed_params)

    # Row-major (B, W*EMB) == (B, W, EMB): reshape is free.
    return out_flat[:B].reshape(B, W, EMB)


# ---------------------- parameters (deterministic, synthetic) ----------------
def init_raw_params(key):
    ks = jax.random.split(key, 10)
    w1 = 0.10 * jax.random.normal(ks[0], (NF, 1, 1, K1), jnp.float32)
    b1 = 0.10 * jax.random.normal(ks[1], (NF,), jnp.float32)
    g1 = 1.0 + 0.10 * jax.random.normal(ks[2], (NF,), jnp.float32)
    be1 = 0.10 * jax.random.normal(ks[3], (NF,), jnp.float32)
    w2 = 0.05 * jax.random.normal(ks[4], (NF, NF, EEG_CH, 1), jnp.float32)
    b2 = 0.10 * jax.random.normal(ks[5], (NF,), jnp.float32)
    g2 = 1.0 + 0.10 * jax.random.normal(ks[6], (NF,), jnp.float32)
    be2 = 0.10 * jax.random.normal(ks[7], (NF,), jnp.float32)
    wp = 0.10 * jax.random.normal(ks[8], (EMB, NF, 1, 1), jnp.float32)
    bp = 0.10 * jax.random.normal(ks[9], (EMB,), jnp.float32)
    return (w1, b1, g1, be1, w2, b2, g2, be2, wp, bp)


def pack_params(raw, T):
    """Pack-time fusion: avgpool + stride-5 windows folded into a (T, W*40)
    band matrix, BN affines + conv biases folded into adjacent weights/biases,
    conv2 / projection expanded to block-diagonal I_W (x) W matrices."""
    w1, b1, g1, be1, w2, b2, g2, be2, wp, bp = raw
    TP = T - K1 + 1
    W = (TP - POOL_K) // POOL_S + 1
    assert W >= 1
    rstd = 1.0 / jnp.sqrt(1.0 + BN_EPS)          # running_var = 1, running_mean = 0
    s1, h1 = g1 * rstd, be1
    s2, h2 = g2 * rstd, be2

    # conv1 + avgpool fused 75-tap temporal filter, BN1 scale folded in.
    w1k = jnp.transpose(w1[:, 0, 0, :], (1, 0))                       # (25, 40)
    u = jnp.arange(KE)[:, None]
    k = jnp.arange(K1)[None, :]
    pool_band = ((u - k >= 0) & (u - k < POOL_K)).astype(jnp.float32) / POOL_K
    w1_eff = (pool_band @ w1k) * s1[None, :]                          # (75, 40)
    b1_eff = (b1 * s1 + h1)[None, :]                                  # (1, 40)

    # Fold the W stride-5 pooling windows into a (T, W*40) band matrix.
    t = jnp.arange(T)[:, None]
    w = jnp.arange(W)[None, :]
    off = t - POOL_S * w                                              # (T, W)
    valid = (off >= 0) & (off < KE)
    band1 = jnp.where(valid[:, :, None],
                      w1_eff[jnp.clip(off, 0, KE - 1)], 0.0)          # (T, W, 40)
    band1 = band1.reshape(T, W * NF)
    b1b = jnp.tile(b1_eff, (1, W))                                    # (1, W*40)

    # conv2 (14,1) + BN2: per-EEG-channel block-diagonal I_W (x) W2_c.
    w2c = jnp.transpose(w2[:, :, :, 0], (2, 1, 0)) * s2[None, None, :]  # (14,40,40)
    eyeW = jnp.eye(W, dtype=jnp.float32)
    bd2 = (eyeW[None, :, None, :, None] * w2c[:, None, :, None, :])
    bd2 = bd2.reshape(EEG_CH, W * NF, W * NF)                         # (14, W*40, W*40)
    b2b = jnp.tile((b2 * s2 + h2)[None, :], (1, W))                   # (1, W*40)

    # projection 1x1: block-diagonal I_W (x) Wp.
    wpt = jnp.transpose(wp[:, :, 0, 0], (1, 0))                       # (40, 40)
    bdp = (eyeW[:, None, :, None] * wpt[None, :, None, :]).reshape(W * NF, W * EMB)
    bpb = jnp.tile(bp[None, :], (1, W))                               # (1, W*EMB)
    return (band1, b1b, bd2, b2b, bdp, bpb)


# ---------------------- pure-JAX reference (for correctness) -----------------
def ref_forward(x, raw):
    w1, b1, g1, be1, w2, b2, g2, be2, wp, bp = raw
    dn = ("NCHW", "OIHW", "NCHW")
    rstd = 1.0 / jnp.sqrt(1.0 + BN_EPS)
    y = x[:, None, :, :]                                                   # (B,1,14,T)
    y = lax.conv_general_dilated(y, w1, (1, 1), "VALID", dimension_numbers=dn)
    y = y + b1[None, :, None, None]
    y = lax.reduce_window(y, 0.0, lax.add, (1, 1, 1, POOL_K),
                          (1, 1, 1, POOL_S), "VALID") / POOL_K
    y = y * (g1 * rstd)[None, :, None, None] + be1[None, :, None, None]
    y = jnp.where(y > 0, y, jnp.exp(y) - 1.0)
    y = lax.conv_general_dilated(y, w2, (1, 1), "VALID", dimension_numbers=dn)
    y = y + b2[None, :, None, None]
    y = y * (g2 * rstd)[None, :, None, None] + be2[None, :, None, None]
    y = jnp.where(y > 0, y, jnp.exp(y) - 1.0)
    y = lax.conv_general_dilated(y, wp, (1, 1), "VALID", dimension_numbers=dn)
    y = y + bp[None, :, None, None]                                        # (B,E,1,W)
    return jnp.transpose(y[:, :, 0, :], (0, 2, 1))                         # (B,W,E)


if __name__ == "__main__":
    key = jax.random.PRNGKey(0)
    kx, kp = jax.random.split(key)

    B, T = 2, 100                                   # -> TP=76, W=6
    x = jax.random.normal(kx, (B, EEG_CH, T), jnp.float32)

    raw = init_raw_params(kp)
    packed = pack_params(raw, T)

    out = jax.block_until_ready(patch_embedding(x, packed))
    ref = jax.block_until_ready(ref_forward(x, raw))

    assert out.shape == ref.shape == (B, 6, EMB), (out.shape, ref.shape)
    max_err = float(jnp.max(jnp.abs(out - ref)))
    assert jnp.allclose(out, ref, atol=1e-3, rtol=1e-3), max_err

    print("KERNEL_OK")
</pallas_src>

<mosaic_0001>
module attributes {stable_mosaic.version = 11 : i64} {
  func.func @_patch_embed_kernel(%arg0: i32, %arg1: memref<14x8x100xf32, #tpu.memory_space<vmem>>, %arg2: memref<100x240xf32, #tpu.memory_space<vmem>>, %arg3: memref<1x240xf32, #tpu.memory_space<vmem>>, %arg4: memref<14x240x240xf32, #tpu.memory_space<vmem>>, %arg5: memref<1x240xf32, #tpu.memory_space<vmem>>, %arg6: memref<240x240xf32, #tpu.memory_space<vmem>>, %arg7: memref<1x240xf32, #tpu.memory_space<vmem>>, %arg8: memref<8x240xf32, #tpu.memory_space<vmem>>) attributes {dimension_semantics = [#tpu.dimension_semantics<parallel>], iteration_bounds = array<i64: 1>, scalar_prefetch = 0 : i64, scratch_operands = 0 : i64, tpu.core_type = #tpu.core_type<tc>, window_params = [{transform_indices = @transform_0, window_bounds = array<i64: 14, 8, 100>}, {pipeline_mode = #tpu.pipeline_mode<synchronous>, transform_indices = @transform_1, window_bounds = array<i64: 100, 240>}, {pipeline_mode = #tpu.pipeline_mode<synchronous>, transform_indices = @transform_2, window_bounds = array<i64: 1, 240>}, {pipeline_mode = #tpu.pipeline_mode<synchronous>, transform_indices = @transform_3, window_bounds = array<i64: 14, 240, 240>}, {pipeline_mode = #tpu.pipeline_mode<synchronous>, transform_indices = @transform_4, window_bounds = array<i64: 1, 240>}, {pipeline_mode = #tpu.pipeline_mode<synchronous>, transform_indices = @transform_5, window_bounds = array<i64: 240, 240>}, {pipeline_mode = #tpu.pipeline_mode<synchronous>, transform_indices = @transform_6, window_bounds = array<i64: 1, 240>}, {transform_indices = @transform_7, window_bounds = array<i64: 8, 240>}]} {
    %c0 = arith.constant 0 : index
    %c0_0 = arith.constant 0 : index
    %c0_1 = arith.constant 0 : index
    %0 = vector.load %arg1[%c0, %c0_0, %c0_1] : memref<14x8x100xf32, #tpu.memory_space<vmem>>, vector<14x8x100xf32>
    %1 = vector.shape_cast %0 : vector<14x8x100xf32> to vector<112x100xf32>
    %c0_2 = arith.constant 0 : index
    %c0_3 = arith.constant 0 : index
    %2 = vector.load %arg2[%c0_2, %c0_3] : memref<100x240xf32, #tpu.memory_space<vmem>>, vector<100x240xf32>
    %cst = arith.constant dense<0.000000e+00> : vector<112x240xf32>
    %3 = tpu.matmul %1, %2, %cst {dimension_numbers = #tpu.dot_dimension_numbers<[1], [0], [0], [1], [0, 0, 1, 1], [], []>} : vector<112x100xf32>, vector<100x240xf32>, vector<112x240xf32> -> vector<112x240xf32>
    %c0_4 = arith.constant 0 : index
    %c0_5 = arith.constant 0 : index
    %4 = vector.load %arg3[%c0_4, %c0_5] : memref<1x240xf32, #tpu.memory_space<vmem>>, vector<1x240xf32>
    %5 = vector.broadcast %4 : vector<1x240xf32> to vector<112x240xf32>
    %6 = arith.addf %3, %5 : vector<112x240xf32>
    %cst_6 = arith.constant 0.000000e+00 : f32
    %7 = vector.broadcast %cst_6 : f32 to vector<112x240xf32>
    %8 = arith.cmpf ogt, %6, %7 : vector<112x240xf32>
    %cst_7 = arith.constant 0.000000e+00 : f32
    %9 = vector.broadcast %cst_7 : f32 to vector<112x240xf32>
    %10 = arith.minimumf %6, %9 : vector<112x240xf32>
    %11 = math.exp %10 : vector<112x240xf32>
    %cst_8 = arith.constant 1.000000e+00 : f32
    %12 = vector.broadcast %cst_8 : f32 to vector<112x240xf32>
    %13 = arith.subf %11, %12 : vector<112x240xf32>
    %14 = arith.select %8, %6, %13 : vector<112x240xi1>, vector<112x240xf32>
    %cst_9 = arith.constant 0.000000e+00 : f32
    %15 = vector.broadcast %cst_9 : f32 to vector<8x240xf32>
    %16 = vector.extract_strided_slice %14 {offsets = [0, 0], sizes = [8, 240], strides = [1, 1]} : vector<112x240xf32> to vector<8x240xf32>
    %c0_10 = arith.constant 0 : index
    %c0_11 = arith.constant 0 : index
    %c0_12 = arith.constant 0 : index
    %17 = vector.load %arg4[%c0_10, %c0_11, %c0_12] : memref<14x240x240xf32, #tpu.memory_space<vmem>>, vector<1x240x240xf32>
    %18 = vector.shape_cast %17 : vector<1x240x240xf32> to vector<240x240xf32>
    %cst_13 = arith.constant dense<0.000000e+00> : vector<8x240xf32>
    %19 = tpu.matmul %16, %18, %cst_13 {dimension_numbers = #tpu.dot_dimension_numbers<[1], [0], [0], [1], [0, 0, 1, 1], [], []>} : vector<8x240xf32>, vector<240x240xf32>, vector<8x240xf32> -> vector<8x240xf32>
    %20 = arith.addf %15, %19 : vector<8x240xf32>
    %21 = vector.extract_strided_slice %14 {offsets = [8, 0], sizes = [8, 240], strides = [1, 1]} : vector<112x240xf32> to vector<8x240xf32>
    %c1 = arith.constant 1 : index
    %c0_14 = arith.constant 0 : index
    %c0_15 = arith.constant 0 : index
    %22 = vector.load %arg4[%c1, %c0_14, %c0_15] : memref<14x240x240xf32, #tpu.memory_space<vmem>>, vector<1x240x240xf32>
    %23 = vector.shape_cast %22 : vector<1x240x240xf32> to vector<240x240xf32>
    %cst_16 = arith.constant dense<0.000000e+00> : vector<8x240xf32>
    %24 = tpu.matmul %21, %23, %cst_16 {dimension_numbers = #tpu.dot_dimension_numbers<[1], [0], [0], [1], [0, 0, 1, 1], [], []>} : vector<8x240xf32>, vector<240x240xf32>, vector<8x240xf32> -> vector<8x240xf32>
    %25 = arith.addf %20, %24 : vector<8x240xf32>
    %26 = vector.extract_strided_slice %14 {offsets = [16, 0], sizes = [8, 240], strides = [1, 1]} : vector<112x240xf32> to vector<8x240xf32>
    %c2 = arith.constant 2 : index
    %c0_17 = arith.constant 0 : index
    %c0_18 = arith.constant 0 : index
    %27 = vector.load %arg4[%c2, %c0_17, %c0_18] : memref<14x240x240xf32, #tpu.memory_space<vmem>>, vector<1x240x240xf32>
    %28 = vector.shape_cast %27 : vector<1x240x240xf32> to vector<240x240xf32>
    %cst_19 = arith.constant dense<0.000000e+00> : vector<8x240xf32>
    %29 = tpu.matmul %26, %28, %cst_19 {dimension_numbers = #tpu.dot_dimension_numbers<[1], [0], [0], [1], [0, 0, 1, 1], [], []>} : vector<8x240xf32>, vector<240x240xf32>, vector<8x240xf32> -> vector<8x240xf32>
    %30 = arith.addf %25, %29 : vector<8x240xf32>
    %31 = vector.extract_strided_slice %14 {offsets = [24, 0], sizes = [8, 240], strides = [1, 1]} : vector<112x240xf32> to vector<8x240xf32>
    %c3 = arith.constant 3 : index
    %c0_20 = arith.constant 0 : index
    %c0_21 = arith.constant 0 : index
    %32 = vector.load %arg4[%c3, %c0_20, %c0_21] : memref<14x240x240xf32, #tpu.memory_space<vmem>>, vector<1x240x240xf32>
    %33 = vector.shape_cast %32 : vector<1x240x240xf32> to vector<240x240xf32>
    %cst_22 = arith.constant dense<0.000000e+00> : vector<8x240xf32>
    %34 = tpu.matmul %31, %33, %cst_22 {dimension_numbers = #tpu.dot_dimension_numbers<[1], [0], [0], [1], [0, 0, 1, 1], [], []>} : vector<8x240xf32>, vector<240x240xf32>, vector<8x240xf32> -> vector<8x240xf32>
    %35 = arith.addf %30, %34 : vector<8x240xf32>
    %36 = vector.extract_strided_slice %14 {offsets = [32, 0], sizes = [8, 240], strides = [1, 1]} : vector<112x240xf32> to vector<8x240xf32>
    %c4 = arith.constant 4 : index
    %c0_23 = arith.constant 0 : index
    %c0_24 = arith.constant 0 : index
    %37 = vector.load %arg4[%c4, %c0_23, %c0_24] : memref<14x240x240xf32, #tpu.memory_space<vmem>>, vector<1x240x240xf32>
    %38 = vector.shape_cast %37 : vector<1x240x240xf32> to vector<240x240xf32>
    %cst_25 = arith.constant dense<0.000000e+00> : vector<8x240xf32>
    %39 = tpu.matmul %36, %38, %cst_25 {dimension_numbers = #tpu.dot_dimension_numbers<[1], [0], [0], [1], [0, 0, 1, 1], [], []>} : vector<8x240xf32>, vector<240x240xf32>, vector<8x240xf32> -> vector<8x240xf32>
    %40 = arith.addf %35, %39 : vector<8x240xf32>
    %41 = vector.extract_strided_slice %14 {offsets = [40, 0], sizes = [8, 240], strides = [1, 1]} : vector<112x240xf32> to vector<8x240xf32>
    %c5 = arith.constant 5 : index
    %c0_26 = arith.constant 0 : index
    %c0_27 = arith.constant 0 : index
    %42 = vector.load %arg4[%c5, %c0_26, %c0_27] : memref<14x240x240xf32, #tpu.memory_space<vmem>>, vector<1x240x240xf32>
    %43 = vector.shape_cast %42 : vector<1x240x240xf32> to vector<240x240xf32>
    %cst_28 = arith.constant dense<0.000000e+00> : vector<8x240xf32>
    %44 = tpu.matmul %41, %43, %cst_28 {dimension_numbers = #tpu.dot_dimension_numbers<[1], [0], [0], [1], [0, 0, 1, 1], [], []>} : vector<8x240xf32>, vector<240x240xf32>, vector<8x240xf32> -> vector<8x240xf32>
    %45 = arith.addf %40, %44 : vector<8x240xf32>
    %46 = vector.extract_strided_slice %14 {offsets = [48, 0], sizes = [8, 240], strides = [1, 1]} : vector<112x240xf32> to vector<8x240xf32>
    %c6 = arith.constant 6 : index
    %c0_29 = arith.constant 0 : index
    %c0_30 = arith.constant 0 : index
    %47 = vector.load %arg4[%c6, %c0_29, %c0_30] : memref<14x240x240xf32, #tpu.memory_space<vmem>>, vector<1x240x240xf32>
    %48 = vector.shape_cast %47 : vector<1x240x240xf32> to vector<240x240xf32>
    %cst_31 = arith.constant dense<0.000000e+00> : vector<8x240xf32>
    %49 = tpu.matmul %46, %48, %cst_31 {dimension_numbers = #tpu.dot_dimension_numbers<[1], [0], [0], [1], [0, 0, 1, 1], [], []>} : vector<8x240xf32>, vector<240x240xf32>, vector<8x240xf32> -> vector<8x240xf32>
    %50 = arith.addf %45, %49 : vector<8x240xf32>
    %51 = vector.extract_strided_slice %14 {offsets = [56, 0], sizes = [8, 240], strides = [1, 1]} : vector<112x240xf32> to vector<8x240xf32>
    %c7 = arith.constant 7 : index
    %c0_32 = arith.constant 0 : index
    %c0_33 = arith.constant 0 : index
    %52 = vector.load %arg4[%c7, %c0_32, %c0_33] : memref<14x240x240xf32, #tpu.memory_space<vmem>>, vector<1x240x240xf32>
    %53 = vector.shape_cast %52 : vector<1x240x240xf32> to vector<240x240xf32>
    %cst_34 = arith.constant dense<0.000000e+00> : vector<8x240xf32>
    %54 = tpu.matmul %51, %53, %cst_34 {dimension_numbers = #tpu.dot_dimension_numbers<[1], [0], [0], [1], [0, 0, 1, 1], [], []>} : vector<8x240xf32>, vector<240x240xf32>, vector<8x240xf32> -> vector<8x240xf32>
    %55 = arith.addf %50, %54 : vector<8x240xf32>
    %56 = vector.extract_strided_slice %14 {offsets = [64, 0], sizes = [8, 240], strides = [1, 1]} : vector<112x240xf32> to vector<8x240xf32>
    %c8 = arith.constant 8 : index
    %c0_35 = arith.constant 0 : index
    %c0_36 = arith.constant 0 : index
    %57 = vector.load %arg4[%c8, %c0_35, %c0_36] : memref<14x240x240xf32, #tpu.memory_space<vmem>>, vector<1x240x240xf32>
    %58 = vector.shape_cast %57 : vector<1x240x240xf32> to vector<240x240xf32>
    %cst_37 = arith.constant dense<0.000000e+00> : vector<8x240xf32>
    %59 = tpu.matmul %56, %58, %cst_37 {dimension_numbers = #tpu.dot_dimension_numbers<[1], [0], [0], [1], [0, 0, 1, 1], [], []>} : vector<8x240xf32>, vector<240x240xf32>, vector<8x240xf32> -> vector<8x240xf32>
    %60 = arith.addf %55, %59 : vector<8x240xf32>
    %61 = vector.extract_strided_slice %14 {offsets = [72, 0], sizes = [8, 240], strides = [1, 1]} : vector<112x240xf32> to vector<8x240xf32>
    %c9 = arith.constant 9 : index
    %c0_38 = arith.constant 0 : index
    %c0_39 = arith.constant 0 : index
    %62 = vector.load %arg4[%c9, %c0_38, %c0_39] : memref<14x240x240xf32, #tpu.memory_space<vmem>>, vector<1x240x240xf32>
    %63 = vector.shape_cast %62 : vector<1x240x240xf32> to vector<240x240xf32>
    %cst_40 = arith.constant dense<0.000000e+00> : vector<8x240xf32>
    %64 = tpu.matmul %61, %63, %cst_40 {dimension_numbers = #tpu.dot_dimension_numbers<[1], [0], [0], [1], [0, 0, 1, 1], [], []>} : vector<8x240xf32>, vector<240x240xf32>, vector<8x240xf32> -> vector<8x240xf32>
    %65 = arith.addf %60, %64 : vector<8x240xf32>
    %66 = vector.extract_strided_slice %14 {offsets = [80, 0], sizes = [8, 240], strides = [1, 1]} : vector<112x240xf32> to vector<8x240xf32>
    %c10 = arith.constant 10 : index
    %c0_41 = arith.constant 0 : index
    %c0_42 = arith.constant 0 : index
    %67 = vector.load %arg4[%c10, %c0_41, %c0_42] : memref<14x240x240xf32, #tpu.memory_space<vmem>>, vector<1x240x240xf32>
    %68 = vector.shape_cast %67 : vector<1x240x240xf32> to vector<240x240xf32>
    %cst_43 = arith.constant dense<0.000000e+00> : vector<8x240xf32>
    %69 = tpu.matmul %66, %68, %cst_43 {dimension_numbers = #tpu.dot_dimension_numbers<[1], [0], [0], [1], [0, 0, 1, 1], [], []>} : vector<8x240xf32>, vector<240x240xf32>, vector<8x240xf32> -> vector<8x240xf32>
    %70 = arith.addf %65, %69 : vector<8x240xf32>
    %71 = vector.extract_strided_slice %14 {offsets = [88, 0], sizes = [8, 240], strides = [1, 1]} : vector<112x240xf32> to vector<8x240xf32>
    %c11 = arith.constant 11 : index
    %c0_44 = arith.constant 0 : index
    %c0_45 = arith.constant 0 : index
    %72 = vector.load %arg4[%c11, %c0_44, %c0_45] : memref<14x240x240xf32, #tpu.memory_space<vmem>>, vector<1x240x240xf32>
    %73 = vector.shape_cast %72 : vector<1x240x240xf32> to vector<240x240xf32>
    %cst_46 = arith.constant dense<0.000000e+00> : vector<8x240xf32>
    %74 = tpu.matmul %71, %73, %cst_46 {dimension_numbers = #tpu.dot_dimension_numbers<[1], [0], [0], [1], [0, 0, 1, 1], [], []>} : vector<8x240xf32>, vector<240x240xf32>, vector<8x240xf32> -> vector<8x240xf32>
    %75 = arith.addf %70, %74 : vector<8x240xf32>
    %76 = vector.extract_strided_slice %14 {offsets = [96, 0], sizes = [8, 240], strides = [1, 1]} : vector<112x240xf32> to vector<8x240xf32>
    %c12 = arith.constant 12 : index
    %c0_47 = arith.constant 0 : index
    %c0_48 = arith.constant 0 : index
    %77 = vector.load %arg4[%c12, %c0_47, %c0_48] : memref<14x240x240xf32, #tpu.memory_space<vmem>>, vector<1x240x240xf32>
    %78 = vector.shape_cast %77 : vector<1x240x240xf32> to vector<240x240xf32>
    %cst_49 = arith.constant dense<0.000000e+00> : vector<8x240xf32>
    %79 = tpu.matmul %76, %78, %cst_49 {dimension_numbers = #tpu.dot_dimension_numbers<[1], [0], [0], [1], [0, 0, 1, 1], [], []>} : vector<8x240xf32>, vector<240x240xf32>, vector<8x240xf32> -> vector<8x240xf32>
    %80 = arith.addf %75, %79 : vector<8x240xf32>
    %81 = vector.extract_strided_slice %14 {offsets = [104, 0], sizes = [8, 240], strides = [1, 1]} : vector<112x240xf32> to vector<8x240xf32>
    %c13 = arith.constant 13 : index
    %c0_50 = arith.constant 0 : index
    %c0_51 = arith.constant 0 : index
    %82 = vector.load %arg4[%c13, %c0_50, %c0_51] : memref<14x240x240xf32, #tpu.memory_space<vmem>>, vector<1x240x240xf32>
    %83 = vector.shape_cast %82 : vector<1x240x240xf32> to vector<240x240xf32>
    %cst_52 = arith.constant dense<0.000000e+00> : vector<8x240xf32>
    %84 = tpu.matmul %81, %83, %cst_52 {dimension_numbers = #tpu.dot_dimension_numbers<[1], [0], [0], [1], [0, 0, 1, 1], [], []>} : vector<8x240xf32>, vector<240x240xf32>, vector<8x240xf32> -> vector<8x240xf32>
    %85 = arith.addf %80, %84 : vector<8x240xf32>
    %c0_53 = arith.constant 0 : index
    %c0_54 = arith.constant 0 : index
    %86 = vector.load %arg5[%c0_53, %c0_54] : memref<1x240xf32, #tpu.memory_space<vmem>>, vector<1x240xf32>
    %87 = vector.broadcast %86 : vector<1x240xf32> to vector<8x240xf32>
    %88 = arith.addf %85, %87 : vector<8x240xf32>
    %cst_55 = arith.constant 0.000000e+00 : f32
    %89 = vector.broadcast %cst_55 : f32 to vector<8x240xf32>
    %90 = arith.cmpf ogt, %88, %89 : vector<8x240xf32>
    %cst_56 = arith.constant 0.000000e+00 : f32
    %91 = vector.broadcast %cst_56 : f32 to vector<8x240xf32>
    %92 = arith.minimumf %88, %91 : vector<8x240xf32>
    %93 = math.exp %92 : vector<8x240xf32>
    %cst_57 = arith.constant 1.000000e+00 : f32
    %94 = vector.broadcast %cst_57 : f32 to vector<8x240xf32>
    %95 = arith.subf %93, %94 : vector<8x240xf32>
    %96 = arith.select %90, %88, %95 : vector<8x240xi1>, vector<8x240xf32>
    %c0_58 = arith.constant 0 : index
    %c0_59 = arith.constant 0 : index
    %97 = vector.load %arg6[%c0_58, %c0_59] : memref<240x240xf32, #tpu.memory_space<vmem>>, vector<240x240xf32>
    %cst_60 = arith.constant dense<0.000000e+00> : vector<8x240xf32>
    %98 = tpu.matmul %96, %97, %cst_60 {dimension_numbers = #tpu.dot_dimension_numbers<[1], [0], [0], [1], [0, 0, 1, 1], [], []>} : vector<8x240xf32>, vector<240x240xf32>, vector<8x240xf32> -> vector<8x240xf32>
    %c0_61 = arith.constant 0 : index
    %c0_62 = arith.constant 0 : index
    %99 = vector.load %arg7[%c0_61, %c0_62] : memref<1x240xf32, #tpu.memory_space<vmem>>, vector<1x240xf32>
    %100 = vector.broadcast %99 : vector<1x240xf32> to vector<8x240xf32>
    %101 = arith.addf %98, %100 : vector<8x240xf32>
    %c0_63 = arith.constant 0 : index
    %c0_64 = arith.constant 0 : index
    %102 = vector.load %arg8[%c0_63, %c0_64] : memref<8x240xf32, #tpu.memory_space<vmem>>, vector<8x240xf32>
    tpu.vector_store %arg8[%c0_63, %c0_64], %101 {strides = array<i32>} : memref<8x240xf32, #tpu.memory_space<vmem>>, vector<8x240xf32>,
    return
  }
  func.func @transform_0(%arg0: i32) -> (i32, i32, i32) {
    %c0_i32 = arith.constant 0 : i32
    %c0_i32_0 = arith.constant 0 : i32
    %c0_i32_1 = arith.constant 0 : i32
    return %c0_i32, %arg0, %c0_i32_0 : i32, i32, i32
  }
  func.func @transform_1(%arg0: i32) -> (i32, i32) {
    %c0_i32 = arith.constant 0 : i32
    %c0_i32_0 = arith.constant 0 : i32
    %c0_i32_1 = arith.constant 0 : i32
    return %c0_i32, %c0_i32_0 : i32, i32
  }
  func.func @transform_2(%arg0: i32) -> (i32, i32) {
    %c0_i32 = arith.constant 0 : i32
    %c0_i32_0 = arith.constant 0 : i32
    %c0_i32_1 = arith.constant 0 : i32
    return %c0_i32, %c0_i32_0 : i32, i32
  }
  func.func @transform_3(%arg0: i32) -> (i32, i32, i32) {
    %c0_i32 = arith.constant 0 : i32
    %c0_i32_0 = arith.constant 0 : i32
    %c0_i32_1 = arith.constant 0 : i32
    %c0_i32_2 = arith.constant 0 : i32
    return %c0_i32, %c0_i32_0, %c0_i32_1 : i32, i32, i32
  }
  func.func @transform_4(%arg0: i32) -> (i32, i32) {
    %c0_i32 = arith.constant 0 : i32
    %c0_i32_0 = arith.constant 0 : i32
    %c0_i32_1 = arith.constant 0 : i32
    return %c0_i32, %c0_i32_0 : i32, i32
  }
  func.func @transform_5(%arg0: i32) -> (i32, i32) {
    %c0_i32 = arith.constant 0 : i32
    %c0_i32_0 = arith.constant 0 : i32
    %c0_i32_1 = arith.constant 0 : i32
    return %c0_i32, %c0_i32_0 : i32, i32
  }
  func.func @transform_6(%arg0: i32) -> (i32, i32) {
    %c0_i32 = arith.constant 0 : i32
    %c0_i32_0 = arith.constant 0 : i32
    %c0_i32_1 = arith.constant 0 : i32
    return %c0_i32, %c0_i32_0 : i32, i32
  }
  func.func @transform_7(%arg0: i32) -> (i32, i32) {
    %c0_i32 = arith.constant 0 : i32
    %c0_i32_0 = arith.constant 0 : i32
    return %arg0, %c0_i32 : i32, i32
  }
}

</mosaic_0001>

<bundles_post_ra>
// kernel: tpu_custom_call.1
= control target key start
LH: loop header
LB: loop body
LE: loop exit
PB: predicated region body
PF: predicated region fallthrough
CT: control target
= control target key end

     0   :  { %12 = vsyncpa [#allocation3], 0  ;;  %s4366_s0 = inlined_call_operand.hbm [shape: f32[14,8,100], index: 0, kind: input, shape index: {}]   ;;  %s4367_s1 = inlined_call_operand.hbm [shape: f32[100,240], index: 1, kind: input, shape index: {}]   ;;  %s4368_s2 = inlined_call_operand.hbm [shape: f32[1,240], index: 2, kind: input, shape index: {}]   ;;  %s4369_s3 = inlined_call_operand.hbm [shape: f32[14,240,240], index: 3, kind: input, shape index: {}]   ;;  %s4370_s4 = inlined_call_operand.hbm [shape: f32[1,240], index: 4, kind: input, shape index: {}]   ;;  %s4371_s5 = inlined_call_operand.hbm [shape: f32[240,240], index: 5, kind: input, shape index: {}]   ;;  %s4372_s6 = inlined_call_operand.hbm [shape: f32[1,240], index: 6, kind: input, shape index: {}]   ;;  %s4373_s7 = inlined_call_operand.hbm [shape: f32[8,240], index: 7, kind: output, shape index: {}]  }
   0x1   :  { %13 = vsyncpa [#allocation6], 0 }
   0x2   :  { %14 = vsyncpa [#allocation9], 0 }
   0x3   :  { %15 = vsyncpa [#allocation12], 0 }
   0x4   :  { %16 = vsyncpa [#allocation4], 0  ;;  %s3911_s24 = smov [#allocation5]   ;;  %s3725_s28 = scalar_lea.hbm %s4367_s1, 3328 }
   0x5   :  { %s34_s25 = sshll.u32 %s3911_s24, 4  ;;  %p3726_p0 = scmp.ne.s32.totalorder %s4367_s1, %s3725_s28  ;;  %s35_s25 = int_to_ptr.vmem [resolvable:$true] %s34_s25 }
   0x6   :  { %p3729_p1 = scmp.lt.u32.totalorder %s3725_s28, %s4367_s1 }
   0x8   :  { %p3731_p2 = pnand %p3729_p1, %p3726_p0 }
   0xa   :  { %3734 = shalt.err (!%p3731_p2)
}
   0xb   :  { %s3735_s10 = scalar_lea.vmem %s35_s25, 3328  ;;  %p3740_p4 = scmp.lt.s32.totalorder %s35_s25, %s35_s25 }
   0xc   :  { %p3736_p3 = scmp.ne.s32.totalorder %s35_s25, %s3735_s10  ;;  %p3741_p5 = scmp.lt.s32.totalorder %s3735_s10, %s3735_s10 }
   0xe   :  { %p3742_p6 = por %p3741_p5, %p3740_p4 }
  0x10   :  { %p3743_p7 = pnand %p3742_p6, %p3736_p3 }
  0x12   :  { %3746 = shalt.err (!%p3743_p7)
}
  0x13   :  { %s3912_s11 = smov 256   ;;  %s3913_s12 = smov 16  }
  0x14   :  { %40 = dma.hbm_to_vmem [thread:$0]  %s4367_s1, 3328, %s35_s25, [#allocation6], %s3912_s11, %s3912_s11, %s3913_s12  }
  0x15   :  { %s3914_s15 = smov [#allocation8]   ;;  %s3915_s17 = smov [#allocation11]  }
  0x16   :  { %s56_s16 = sshll.u32 %s3914_s15, 4  ;;  %s78_s18 = sshll.u32 %s3915_s17, 4  ;;  %s57_s16 = int_to_ptr.vmem [resolvable:$true] %s56_s16  ;;  %s79_s18 = int_to_ptr.vmem [resolvable:$true] %s78_s18 }
  0x17   :  { %s3747_s21 = scalar_lea.hbm %s4369_s3, 107520 }
  0x18   :  { %p3748_p8 = scmp.ne.s32.totalorder %s4369_s3, %s3747_s21  ;;  %p3751_p9 = scmp.lt.u32.totalorder %s3747_s21, %s4369_s3 }
  0x1a   :  { %p3753_p10 = pnand %p3751_p9, %p3748_p8 }
  0x1c   :  { %3756 = shalt.err (!%p3753_p10)
}
  0x1d   :  { %s3757_s1 = scalar_lea.vmem %s57_s16, 107520  ;;  %p3762_p12 = scmp.lt.s32.totalorder %s57_s16, %s57_s16 }
  0x1e   :  { %p3758_p11 = scmp.ne.s32.totalorder %s57_s16, %s3757_s1  ;;  %p3763_p13 = scmp.lt.s32.totalorder %s3757_s1, %s3757_s1 }
  0x20   :  { %p3764_p0 = por %p3763_p13, %p3762_p12 }
  0x22   :  { %p3765_p1 = pnand %p3764_p0, %p3758_p11 }
  0x24   :  { %3768 = shalt.err (!%p3765_p1)
}
  0x25   :  { %62 = dma.hbm_to_vmem [thread:$0]  %s4369_s3, 107520, %s57_s16, [#allocation9], %s3912_s11, %s3912_s11, %s3913_s12  }
  0x26   :  { %s3769_s30 = scalar_lea.hbm %s4371_s5, 7680 }
  0x27   :  { %p3770_p2 = scmp.ne.s32.totalorder %s4371_s5, %s3769_s30  ;;  %p3773_p3 = scmp.lt.u32.totalorder %s3769_s30, %s4371_s5 }
  0x29   :  { %p3775_p4 = pnand %p3773_p3, %p3770_p2 }
  0x2b   :  { %3778 = shalt.err (!%p3775_p4)
}
  0x2c   :  { %s3779_s14 = scalar_lea.vmem %s79_s18, 7680  ;;  %p3784_p6 = scmp.lt.s32.totalorder %s79_s18, %s79_s18 }
  0x2d   :  { %p3780_p5 = scmp.ne.s32.totalorder %s79_s18, %s3779_s14  ;;  %p3785_p7 = scmp.lt.s32.totalorder %s3779_s14, %s3779_s14 }
  0x2f   :  { %p3786_p8 = por %p3785_p7, %p3784_p6 }
  0x31   :  { %p3787_p9 = pnand %p3786_p8, %p3780_p5 }
  0x33   :  { %3790 = shalt.err (!%p3787_p9)
}
  0x34   :  { %84 = dma.hbm_to_vmem [thread:$0]  %s4371_s5, 7680, %s79_s18, [#allocation12], %s3912_s11, %s3912_s11, %s3913_s12  }
  0x35   :  { %s3916_s16 = smov [#allocation2]   ;;  %s3791_s21 = scalar_lea.hbm %s4366_s0, 1792 }
  0x36   :  { %s22_s17 = sshll.u32 %s3916_s16, 4  ;;  %p3792_p10 = scmp.ne.s32.totalorder %s4366_s0, %s3791_s21  ;;  %s23_s17 = int_to_ptr.vmem [resolvable:$true] %s22_s17 }
  0x37   :  { %p3795_p11 = scmp.lt.u32.totalorder %s3791_s21, %s4366_s0 }
  0x39   :  { %p3797_p12 = pnand %p3795_p11, %p3792_p10 }
  0x3b   :  { %3800 = shalt.err (!%p3797_p12)
}
  0x3c   :  { %s3801_s1 = scalar_lea.vmem %s23_s17, 1792  ;;  %p3806_p0 = scmp.lt.s32.totalorder %s23_s17, %s23_s17 }
  0x3d   :  { %p3802_p13 = scmp.ne.s32.totalorder %s23_s17, %s3801_s1  ;;  %p3807_p1 = scmp.lt.s32.totalorder %s3801_s1, %s3801_s1 }
  0x3f   :  { %p3808_p2 = por %p3807_p1, %p3806_p0 }
  0x41   :  { %p3809_p3 = pnand %p3808_p2, %p3802_p13 }
  0x43   :  { %3812 = shalt.err (!%p3809_p3)
}
  0x44   :  { %s3917_s5 = smov 128   ;;  %s3918_s11 = smov 8  }
  0x45   :  { %28 = dma.hbm_to_vmem [thread:$0]  %s4366_s0, 1792, %s23_s17, [#allocation3], %s3917_s5, %s3917_s5, %s3918_s11  }
  0x46   :  { %s3919_s25 = smov [#allocation7]   ;;  %s3920_s28 = smov [#allocation10]  }
  0x47   :  { %s47_s27 = sshll.u32 %s3919_s25, 4  ;;  %s69_s29 = sshll.u32 %s3920_s28, 4  ;;  %s48_s27 = int_to_ptr.vmem [resolvable:$true] %s47_s27  ;;  %s70_s29 = int_to_ptr.vmem [resolvable:$true] %s69_s29 }
  0x48   :  { %s3813_s9 = scalar_lea.hbm %s4368_s2, 32 }
  0x49   :  { %p3814_p4 = scmp.ne.s32.totalorder %s4368_s2, %s3813_s9  ;;  %p3817_p5 = scmp.lt.u32.totalorder %s3813_s9, %s4368_s2 }
  0x4b   :  { %p3819_p6 = pnand %p3817_p5, %p3814_p4 }
  0x4d   :  { %3822 = shalt.err (!%p3819_p6)
}
  0x4e   :  { %s3823_s0 = scalar_lea.vmem %s48_s27, 32  ;;  %p3828_p8 = scmp.lt.s32.totalorder %s48_s27, %s48_s27 }
  0x4f   :  { %p3824_p7 = scmp.ne.s32.totalorder %s48_s27, %s3823_s0  ;;  %p3829_p9 = scmp.lt.s32.totalorder %s3823_s0, %s3823_s0 }
  0x51   :  { %p3830_p10 = por %p3829_p9, %p3828_p8 }
  0x53   :  { %p3831_p11 = pnand %p3830_p10, %p3824_p7 }
  0x55   :  { %3834 = shalt.err (!%p3831_p11)
}
  0x56   :  { %50 = dma.hbm_to_vmem [thread:$0]  %s4368_s2, 32, %s48_s27, [#allocation6]  }
  0x57   :  { %s3835_s20 = scalar_lea.hbm %s4370_s4, 32 }
  0x58   :  { %p3836_p12 = scmp.ne.s32.totalorder %s4370_s4, %s3835_s20  ;;  %p3839_p13 = scmp.lt.u32.totalorder %s3835_s20, %s4370_s4 }
  0x5a   :  { %p3841_p0 = pnand %p3839_p13, %p3836_p12 }
  0x5c   :  { %3844 = shalt.err (!%p3841_p0)
}
  0x5d   :  { %s3845_s26 = scalar_lea.vmem %s70_s29, 32  ;;  %p3850_p2 = scmp.lt.s32.totalorder %s70_s29, %s70_s29 }
  0x5e   :  { %p3846_p1 = scmp.ne.s32.totalorder %s70_s29, %s3845_s26  ;;  %p3851_p3 = scmp.lt.s32.totalorder %s3845_s26, %s3845_s26 }
  0x60   :  { %p3852_p4 = por %p3851_p3, %p3850_p2 }
  0x62   :  { %p3853_p5 = pnand %p3852_p4, %p3846_p1 }
  0x64   :  { %3856 = shalt.err (!%p3853_p5)
}
  0x65   :  { %72 = dma.hbm_to_vmem [thread:$0]  %s4370_s4, 32, %s70_s29, [#allocation9]  }
  0x66   :  { %s3921_s5 = smov [#allocation13]   ;;  %s3857_s25 = scalar_lea.hbm %s4372_s6, 32 }
  0x67   :  { %s91_s11 = sshll.u32 %s3921_s5, 4  ;;  %p3858_p6 = scmp.ne.s32.totalorder %s4372_s6, %s3857_s25  ;;  %s92_s11 = int_to_ptr.vmem [resolvable:$true] %s91_s11 }
  0x68   :  { %p3861_p7 = scmp.lt.u32.totalorder %s3857_s25, %s4372_s6 }
  0x6a   :  { %p3863_p8 = pnand %p3861_p7, %p3858_p6 }
  0x6c   :  { %3866 = shalt.err (!%p3863_p8)
}
  0x6d   :  { %s3867_s9 = scalar_lea.vmem %s92_s11, 32  ;;  %p3872_p10 = scmp.lt.s32.totalorder %s92_s11, %s92_s11 }
  0x6e   :  { %p3868_p9 = scmp.ne.s32.totalorder %s92_s11, %s3867_s9  ;;  %p3873_p11 = scmp.lt.s32.totalorder %s3867_s9, %s3867_s9 }
  0x70   :  { %p3874_p12 = por %p3873_p11, %p3872_p10 }
  0x72   :  { %p3875_p13 = pnand %p3874_p12, %p3868_p9 }
  0x74   :  { %3878 = shalt.err (!%p3875_p13)
}
  0x75   :  { %94 = dma.hbm_to_vmem [thread:$0]  %s4372_s6, 32, %s92_s11, [#allocation12]  }
  0x76   :  { %3901 = dma.done.wait [#allocation3], 1792  }
  0x77   :  { %3902 = vsyncadd [#allocation3], 4294965504 }
  0x78   :  { %3903 = dma.done.wait [#allocation6], 3360  }
  0x79   :  { %3904 = vsyncadd [#allocation6], 4294963936 }
  0x7a   :  { %3905 = dma.done.wait [#allocation9], 107552  }
  0x7b   :  { %3906 = vsyncadd [#allocation9], 4294859744 }
  0x7c   :  { %3907 = dma.done.wait [#allocation12], 7712  }
  0x7d   :  { %3908 = vsyncadd [#allocation12], 4294959584  ;;  %v3922_v0 = vmov 0.0   ;;  %v131_v1 = vld [vmem:[#allocation5 + $0x8] sm:$0xff]  ;;  %v133_v2 = vld [vmem:[#allocation5 + $0x18] sm:$0xff]  ;;  %vm211_vm0 = vcmask 1043456  }
  0x7e   :  { %282 = vmatprep.mubr.f32.mxu0 %v3922_v0  ;;  %v130_v3 = vld [vmem:[#allocation5] sm:$0xff]  ;;  %v2702_v4 = vpack.c.bf16 %v133_v2, %v131_v1  ;;  %v132_v5 = vld [vmem:[#allocation5 + $0x10] sm:$0xff]  ;;  %v135_v6 = vld [vmem:[#allocation5 + $0x28] sm:$0xff]  ;;  %vm168_vm1 = vcmask 818176   ;;  %vm656_vm2 = vcmask 916480   ;;  %s3923_s6 = smov [#allocation14]  }
  0x7f   :  { %v137_v7 = vld [vmem:[#allocation5 + $0x38] sm:$0xff]  ;;  %v2704_v8 = vpack.c.bf16 %v132_v5, %v130_v3  ;;  %v134_v10 = vld [vmem:[#allocation5 + $0x20] sm:$0xff]  ;;  %v136_v11 = vld [vmem:[#allocation5 + $0x30] sm:$0xff]  ;;  %s2629_s10 = sshll.u32 %s3923_s6, 4  ;;  %s2630_s10 = int_to_ptr.vmem [resolvable:$true] %s2629_s10 }
  0x80   :  { %v2706_v9 = vpack.c.bf16 %v137_v7, %v135_v6  ;;  %v139_v12 = vld [vmem:[#allocation5 + $0x48] sm:$0xff]  ;;  %2703 = vmatprep.subr.bf16.mxu0 %v2702_v4  ;;  %v141_v13 = vld [vmem:[#allocation5 + $0x58] sm:$0xff]  ;;  %v2708_v14 = vpack.c.bf16 %v136_v11, %v134_v10  ;;  %v138_v16 = vld [vmem:[#allocation5 + $0x40] sm:$0xff]  ;;  %s3879_s13 = scalar_lea.vmem %s2630_s10, 256  ;;  %p3884_p1 = scmp.lt.s32.totalorder %s2630_s10, %s2630_s10 }
  0x81   :  { %2705 = vmatpush1.bf16.msra.mxu0 %v2704_v8  ;;  %v2710_v15 = vpack.c.bf16 %v141_v13, %v139_v12  ;;  %v140_v17 = vld [vmem:[#allocation5 + $0x50] sm:$0xff]  ;;  %v143_v18 = vld [vmem:[#allocation5 + $0x68] sm:$0xff]  ;;  %v145_v19 = vld [vmem:[#allocation5 + $0x78] sm:$0xff]  ;;  %p3880_p0 = scmp.ne.s32.totalorder %s2630_s10, %s3879_s13  ;;  %p3885_p2 = scmp.lt.s32.totalorder %s3879_s13, %s3879_s13 }
  0x82   :  { %2707 = vmatprep.subr.bf16.mxu0 %v2706_v9  ;;  %v2712_v20 = vpack.c.bf16 %v140_v17, %v138_v16  ;;  %v2714_v21 = vpack.c.bf16 %v145_v19, %v143_v18  ;;  %v142_v22 = vld [vmem:[#allocation5 + $0x60] sm:$0xff]  ;;  %v144_v23 = vld [vmem:[#allocation5 + $0x70] sm:$0xff]  ;;  %v147_v24 = vld [vmem:[#allocation5 + $0x88] sm:$0xff] }
  0x83   :  { %v149_v25 = vld [vmem:[#allocation5 + $0x98] sm:$0xff]  ;;  %v2716_v26 = vpack.c.bf16 %v144_v23, %v142_v22  ;;  %v146_v28 = vld [vmem:[#allocation5 + $0x80] sm:$0xff]  ;;  %v148_v29 = vld [vmem:[#allocation5 + $0x90] sm:$0xff]  ;;  %p3886_p3 = por %p3885_p2, %p3884_p1 }
  0x84   :  { %v2718_v27 = vpack.c.bf16 %v149_v25, %v147_v24  ;;  %v151_v30 = vld [vmem:[#allocation5 + $0xa8] sm:$0xff]  ;;  %v153_v31 = vld [vmem:[#allocation5 + $0xb8] sm:$0xff]  ;;  %v2720_v32 = vpack.c.bf16 %v148_v29, %v146_v28  ;;  %v150_v34 = vld [vmem:[#allocation5 + $0xa0] sm:$0xff] }
  0x85   :  { %2709 = vmatpush1.bf16.msra.mxu0 %v2708_v14  ;;  %v2722_v33 = vpack.c.bf16 %v153_v31, %v151_v30  ;;  %v152_v35 = vld [vmem:[#allocation5 + $0xb0] sm:$0xff]  ;;  %v1355_v36 = vld [vmem:[#allocation8 + $0xb48] sm:$0xff]  ;;  %v155_v39 = vld [vmem:[#allocation5 + $0xc8] sm:$0xf]  ;;  %p3887_p4 = pnand %p3886_p3, %p3880_p0 }
  0x86   :  { %2711 = vmatprep.subr.bf16.mxu0 %v2710_v15  ;;  %v1357_v37 = vld [vmem:[#allocation8 + $0xb58] sm:$0xff]  ;;  %v2724_v38 = vpack.c.bf16 %v152_v35, %v150_v34  ;;  %v1354_v41 = vld [vmem:[#allocation8 + $0xb40] sm:$0xff]  ;;  %v597_v42 = vld [vmem:[#allocation8 + $0x1e8] sm:$0xff] }
  0x87   :  { %v3086_v40 = vpack.c.bf16 %v1357_v37, %v1355_v36  ;;  %v599_v43 = vld [vmem:[#allocation8 + $0x1f8] sm:$0xff]  ;;  %v1356_v44 = vld [vmem:[#allocation8 + $0xb50] sm:$0xff]  ;;  %v596_v45 = vld [vmem:[#allocation8 + $0x1e0] sm:$0xff] }
  0x88   :  { %v3088_v46 = vpack.c.bf16 %v1356_v44, %v1354_v41  ;;  %v1359_v47 = vld [vmem:[#allocation8 + $0xb68] sm:$0xff]  ;;  %v1361_v48 = vld [vmem:[#allocation8 + $0xb78] sm:$0xff]  ;;  %v598_v49 = vld [vmem:[#allocation8 + $0x1f0] sm:$0xff]  ;;  %v2726_v59 = vpack.c.bf16 %v599_v43, %v597_v42 }
  0x89   :  { %2713 = vmatpush1.bf16.msra.mxu0 %v2712_v20  ;;  %3087 = vmatprep.subr.bf16.mxu1 %v3086_v40  ;;  %v3090_v50 = vpack.c.bf16 %v1361_v48, %v1359_v47  ;;  %v1358_v51 = vld [vmem:[#allocation8 + $0xb60] sm:$0xff]  ;;  %v1360_v52 = vld [vmem:[#allocation8 + $0xb70] sm:$0xff]  ;;  %v601_v53 = vld [vmem:[#allocation8 + $0x208] sm:$0xff]  ;;  %v2728_v61 = vpack.c.bf16 %v598_v49, %v596_v45 }
  0x8a   :  { %2715 = vmatprep.subr.bf16.mxu0 %v2714_v21  ;;  %v603_v54 = vld [vmem:[#allocation8 + $0x218] sm:$0xff]  ;;  %3089 = vmatpush1.bf16.msra.mxu1 %v3088_v46  ;;  %v3092_v55 = vpack.c.bf16 %v1360_v52, %v1358_v51  ;;  %v1363_v56 = vld [vmem:[#allocation8 + $0xb88] sm:$0xff]  ;;  %v600_v62 = vld [vmem:[#allocation8 + $0x200] sm:$0xff] }
  0x8b   :  { %v154_v57 = vld [vmem:[#allocation5 + $0xc0] sm:$0xf]  ;;  %v116_v58 = vld [vmem:[#allocation2] sm:$0xff]  ;;  %3091 = vmatprep.subr.bf16.mxu1 %v3090_v50  ;;  %v2730_v2 = vpack.c.bf16 %v603_v54, %v601_v53  ;;  %v117_v13 = vld [vmem:[#allocation2 + $0x8] sm:$0xff] }
  0x8c   :  { %v1365_v60 = vld [vmem:[#allocation8 + $0xb98] sm:$0xff]  ;;  %v1362_v63 = vld [vmem:[#allocation8 + $0xb80] sm:$0xff]  ;;  %v1364_v1 = vld [vmem:[#allocation8 + $0xb90] sm:$0xff] }
  0x8d   :  { %2717 = vmatpush1.bf16.msra.mxu0 %v2716_v26  ;;  %v602_v3 = vld [vmem:[#allocation8 + $0x210] sm:$0xff]  ;;  %v3094_v4 = vpack.c.bf16 %v1365_v60, %v1363_v56  ;;  %v1367_v5 = vld [vmem:[#allocation8 + $0xba8] sm:$0xff]  ;;  %v1369_v6 = vld [vmem:[#allocation8 + $0xbb8] sm:$0xff]  ;;  %v3096_v9 = vpack.c.bf16 %v1364_v1, %v1362_v63 }
  0x8e   :  { %2719 = vmatprep.subr.bf16.mxu0 %v2718_v27  ;;  %v605_v7 = vld [vmem:[#allocation8 + $0x228] sm:$0xff]  ;;  %v607_v8 = vld [vmem:[#allocation8 + $0x238] sm:$0xff]  ;;  %3093 = vmatpush1.bf16.msra.mxu1 %v3092_v55  ;;  %v3098_v10 = vpack.c.bf16 %v1369_v6, %v1367_v5  ;;  %v1366_v11 = vld [vmem:[#allocation8 + $0xba0] sm:$0xff]  ;;  %v2732_v14 = vpack.c.bf16 %v602_v3, %v600_v62 }
  0x8f   :  { %v1368_v12 = vld [vmem:[#allocation8 + $0xbb0] sm:$0xff]  ;;  %v2734_v15 = vpack.c.bf16 %v607_v8, %v605_v7  ;;  %v604_v16 = vld [vmem:[#allocation8 + $0x220] sm:$0xff]  ;;  %3095 = vmatprep.subr.bf16.mxu1 %v3094_v4  ;;  %v609_v18 = vld [vmem:[#allocation8 + $0x248] sm:$0xff] }
  0x90   :  { %v606_v17 = vld [vmem:[#allocation8 + $0x230] sm:$0xff]  ;;  %v611_v19 = vld [vmem:[#allocation8 + $0x258] sm:$0xff]  ;;  %v3100_v20 = vpack.c.bf16 %v1368_v12, %v1366_v11  ;;  %v608_v24 = vld [vmem:[#allocation8 + $0x240] sm:$0xff] }
  0x91   :  { %2721 = vmatpush1.bf16.msra.mxu0 %v2720_v32  ;;  %v118_v21 = vld [vmem:[#allocation2 + $0x10] sm:$0xff]  ;;  %v2736_v22 = vpack.c.bf16 %v606_v17, %v604_v16  ;;  %v2738_v23 = vpack.c.bf16 %v611_v19, %v609_v18  ;;  %v615_v27 = vld [vmem:[#allocation8 + $0x278] sm:$0xff]  ;;  %v612_v31 = vld [vmem:[#allocation8 + $0x260] sm:$0xff] }
  0x92   :  { %2723 = vmatprep.subr.bf16.mxu0 %v2722_v33  ;;  %3097 = vmatpush1.bf16.msra.mxu1 %v3096_v9  ;;  %v610_v25 = vld [vmem:[#allocation8 + $0x250] sm:$0xff]  ;;  %v613_v26 = vld [vmem:[#allocation8 + $0x268] sm:$0xff]  ;;  %v619_v34 = vld [vmem:[#allocation8 + $0x298] sm:$0xff] }
  0x93   :  { %3099 = vmatprep.subr.bf16.mxu1 %v3098_v10  ;;  %v119_v28 = vld [vmem:[#allocation2 + $0x18] sm:$0xff]  ;;  %v2740_v29 = vpack.c.bf16 %v610_v25, %v608_v24  ;;  %v2742_v30 = vpack.c.bf16 %v615_v27, %v613_v26  ;;  %v617_v33 = vld [vmem:[#allocation8 + $0x288] sm:$0xff]  ;;  %v120_v35 = vld [vmem:[#allocation2 + $0x20] sm:$0xff] }
  0x94   :  { %v614_v32 = vld [vmem:[#allocation8 + $0x270] sm:$0xff]  ;;  %v2746_v37 = vpack.c.bf16 %v619_v34, %v617_v33  ;;  %v621_v40 = vld [vmem:[#allocation8 + $0x2a8] sm:$0xff]  ;;  %v623_v41 = vld [vmem:[#allocation8 + $0x2b8] sm:$0xff] }
  0x95   :  { %2725 = vmatpush1.bf16.msra.mxu0 %v2724_v38  ;;  %v2744_v36 = vpack.c.bf16 %v614_v32, %v612_v31  ;;  %v616_v38 = vld [vmem:[#allocation8 + $0x280] sm:$0xff]  ;;  %v2750_v44 = vpack.c.bf16 %v623_v41, %v621_v40  ;;  %v622_v46 = vld [vmem:[#allocation8 + $0x2b0] sm:$0xff]  ;;  %v625_v47 = vld [vmem:[#allocation8 + $0x2c8] sm:$0xff] }
  0x96   :  { %2641 = vmatprep.subr.msk.mxu0 %vm211_vm0, %v155_v39  ;;  %3101 = vmatpush1.bf16.msra.mxu1 %v3100_v20  ;;  %v618_v39 = vld [vmem:[#allocation8 + $0x290] sm:$0xff]  ;;  %v121_v42 = vld [vmem:[#allocation2 + $0x28] sm:$0xff]  ;;  %v627_v48 = vld [vmem:[#allocation8 + $0x2d8] sm:$0xff] }
  0x97   :  { %v2748_v43 = vpack.c.bf16 %v618_v39, %v616_v38  ;;  %v620_v45 = vld [vmem:[#allocation8 + $0x2a0] sm:$0xff]  ;;  %v122_v49 = vld [vmem:[#allocation2 + $0x30] sm:$0xff]  ;;  %v2754_v51 = vpack.c.bf16 %v627_v48, %v625_v47  ;;  %v631_v55 = vld [vmem:[#allocation8 + $0x2f8] sm:$0xff] }
  0x98   :  { %v2752_v50 = vpack.c.bf16 %v622_v46, %v620_v45  ;;  %v624_v52 = vld [vmem:[#allocation8 + $0x2c0] sm:$0xff]  ;;  %v626_v53 = vld [vmem:[#allocation8 + $0x2d0] sm:$0xff]  ;;  %v629_v54 = vld [vmem:[#allocation8 + $0x2e8] sm:$0xff] }
  0x99   :  { %2642 = vmatpush1.msk.msra.mxu0 %vm211_vm0, %v154_v57  ;;  %v123_v56 = vld [vmem:[#allocation2 + $0x38] sm:$0xff]  ;;  %v2756_v57 = vpack.c.bf16 %v626_v53, %v624_v52  ;;  %v125_v63 = vld [vmem:[#allocation2 + $0x48] sm:$0xff] }
  0x9a   :  { %2643 = vmatmul.mubr.msk.f32.vlgmr.msra.gmra.mrb[0].mxu0 %vm168_vm1, %v116_v58  ;;  %2727 = vmatprep.subr.bf16.mxu0 %v2726_v59  ;;  %v2758_v58 = vpack.c.bf16 %v631_v55, %v629_v54  ;;  %v628_v59 = vld [vmem:[#allocation8 + $0x2e0] sm:$0xff]  ;;  %v630_v60 = vld [vmem:[#allocation8 + $0x2f0] sm:$0xff]  ;;  %v633_v1 = vld [vmem:[#allocation8 + $0x308] sm:$0xff] }
  0x9b   :  { %288 = vmatprep.mubr.f32.mxu0 %v3922_v0  ;;  %2729 = vmatpush1.bf16.msra.mxu0 %v2728_v61  ;;  %v124_v61 = vld [vmem:[#allocation2 + $0x40] sm:$0xff]  ;;  %v2760_v62 = vpack.c.bf16 %v630_v60, %v628_v59  ;;  %v1371_v3 = vld [vmem:[#allocation8 + $0xbc8] sm:$0xff]  ;;  %v634_v7 = vld [vmem:[#allocation8 + $0x310] sm:$0xff] }
  0x9c   :  { %2731 = vmatprep.subr.bf16.mxu0 %v2730_v2  ;;  %v635_v2 = vld [vmem:[#allocation8 + $0x318] sm:$0xff]  ;;  %v632_v6 = vld [vmem:[#allocation8 + $0x300] sm:$0xff]  ;;  %v1372_v11 = vld [vmem:[#allocation8 + $0xbd0] sm:$0xff] }
  0x9d   :  { %v2762_v4 = vpack.c.bf16 %v635_v2, %v633_v1  ;;  %v1373_v5 = vld [vmem:[#allocation8 + $0xbd8] sm:$0xff]  ;;  %v2764_v9 = vpack.c.bf16 %v634_v7, %v632_v6  ;;  %v1370_v10 = vld [vmem:[#allocation8 + $0xbc0] sm:$0xff]  ;;  %v638_v19 = vld [vmem:[#allocation8 + $0x330] sm:$0xff] }
  0x9e   :  { %2644 = vmatmul.mubr.msk.f32.gmra.mrb[2].mxu0 %vm168_vm1, %v117_v13  ;;  %v3102_v8 = vpack.c.bf16 %v1373_v5, %v1371_v3  ;;  %v3104_v12 = vpack.c.bf16 %v1372_v11, %v1370_v10  ;;  %v637_v13 = vld [vmem:[#allocation8 + $0x328] sm:$0xff]  ;;  %v1377_v17 = vld [vmem:[#allocation8 + $0xbf8] sm:$0xff]  ;;  %v636_v18 = vld [vmem:[#allocation8 + $0x320] sm:$0xff] }
  0x9f   :  { %294 = vmatprep.mubr.f32.mxu0 %v3922_v0  ;;  %2733 = vmatpush1.bf16.msra.mxu0 %v2732_v14  ;;  %v639_v14 = vld [vmem:[#allocation8 + $0x338] sm:$0xff]  ;;  %v641_v25 = vld [vmem:[#allocation8 + $0x348] sm:$0xff]  ;;  %v642_v31 = vld [vmem:[#allocation8 + $0x350] sm:$0xff] }
  0xa0   :  { %2735 = vmatprep.subr.bf16.mxu0 %v2734_v15  ;;  %3103 = vmatprep.subr.bf16.mxu1 %v3102_v8  ;;  %v1375_v15 = vld [vmem:[#allocation8 + $0xbe8] sm:$0xff]  ;;  %v2766_v16 = vpack.c.bf16 %v639_v14, %v637_v13  ;;  %v643_v26 = vld [vmem:[#allocation8 + $0x358] sm:$0xff]  ;;  %v1378_v34 = vld [vmem:[#allocation8 + $0xc00] sm:$0xff] }
  0xa1   :  { %3105 = vmatpush1.bf16.msra.mxu1 %v3104_v12  ;;  %v3106_v20 = vpack.c.bf16 %v1377_v17, %v1375_v15  ;;  %v1379_v27 = vld [vmem:[#allocation8 + $0xc08] sm:$0xff]  ;;  %v647_v39 = vld [vmem:[#allocation8 + $0x378] sm:$0xff]  ;;  %v1382_v47 = vld [vmem:[#allocation8 + $0xc20] sm:$0xff] }
  0xa2   :  { %2645 = vmatmul.mubr.msk.f32.gmra.mrb[4].mxu0 %vm168_vm1, %v118_v21  ;;  %v2768_v21 = vpack.c.bf16 %v638_v19, %v636_v18  ;;  %v645_v38 = vld [vmem:[#allocation8 + $0x368] sm:$0xff]  ;;  %v1384_v48 = vld [vmem:[#allocation8 + $0xc30] sm:$0xff]  ;;  %v651_v52 = vld [vmem:[#allocation8 + $0x398] sm:$0xff] }
  0xa3   :  { %300 = vmatprep.mubr.f32.mxu0 %v3922_v0  ;;  %2737 = vmatpush1.bf16.msra.mxu0 %v2736_v22  ;;  %v1374_v22 = vld [vmem:[#allocation8 + $0xbe0] sm:$0xff]  ;;  %v1383_v40 = vld [vmem:[#allocation8 + $0xc28] sm:$0xff]  ;;  %v2774_v41 = vpack.c.bf16 %v647_v39, %v645_v38  ;;  %v1389_v55 = vld [vmem:[#allocation8 + $0xc58] sm:$0xff] }
  0xa4   :  { %2739 = vmatprep.subr.bf16.mxu0 %v2738_v23  ;;  %v1376_v23 = vld [vmem:[#allocation8 + $0xbf0] sm:$0xff]  ;;  %3107 = vmatprep.subr.bf16.mxu1 %v3106_v20  ;;  %v1387_v53 = vld [vmem:[#allocation8 + $0xc48] sm:$0xff]  ;;  %v1386_v60 = vld [vmem:[#allocation8 + $0xc40] sm:$0xff] }
  0xa5   :  { %v3108_v24 = vpack.c.bf16 %v1376_v23, %v1374_v22  ;;  %v653_v1 = vld [vmem:[#allocation8 + $0x3a8] sm:$0xff]  ;;  %v655_v2 = vld [vmem:[#allocation8 + $0x3b8] sm:$0xff]  ;;  %v652_v6 = vld [vmem:[#allocation8 + $0x3a0] sm:$0xff] }
  0xa6   :  { %2646 = vmatmul.mubr.msk.f32.gmra.mrb[6].mxu0 %vm168_vm1, %v119_v28  ;;  %v2770_v28 = vpack.c.bf16 %v643_v26, %v641_v25  ;;  %v1391_v3 = vld [vmem:[#allocation8 + $0xc68] sm:$0xff]  ;;  %v1393_v5 = vld [vmem:[#allocation8 + $0xc78] sm:$0xff]  ;;  %v654_v7 = vld [vmem:[#allocation8 + $0x3b0] sm:$0xff] }
  0xa7   :  { %306 = vmatprep.mubr.f32.mxu0 %v3922_v0  ;;  %2741 = vmatpush1.bf16.msra.mxu0 %v2740_v29  ;;  %v1381_v29 = vld [vmem:[#allocation8 + $0xc18] sm:$0xff]  ;;  %v3122_v8 = vpack.c.bf16 %v1393_v5, %v1391_v3  ;;  %v1390_v10 = vld [vmem:[#allocation8 + $0xc60] sm:$0xff]  ;;  %v1392_v11 = vld [vmem:[#allocation8 + $0xc70] sm:$0xff] }
  0xa8   :  { %2743 = vmatprep.subr.bf16.mxu0 %v2742_v30  ;;  %3109 = vmatpush1.bf16.msra.mxu1 %v3108_v24  ;;  %v640_v30 = vld [vmem:[#allocation8 + $0x340] sm:$0xff]  ;;  %v3110_v32 = vpack.c.bf16 %v1381_v29, %v1379_v27  ;;  %v3124_v13 = vpack.c.bf16 %v1392_v11, %v1390_v10  ;;  %v536_v14 = vld [vmem:[#allocation8 + $0x8] sm:$0xff]  ;;  %v538_v15 = vld [vmem:[#allocation8 + $0x18] sm:$0xff] }
  0xa9   :  { %v2772_v33 = vpack.c.bf16 %v642_v31, %v640_v30  ;;  %v129_v12 = vld [vmem:[#allocation2 + $0x68] sm:$0xff]  ;;  %v2786_v17 = vpack.c.bf16 %v538_v15, %v536_v14  ;;  %v1397_v18 = vld [vmem:[#allocation8 + $0xc98] sm:$0xff]  ;;  %v1400_v26 = vld [vmem:[#allocation8 + $0xcb0] sm:$0xff] }
  0xaa   :  { %2647 = vmatmul.mubr.msk.f32.gmra.mrb[8].mxu0 %vm168_vm1, %v120_v35  ;;  %v1380_v35 = vld [vmem:[#allocation8 + $0xc10] sm:$0xff]  ;;  %3111 = vmatprep.subr.bf16.mxu1 %v3110_v32  ;;  %v1394_v20 = vld [vmem:[#allocation8 + $0xc80] sm:$0xff]  ;;  %v1399_v22 = vld [vmem:[#allocation8 + $0xca8] sm:$0xff] }
  0xab   :  { %312 = vmatprep.mubr.f32.mxu0 %v3922_v0  ;;  %2745 = vmatpush1.bf16.msra.mxu0 %v2744_v36  ;;  %v126_v36 = vld [vmem:[#allocation2 + $0x50] sm:$0xff]  ;;  %v1401_v23 = vld [vmem:[#allocation8 + $0xcb8] sm:$0xff]  ;;  %v1398_v25 = vld [vmem:[#allocation8 + $0xca0] sm:$0xff] }
  0xac   :  { %2747 = vmatprep.subr.bf16.mxu0 %v2746_v37  ;;  %v3112_v37 = vpack.c.bf16 %v1380_v35, %v1378_v34  ;;  %v3130_v24 = vpack.c.bf16 %v1401_v23, %v1399_v22  ;;  %v3132_v27 = vpack.c.bf16 %v1400_v26, %v1398_v25  ;;  %v1405_v29 = vld [vmem:[#allocation8 + $0xcd8] sm:$0xff]  ;;  %v1402_v31 = vld [vmem:[#allocation8 + $0xcc0] sm:$0xff]  ;;  %v1404_v32 = vld [vmem:[#allocation8 + $0xcd0] sm:$0xff] }
  0xad   :  { %v1407_v34 = vld [vmem:[#allocation8 + $0xce8] sm:$0xff]  ;;  %v1409_v35 = vld [vmem:[#allocation8 + $0xcf8] sm:$0xff]  ;;  %v1408_v38 = vld [vmem:[#allocation8 + $0xcf0] sm:$0xff] }
  0xae   :  { %2648 = vmatmul.mubr.msk.f32.gmra.mrb[10].mxu0 %vm168_vm1, %v121_v42  ;;  %3113 = vmatpush1.bf16.msra.mxu1 %v3112_v37  ;;  %v1385_v42 = vld [vmem:[#allocation8 + $0xc38] sm:$0xff]  ;;  %v1406_v37 = vld [vmem:[#allocation8 + $0xce0] sm:$0xff] }
  0xaf   :  { %318 = vmatprep.mubr.f32.mxu0 %v3922_v0  ;;  %2749 = vmatpush1.bf16.msra.mxu0 %v2748_v43  ;;  %v644_v43 = vld [vmem:[#allocation8 + $0x360] sm:$0xff]  ;;  %v3114_v45 = vpack.c.bf16 %v1385_v42, %v1383_v40  ;;  %v3140_v39 = vpack.c.bf16 %v1408_v38, %v1406_v37  ;;  %v1411_v40 = vld [vmem:[#allocation8 + $0xd08] sm:$0xff] }
  0xb0   :  { %2751 = vmatprep.subr.bf16.mxu0 %v2750_v44  ;;  %v646_v44 = vld [vmem:[#allocation8 + $0x370] sm:$0xff] }
  0xb1   :  { %v2776_v46 = vpack.c.bf16 %v646_v44, %v644_v43  ;;  %3115 = vmatprep.subr.bf16.mxu1 %v3114_v45  ;;  %v1410_v43 = vld [vmem:[#allocation8 + $0xd00] sm:$0xff]  ;;  %v1412_v44 = vld [vmem:[#allocation8 + $0xd10] sm:$0xff] }
  0xb2   :  { %2649 = vmatmul.mubr.msk.f32.gmra.mrb[12].mxu0 %vm168_vm1, %v122_v49  ;;  %v127_v49 = vld [vmem:[#allocation2 + $0x58] sm:$0xff]  ;;  %v3144_v45 = vpack.c.bf16 %v1412_v44, %v1410_v43 }
  0xb3   :  { %324 = vmatprep.mubr.f32.mxu0 %v3922_v0  ;;  %2753 = vmatpush1.bf16.msra.mxu0 %v2752_v50  ;;  %v3116_v50 = vpack.c.bf16 %v1384_v48, %v1382_v47  ;;  %v1494_v47 = vld [vmem:[#allocation8 + $0xd38] sm:$0xff]  ;;  %v545_v43 = vld [vmem:[#allocation8 + $0x50] sm:$0xff] }
  0xb4   :  { %2755 = vmatprep.subr.bf16.mxu0 %v2754_v51  ;;  %v649_v51 = vld [vmem:[#allocation8 + $0x388] sm:$0xff] }
  0xb5   :  { %3117 = vmatpush1.bf16.msra.mxu1 %v3116_v50  ;;  %v2778_v54 = vpack.c.bf16 %v651_v52, %v649_v51  ;;  %v156_v52 = vld [vmem:[#allocation7] sm:$0x3] }
  0xb6   :  { %2650 = vmatmul.mubr.msk.f32.gmra.mrb[14].mxu0 %vm168_vm1, %v123_v56  ;;  %v648_v56 = vld [vmem:[#allocation8 + $0x380] sm:$0xff] }
  0xb7   :  { %330 = vmatprep.mubr.f32.mxu0 %v3922_v0  ;;  %2757 = vmatpush1.bf16.msra.mxu0 %v2756_v57  ;;  %v650_v57 = vld [vmem:[#allocation8 + $0x390] sm:$0xff] }
  0xb8   :  { %2759 = vmatprep.subr.bf16.mxu0 %v2758_v58  ;;  %v3118_v58 = vpack.c.bf16 %v1389_v55, %v1387_v53  ;;  %v2780_v59 = vpack.c.bf16 %v650_v57, %v648_v56 }
  0xba   :  { %2651 = vmatmul.mubr.msk.f32.gmra.mrb[16].mxu0 %vm168_vm1, %v124_v61  ;;  %v1388_v61 = vld [vmem:[#allocation8 + $0xc50] sm:$0xff]  ;;  %3119 = vmatprep.subr.bf16.mxu1 %v3118_v58 }
  0xbb   :  { %336 = vmatprep.mubr.f32.mxu0 %v3922_v0  ;;  %2761 = vmatpush1.bf16.msra.mxu0 %v2760_v62  ;;  %v128_v62 = vld [vmem:[#allocation2 + $0x60] sm:$0xff] }
  0xbc   :  { %2763 = vmatprep.subr.bf16.mxu0 %v2762_v4  ;;  %v2782_v4 = vpack.c.bf16 %v655_v2, %v653_v1 }
  0xbe   :  { %2652 = vmatmul.mubr.msk.f32.gmra.mrb[18].mxu0 %vm168_vm1, %v125_v63  ;;  %v3120_v63 = vpack.c.bf16 %v1388_v61, %v1386_v60 }
  0xbf   :  { %342 = vmatprep.mubr.f32.mxu0 %v3922_v0  ;;  %2765 = vmatpush1.bf16.msra.mxu0 %v2764_v9  ;;  %v2784_v9 = vpack.c.bf16 %v654_v7, %v652_v6 }
  0xc0   :  { %2767 = vmatprep.subr.bf16.mxu0 %v2766_v16  ;;  %3121 = vmatpush1.bf16.msra.mxu1 %v3120_v63  ;;  %v1395_v16 = vld [vmem:[#allocation8 + $0xc88] sm:$0xff] }
  0xc1   :  { %3123 = vmatprep.subr.bf16.mxu1 %v3122_v8  ;;  %v3126_v19 = vpack.c.bf16 %v1397_v18, %v1395_v16  ;;  %v535_v16 = vld [vmem:[#allocation8] sm:$0xff] }
  0xc2   :  { %2653 = vmatmul.mubr.msk.f32.gmra.mrb[20].mxu0 %vm168_vm1, %v126_v36  ;;  %v3138_v36 = vpack.c.bf16 %v1409_v35, %v1407_v34  ;;  %v546_v34 = vld [vmem:[#allocation8 + $0x58] sm:$0xff] }
  0xc3   :  { %2769 = vmatpush1.bf16.msra.mxu0 %v2768_v21  ;;  %348 = vmatprep.mubr.f32.mxu0 %v3922_v0 }
  0xc4   :  { %2771 = vmatprep.subr.bf16.mxu0 %v2770_v28  ;;  %3125 = vmatpush1.bf16.msra.mxu1 %v3124_v13  ;;  %v1403_v28 = vld [vmem:[#allocation8 + $0xcc8] sm:$0xff] }
  0xc5   :  { %3127 = vmatprep.subr.bf16.mxu1 %v3126_v19  ;;  %v3134_v30 = vpack.c.bf16 %v1405_v29, %v1403_v28  ;;  %v539_v29 = vld [vmem:[#allocation8 + $0x20] sm:$0xff] }
  0xc6   :  { %2654 = vmatmul.mubr.msk.f32.gmra.mrb[22].mxu0 %vm168_vm1, %v127_v49  ;;  %v158_v49 = vlaneseq }
  0xc7   :  { %2773 = vmatpush1.bf16.msra.mxu0 %v2772_v33  ;;  %354 = vmatprep.mubr.f32.mxu0 %v3922_v0  ;;  %v3136_v33 = vpack.c.bf16 %v1404_v32, %v1402_v31 }
  0xc8   :  { %2775 = vmatprep.subr.bf16.mxu0 %v2774_v41  ;;  %v1413_v41 = vld [vmem:[#allocation8 + $0xd18] sm:$0xff]  ;;  %v159_v50 = vshrl.u32 %v158_v49, 7 }
  0xc9   :  { %v3142_v42 = vpack.c.bf16 %v1413_v41, %v1411_v40 }
  0xca   :  { %2655 = vmatmul.mubr.msk.f32.gmra.mrb[24].mxu0 %vm168_vm1, %v128_v62  ;;  %v4087_v51 = vsub.s32 1, %v159_v50 }
  0xcb   :  { %2777 = vmatpush1.bf16.msra.mxu0 %v2776_v46  ;;  %360 = vmatprep.mubr.f32.mxu0 %v3922_v0  ;;  %v1396_v0 = vld [vmem:[#allocation8 + $0xc90] sm:$0xff]  ;;  %v1492_v46 = vld [vmem:[#allocation8 + $0xd28] sm:$0xff] }
  0xcc   :  { %2779 = vmatprep.subr.bf16.mxu0 %v2778_v54  ;;  %v3128_v21 = vpack.c.bf16 %v1396_v0, %v1394_v20  ;;  %v3146_v48 = vpack.c.bf16 %v1494_v47, %v1492_v46  ;;  %v4090_v53 = vrot.slane %v156_v52, %v4087_v51  ;;  %v4092_v54 = vsub.s32 0, %v159_v50  ;;  %v540_v20 = vld [vmem:[#allocation8 + $0x28] sm:$0xff]  ;;  %v542_v0 = vld [vmem:[#allocation8 + $0x38] sm:$0xff] }
  0xcd   :  { %v2790_v28 = vpack.c.bf16 %v542_v0, %v540_v20  ;;  %v548_v46 = vld [vmem:[#allocation8 + $0x68] sm:$0xff]  ;;  %v550_v47 = vld [vmem:[#allocation8 + $0x78] sm:$0xff]  ;;  %v1491_v20 = vld [vmem:[#allocation8 + $0xd20] sm:$0xff] }
  0xce   :  { %2656 = vmatmul.mubr.msk.f32.gmra.mrb[26].mxu0 %vm168_vm1, %v129_v12  ;;  %3129 = vmatpush1.bf16.msra.mxu1 %v3128_v21  ;;  %v4098_v58 = vrot.slane %v156_v52, %v4092_v54  ;;  %v1493_v0 = vld [vmem:[#allocation8 + $0xd30] sm:$0xff] }
  0xcf   :  { %2781 = vmatpush1.bf16.msra.mxu0 %v2780_v59  ;;  %3131 = vmatprep.subr.bf16.mxu1 %v3130_v24 }
  0xd0   :  { %2783 = vmatprep.subr.bf16.mxu0 %v2782_v4 }
  0xd2   :  { %3133 = vmatpush1.bf16.msra.mxu1 %v3132_v27 }
  0xd3   :  { %2785 = vmatpush1.bf16.msra.mxu0 %v2784_v9  ;;  %3135 = vmatprep.subr.bf16.mxu1 %v3134_v30  ;;  %v541_v30 = vld [vmem:[#allocation8 + $0x30] sm:$0xff] }
  0xd4   :  { %2787 = vmatprep.subr.bf16.mxu0 %v2786_v17  ;;  %v537_v17 = vld [vmem:[#allocation8 + $0x10] sm:$0xff]  ;;  %v2792_v38 = vpack.c.bf16 %v541_v30, %v539_v29  ;;  %v3148_v30 = vpack.c.bf16 %v1493_v0, %v1491_v20  ;;  %v574_v20 = vld [vmem:[#allocation8 + $0x138] sm:$0xff] }
  0xd5   :  { %v2788_v24 = vpack.c.bf16 %v537_v17, %v535_v16  ;;  %v555_v16 = vld [vmem:[#allocation8 + $0xa0] sm:$0xff]  ;;  %v557_v17 = vld [vmem:[#allocation8 + $0xb0] sm:$0xff]  ;;  %v1510_v0 = vld [vmem:[#allocation8 + $0xdb8] sm:$0xff] }
  0xd6   :  { %3137 = vmatpush1.bf16.msra.mxu1 %v3136_v33  ;;  %v544_v33 = vld [vmem:[#allocation8 + $0x48] sm:$0xff]  ;;  %v2808_v29 = vpack.c.bf16 %v557_v17, %v555_v16  ;;  %v1503_v17 = vld [vmem:[#allocation8 + $0xd80] sm:$0xff] }
  0xd7   :  { %3139 = vmatprep.subr.bf16.mxu1 %v3138_v36  ;;  %v2794_v41 = vpack.c.bf16 %v546_v34, %v544_v33  ;;  %v561_v33 = vld [vmem:[#allocation8 + $0xd0] sm:$0xff] }
  0xda   :  { %3141 = vmatpush1.bf16.msra.mxu1 %v3140_v39 }
  0xdb   :  { %3143 = vmatprep.subr.bf16.mxu1 %v3142_v42  ;;  %v543_v42 = vld [vmem:[#allocation8 + $0x40] sm:$0xff] }
  0xdc   :  { %v2796_v49 = vpack.c.bf16 %v545_v43, %v543_v42  ;;  %v566_v43 = vld [vmem:[#allocation8 + $0xf8] sm:$0xff] }
  0xde   :  { %3145 = vmatpush1.bf16.msra.mxu1 %v3144_v45 }
  0xdf   :  { %3147 = vmatprep.subr.bf16.mxu1 %v3146_v48 }
 0x16d   :  { %v4094_v55 = vpop.f32.mrb[0].mxu0 }
 0x16e   :  { %v286_v56 = vpop.f32.mrb[1].mxu0 }
 0x16f   :  { %v287_v57 = vadd.f32 %v286_v56, %v4090_v53  ;;  %v2798_v56 = vpack.c.bf16 %v550_v47, %v548_v46 }
 0x171   :  { %v396_v59 = vmin.f32 %v287_v57, 0.0  ;;  %v290_v60 = vpop.f32.mrb[2].mxu0  ;;  %vm368_vm5 = vcmp.gt.f32.partialorder %v287_v57, 0.0 }
 0x172   :  { %v291_v61 = vadd.f32 %v290_v60, %v4098_v58  ;;  %v292_v62 = vpop.f32.mrb[3].mxu0 }
 0x173   :  { %v425_v63 = vmul.f32 1.442695, %v396_v59  ;;  %v293_v1 = vadd.f32 %v292_v62, %v4090_v53  ;;  %v549_v59 = vld [vmem:[#allocation8 + $0x70] sm:$0xff]  ;;  %v554_v62 = vld [vmem:[#allocation8 + $0x98] sm:$0xff] }
 0x174   :  { %v397_v2 = vmin.f32 %v291_v61, 0.0  ;;  %vm369_vm4 = vcmp.gt.f32.partialorder %v291_v61, 0.0 }
 0x175   :  { %v398_v3 = vmin.f32 %v293_v1, 0.0  ;;  %v4102_v4 = vpop.f32.mrb[4].mxu0  ;;  %3665 = vpow2.f32 %v425_v63  ;;  %vm370_vm3 = vcmp.gt.f32.partialorder %v293_v1, 0.0 }
 0x176   :  { %v427_v5 = vmul.f32 1.442695, %v397_v2  ;;  %v4104_v6 = vpop.f32.mrb[5].mxu0 }
 0x177   :  { %v429_v7 = vmul.f32 1.442695, %v398_v3  ;;  %v551_v3 = vld [vmem:[#allocation8 + $0x80] sm:$0xff] }
 0x178   :  { %3667 = vpow2.f32 %v427_v5  ;;  %v553_v5 = vld [vmem:[#allocation8 + $0x90] sm:$0xff] }
 0x179   :  { %3669 = vpow2.f32 %v429_v7  ;;  %v4106_v8 = vpop.f32.mrb[6].mxu0  ;;  %v556_v7 = vld [vmem:[#allocation8 + $0xa8] sm:$0xff] }
 0x17a   :  { %v4108_v9 = vpop.f32.mrb[7].mxu0 }
 0x17d   :  { %v4110_v10 = vpop.f32.mrb[8].mxu0 }
 0x17e   :  { %v4112_v11 = vpop.f32.mrb[9].mxu0 }
 0x17f   :  { %v3666_v12 = vpop.eup %3665 }
 0x180   :  { %v2658_v22 = vadd.f32 -1.0, %v3666_v12  ;;  %v558_v12 = vld [vmem:[#allocation8 + $0xb8] sm:$0xff] }
 0x181   :  { %v4114_v13 = vpop.f32.mrb[10].mxu0 }
 0x182   :  { %v3668_v14 = vpop.eup %3667  ;;  %v4116_v15 = vpop.f32.mrb[11].mxu0  ;;  %v508_v36 = vsel %vm368_vm5, %v287_v57, %v2658_v22  ;;  %v547_v57 = vld [vmem:[#allocation8 + $0x60] sm:$0xff] }
 0x183   :  { %v3670_v18 = vpop.eup %3669  ;;  %v2659_v19 = vadd.f32 -1.0, %v3668_v14  ;;  %v2804_v14 = vpack.c.bf16 %v553_v5, %v551_v3 }
 0x184   :  { %v2660_v21 = vadd.f32 -1.0, %v3670_v18 }
 0x185   :  { %v320_v23 = vpop.f32.mrb[12].mxu0  ;;  %v509_v31 = vsel %vm369_vm4, %v291_v61, %v2659_v19  ;;  %v552_v61 = vld [vmem:[#allocation8 + $0x88] sm:$0xff]  ;;  %v2806_v19 = vpack.c.bf16 %v558_v12, %v556_v7  ;;  %v567_v7 = vld [vmem:[#allocation8 + $0x100] sm:$0xff]  ;;  %v569_v12 = vld [vmem:[#allocation8 + $0x110] sm:$0xff] }
 0x186   :  { %v4119_v25 = vadd.f32 %v320_v23, %v4098_v58  ;;  %v322_v26 = vpop.f32.mrb[13].mxu0  ;;  %v510_v27 = vsel %vm370_vm3, %v293_v1, %v2660_v21  ;;  %v2800_v1 = vpack.c.bf16 %v549_v59, %v547_v57  ;;  %v2802_v2 = vpack.c.bf16 %v554_v62, %v552_v61  ;;  %v560_v21 = vld [vmem:[#allocation8 + $0xc8] sm:$0xff]  ;;  %v1499_v59 = vld [vmem:[#allocation8 + $0xd60] sm:$0xff]  ;;  %v1501_v61 = vld [vmem:[#allocation8 + $0xd70] sm:$0xff] }
 0x187   :  { %v4122_v32 = vadd.f32 %v322_v26, %v4090_v53  ;;  %2685 = vmatprep.mubr.msk.f32.mxu0 %vm656_vm2, %v510_v27  ;;  %v1496_v26 = vld [vmem:[#allocation8 + $0xd48] sm:$0xff]  ;;  %v1498_v27 = vld [vmem:[#allocation8 + $0xd58] sm:$0xff]  ;;  %v3156_v5 = vpack.c.bf16 %v1501_v61, %v1499_v59  ;;  %v579_v61 = vld [vmem:[#allocation8 + $0x160] sm:$0xff] }
 0x188   :  { %v407_v35 = vmin.f32 %v4119_v25, 0.0  ;;  %725 = vmatmul.mubr.f32.vlgmr.msra.gmra.mrb[28].mxu0 %v509_v31  ;;  %v559_v31 = vld [vmem:[#allocation8 + $0xc0] sm:$0xff]  ;;  %vm379_vm7 = vcmp.gt.f32.partialorder %v4119_v25, 0.0 }
 0x189   :  { %v408_v37 = vmin.f32 %v4122_v32, 0.0  ;;  %2789 = vmatpush1.bf16.msra.mxu0 %v2788_v24  ;;  %2686 = vmatprep.mubr.msk.f32.mxu0 %vm656_vm2, %v508_v36  ;;  %v4128_v39 = vpop.f32.mrb[14].mxu0  ;;  %v562_v24 = vld [vmem:[#allocation8 + $0xd8] sm:$0xff]  ;;  %vm380_vm6 = vcmp.gt.f32.partialorder %v4122_v32, 0.0  ;;  %v3150_v36 = vpack.c.bf16 %v1498_v27, %v1496_v26  ;;  %v4150_v26 = vadd.f32 %v4094_v55, %v4098_v58 }
 0x18a   :  { %v447_v40 = vmul.f32 1.442695, %v407_v35  ;;  %2791 = vmatprep.subr.bf16.mxu0 %v2790_v28  ;;  %v328_v44 = vpop.f32.mrb[15].mxu0  ;;  %v2810_v35 = vpack.c.bf16 %v562_v24, %v560_v21  ;;  %v2820_v21 = vpack.c.bf16 %v569_v12, %v567_v7  ;;  %v573_v24 = vld [vmem:[#allocation8 + $0x130] sm:$0xff]  ;;  %v586_v12 = vld [vmem:[#allocation8 + $0x198] sm:$0xff] }
 0x18b   :  { %v449_v45 = vmul.f32 1.442695, %v408_v37  ;;  %v4131_v48 = vadd.f32 %v328_v44, %v4090_v53  ;;  %v1495_v37 = vld [vmem:[#allocation8 + $0xd40] sm:$0xff]  ;;  %v1500_v44 = vld [vmem:[#allocation8 + $0xd68] sm:$0xff]  ;;  %vm367_vm9 = vcmp.gt.f32.partialorder %v4150_v26, 0.0 }
 0x18c   :  { %3671 = vpow2.f32 %v447_v40  ;;  %v564_v40 = vld [vmem:[#allocation8 + $0xe8] sm:$0xff] }
 0x18d   :  { %3673 = vpow2.f32 %v449_v45  ;;  %2793 = vmatpush1.bf16.msra.mxu0 %v2792_v38  ;;  %v410_v50 = vmin.f32 %v4131_v48, 0.0  ;;  %v4134_v52 = vpop.f32.mrb[16].mxu0  ;;  %v1497_v38 = vld [vmem:[#allocation8 + $0xd50] sm:$0xff]  ;;  %v1502_v45 = vld [vmem:[#allocation8 + $0xd78] sm:$0xff]  ;;  %vm382_vm8 = vcmp.gt.f32.partialorder %v4131_v48, 0.0 }
 0x18e   :  { %2795 = vmatprep.subr.bf16.mxu0 %v2794_v41  ;;  %v4136_v60 = vpop.f32.mrb[17].mxu0  ;;  %v3152_v47 = vpack.c.bf16 %v1497_v38, %v1495_v37  ;;  %v3154_v57 = vpack.c.bf16 %v1502_v45, %v1500_v44  ;;  %v1514_v37 = vld [vmem:[#allocation8 + $0xdd8] sm:$0xff] }
 0x18f   :  { %v453_v63 = vmul.f32 1.442695, %v410_v50  ;;  %v565_v50 = vld [vmem:[#allocation8 + $0xf0] sm:$0xff] }
 0x191   :  { %2797 = vmatpush1.bf16.msra.mxu0 %v2796_v49  ;;  %3675 = vpow2.f32 %v453_v63  ;;  %v563_v49 = vld [vmem:[#allocation8 + $0xe0] sm:$0xff]  ;;  %v570_v63 = vld [vmem:[#allocation8 + $0x118] sm:$0xff] }
 0x192   :  { %2799 = vmatprep.subr.bf16.mxu0 %v2798_v56  ;;  %v2814_v56 = vpack.c.bf16 %v566_v43, %v564_v40  ;;  %v2816_v3 = vpack.c.bf16 %v565_v50, %v563_v49  ;;  %v395_v43 = vmin.f32 %v4150_v26, 0.0  ;;  %v582_v49 = vld [vmem:[#allocation8 + $0x178] sm:$0xff]  ;;  %v1516_v50 = vld [vmem:[#allocation8 + $0xde8] sm:$0xff] }
 0x195   :  { %2801 = vmatpush1.bf16.msra.mxu0 %v2800_v1  ;;  %v1504_v1 = vld [vmem:[#allocation8 + $0xd88] sm:$0xff] }
 0x196   :  { %v3672_v18 = vpop.eup %3671  ;;  %2803 = vmatprep.subr.bf16.mxu0 %v2802_v2  ;;  %v1506_v2 = vld [vmem:[#allocation8 + $0xd98] sm:$0xff] }
 0x197   :  { %v3674_v22 = vpop.eup %3673  ;;  %v2669_v23 = vadd.f32 -1.0, %v3672_v18  ;;  %v3158_v16 = vpack.c.bf16 %v1506_v2, %v1504_v1  ;;  %v1505_v18 = vld [vmem:[#allocation8 + $0xd90] sm:$0xff]  ;;  %v1515_v2 = vld [vmem:[#allocation8 + $0xde0] sm:$0xff] }
 0x198   :  { %v2670_v28 = vadd.f32 -1.0, %v3674_v22  ;;  %v3160_v22 = vpack.c.bf16 %v1505_v18, %v1503_v17 }
 0x199   :  { %2805 = vmatpush1.bf16.msra.mxu0 %v2804_v14  ;;  %v519_v42 = vsel %vm379_vm7, %v4119_v25, %v2669_v23  ;;  %v568_v25 = vld [vmem:[#allocation8 + $0x108] sm:$0xff]  ;;  %v571_v23 = vld [vmem:[#allocation8 + $0x120] sm:$0xff] }
 0x19a   :  { %2807 = vmatprep.subr.bf16.mxu0 %v2806_v19  ;;  %v520_v34 = vsel %vm380_vm6, %v4122_v32, %v2670_v28  ;;  %v2812_v32 = vpack.c.bf16 %v561_v33, %v559_v31  ;;  %v2818_v14 = vpack.c.bf16 %v570_v63, %v568_v25  ;;  %v572_v19 = vld [vmem:[#allocation8 + $0x128] sm:$0xff]  ;;  %v4152_v33 = vpop.f32.mrb[18].mxu0  ;;  %v2824_v55 = vpack.c.bf16 %v573_v24, %v571_v23  ;;  %v581_v25 = vld [vmem:[#allocation8 + $0x170] sm:$0xff]  ;;  %v590_v24 = vld [vmem:[#allocation8 + $0x1b8] sm:$0xff] }
 0x19b   :  { %v3676_v41 = vpop.eup %3675  ;;  %2691 = vmatprep.mubr.msk.f32.mxu1 %vm656_vm2, %v520_v34  ;;  %v2822_v27 = vpack.c.bf16 %v574_v20, %v572_v19  ;;  %v576_v31 = vld [vmem:[#allocation8 + $0x148] sm:$0xff]  ;;  %v4156_v34 = vadd.f32 %v4104_v6, %v4090_v53  ;;  %v4158_v38 = vpop.f32.mrb[19].mxu0  ;;  %v1513_v6 = vld [vmem:[#allocation8 + $0xdd0] sm:$0xff]  ;;  %v2832_v17 = vpack.c.bf16 %v581_v25, %v579_v61  ;;  %v583_v19 = vld [vmem:[#allocation8 + $0x180] sm:$0xff] }
 0x19c   :  { %1482 = vmatmul.mubr.f32.vlgmr.msra.gmra.mrb[0].mxu1 %v519_v42  ;;  %v2672_v46 = vadd.f32 -1.0, %v3676_v41  ;;  %v575_v41 = vld [vmem:[#allocation8 + $0x140] sm:$0xff]  ;;  %v577_v42 = vld [vmem:[#allocation8 + $0x150] sm:$0xff]  ;;  %v588_v23 = vld [vmem:[#allocation8 + $0x1a8] sm:$0xff] }
 0x19d   :  { %2809 = vmatpush1.bf16.msra.mxu0 %v2808_v29  ;;  %3149 = vmatpush1.bf16.msra.mxu1 %v3148_v30  ;;  %v1507_v29 = vld [vmem:[#allocation8 + $0xda0] sm:$0xff]  ;;  %v1509_v30 = vld [vmem:[#allocation8 + $0xdb0] sm:$0xff]  ;;  %v809_v61 = vld [vmem:[#allocation8 + $0x3d8] sm:$0xff]  ;;  %vm372_vm10 = vcmp.gt.f32.partialorder %v4156_v34, 0.0 }
 0x19e   :  { %2811 = vmatprep.subr.bf16.mxu0 %v2810_v35  ;;  %3151 = vmatprep.subr.bf16.mxu1 %v3150_v36  ;;  %v522_v62 = vsel %vm382_vm8, %v4131_v48, %v2672_v46  ;;  %v1508_v48 = vld [vmem:[#allocation8 + $0xda8] sm:$0xff]  ;;  %v578_v35 = vld [vmem:[#allocation8 + $0x158] sm:$0xff]  ;;  %v3164_v40 = vpack.c.bf16 %v1509_v30, %v1507_v29  ;;  %v1511_v46 = vld [vmem:[#allocation8 + $0xdc0] sm:$0xff] }
 0x19f   :  { %2692 = vmatprep.mubr.msk.f32.mxu1 %vm656_vm2, %v522_v62  ;;  %v3162_v28 = vpack.c.bf16 %v1510_v0, %v1508_v48  ;;  %v1512_v36 = vld [vmem:[#allocation8 + $0xdc8] sm:$0xff]  ;;  %v2826_v44 = vpack.c.bf16 %v578_v35, %v576_v31  ;;  %v3168_v59 = vpack.c.bf16 %v1513_v6, %v1511_v46  ;;  %v423_v62 = vmul.f32 1.442695, %v395_v43  ;;  %v585_v20 = vld [vmem:[#allocation8 + $0x190] sm:$0xff]  ;;  %v587_v31 = vld [vmem:[#allocation8 + $0x1a0] sm:$0xff] }
 0x1a0   :  { %v3166_v45 = vpack.c.bf16 %v1514_v37, %v1512_v36  ;;  %v2836_v29 = vpack.c.bf16 %v585_v20, %v583_v19  ;;  %v589_v35 = vld [vmem:[#allocation8 + $0x1b0] sm:$0xff]  ;;  %v2838_v36 = vpack.c.bf16 %v590_v24, %v588_v23  ;;  %v1528_v43 = vld [vmem:[#allocation8 + $0xe48] sm:$0xff]  ;;  %v591_v6 = vld [vmem:[#allocation8 + $0x1c0] sm:$0xff] }
 0x1a1   :  { %2813 = vmatpush1.bf16.msra.mxu0 %v2812_v32  ;;  %3153 = vmatpush1.bf16.msra.mxu1 %v3152_v47  ;;  %v580_v32 = vld [vmem:[#allocation8 + $0x168] sm:$0xff]  ;;  %v400_v47 = vmin.f32 %v4156_v34, 0.0  ;;  %3677 = vpow2.f32 %v423_v62  ;;  %v1534_v62 = vld [vmem:[#allocation8 + $0xe78] sm:$0xff]  ;;  %v1533_v19 = vld [vmem:[#allocation8 + $0xe70] sm:$0xff] }
 0x1a2   :  { %2815 = vmatprep.subr.bf16.mxu0 %v2814_v56  ;;  %3155 = vmatprep.subr.bf16.mxu1 %v3154_v57  ;;  %v1518_v56 = vld [vmem:[#allocation8 + $0xdf8] sm:$0xff]  ;;  %v2828_v57 = vpack.c.bf16 %v577_v42, %v575_v41  ;;  %v2830_v63 = vpack.c.bf16 %v582_v49, %v580_v32  ;;  %v592_v41 = vld [vmem:[#allocation8 + $0x1c8] sm:$0xff]  ;;  %v593_v32 = vld [vmem:[#allocation8 + $0x1d0] sm:$0xff] }
 0x1a3   :  { %v3170_v1 = vpack.c.bf16 %v1518_v56, %v1516_v50  ;;  %v433_v7 = vmul.f32 1.442695, %v400_v47  ;;  %v594_v42 = vld [vmem:[#allocation8 + $0x1d8] sm:$0xff]  ;;  %v4164_v47 = vadd.f32 %v4128_v39, %v4098_v58  ;;  %v1527_v56 = vld [vmem:[#allocation8 + $0xe40] sm:$0xff]  ;;  %v1532_v25 = vld [vmem:[#allocation8 + $0xe68] sm:$0xff]  ;;  %v2844_v39 = vpack.c.bf16 %v593_v32, %v591_v6 }
 0x1a4   :  { %v2842_v49 = vpack.c.bf16 %v594_v42, %v592_v41  ;;  %v811_v20 = vld [vmem:[#allocation8 + $0x3e8] sm:$0xff]  ;;  %v816_v32 = vld [vmem:[#allocation8 + $0x410] sm:$0xff] }
 0x1a5   :  { %2817 = vmatpush1.bf16.msra.mxu0 %v2816_v3  ;;  %3157 = vmatpush1.bf16.msra.mxu1 %v3156_v5  ;;  %v1517_v3 = vld [vmem:[#allocation8 + $0xdf0] sm:$0xff]  ;;  %v584_v5 = vld [vmem:[#allocation8 + $0x188] sm:$0xff]  ;;  %3679 = vpow2.f32 %v433_v7  ;;  %vm381_vm11 = vcmp.gt.f32.partialorder %v4164_v47, 0.0 }
 0x1a6   :  { %2819 = vmatprep.subr.bf16.mxu0 %v2818_v14  ;;  %3159 = vmatprep.subr.bf16.mxu1 %v3158_v16  ;;  %v1520_v14 = vld [vmem:[#allocation8 + $0xe08] sm:$0xff]  ;;  %v1522_v16 = vld [vmem:[#allocation8 + $0xe18] sm:$0xff]  ;;  %v3172_v18 = vpack.c.bf16 %v1517_v3, %v1515_v2  ;;  %v2834_v48 = vpack.c.bf16 %v586_v12, %v584_v5  ;;  %v409_v5 = vmin.f32 %v4164_v47, 0.0  ;;  %v3186_v12 = vpack.c.bf16 %v1534_v62, %v1532_v25 }
 0x1a7   :  { %v3174_v0 = vpack.c.bf16 %v1522_v16, %v1520_v14  ;;  %v806_v14 = vld [vmem:[#allocation8 + $0x3c0] sm:$0xff]  ;;  %v808_v16 = vld [vmem:[#allocation8 + $0x3d0] sm:$0xff] }
 0x1a8   :  { %v2848_v23 = vpack.c.bf16 %v808_v16, %v806_v14  ;;  %v451_v24 = vmul.f32 1.442695, %v409_v5  ;;  %v825_v14 = vld [vmem:[#allocation8 + $0x458] sm:$0xff]  ;;  %v1548_v16 = vld [vmem:[#allocation8 + $0xee8] sm:$0xff] }
 0x1a9   :  { %2821 = vmatpush1.bf16.msra.mxu0 %v2820_v21  ;;  %3161 = vmatpush1.bf16.msra.mxu1 %v3160_v22  ;;  %v1519_v21 = vld [vmem:[#allocation8 + $0xe00] sm:$0xff]  ;;  %v1521_v22 = vld [vmem:[#allocation8 + $0xe10] sm:$0xff] }
 0x1aa   :  { %2823 = vmatprep.subr.bf16.mxu0 %v2822_v27  ;;  %3163 = vmatprep.subr.bf16.mxu1 %v3162_v28  ;;  %v1524_v27 = vld [vmem:[#allocation8 + $0xe28] sm:$0xff]  ;;  %v1526_v28 = vld [vmem:[#allocation8 + $0xe38] sm:$0xff]  ;;  %v3176_v30 = vpack.c.bf16 %v1521_v22, %v1519_v21  ;;  %3681 = vpow2.f32 %v451_v24 }
 0x1ab   :  { %v3178_v37 = vpack.c.bf16 %v1526_v28, %v1524_v27  ;;  %v1536_v21 = vld [vmem:[#allocation8 + $0xe88] sm:$0xff]  ;;  %v1538_v22 = vld [vmem:[#allocation8 + $0xe98] sm:$0xff] }
 0x1ac   :  { %v829_v24 = vld [vmem:[#allocation8 + $0x478] sm:$0xff] }
 0x1ad   :  { %2825 = vmatpush1.bf16.msra.mxu0 %v2824_v55  ;;  %3165 = vmatpush1.bf16.msra.mxu1 %v3164_v40  ;;  %v1523_v55 = vld [vmem:[#allocation8 + $0xe20] sm:$0xff]  ;;  %v1525_v40 = vld [vmem:[#allocation8 + $0xe30] sm:$0xff] }
 0x1ae   :  { %2827 = vmatprep.subr.bf16.mxu0 %v2826_v44  ;;  %3167 = vmatprep.subr.bf16.mxu1 %v3166_v45  ;;  %v1530_v44 = vld [vmem:[#allocation8 + $0xe58] sm:$0xff]  ;;  %v2840_v45 = vpack.c.bf16 %v589_v35, %v587_v31  ;;  %v3180_v46 = vpack.c.bf16 %v1525_v40, %v1523_v55  ;;  %v1535_v31 = vld [vmem:[#allocation8 + $0xe80] sm:$0xff]  ;;  %v815_v55 = vld [vmem:[#allocation8 + $0x408] sm:$0xff] }
 0x1af   :  { %v3182_v50 = vpack.c.bf16 %v1530_v44, %v1528_v43  ;;  %v817_v40 = vld [vmem:[#allocation8 + $0x418] sm:$0xff]  ;;  %v1540_v43 = vld [vmem:[#allocation8 + $0xea8] sm:$0xff] }
 0x1b0   :  { %v1542_v44 = vld [vmem:[#allocation8 + $0xeb8] sm:$0xff]  ;;  %v2854_v6 = vpack.c.bf16 %v817_v40, %v815_v55  ;;  %v828_v55 = vld [vmem:[#allocation8 + $0x470] sm:$0xff]  ;;  %v1628_v40 = vld [vmem:[#allocation8 + $0xf00] sm:$0xff] }
 0x1b1   :  { %2829 = vmatpush1.bf16.msra.mxu0 %v2828_v57  ;;  %3169 = vmatpush1.bf16.msra.mxu1 %v3168_v59  ;;  %v1529_v57 = vld [vmem:[#allocation8 + $0xe50] sm:$0xff]  ;;  %v807_v59 = vld [vmem:[#allocation8 + $0x3c8] sm:$0xff] }
 0x1b2   :  { %2831 = vmatprep.subr.bf16.mxu0 %v2830_v63  ;;  %3171 = vmatprep.subr.bf16.mxu1 %v3170_v1  ;;  %v4168_v63 = vadd.f32 %v4136_v60, %v4090_v53  ;;  %v3678_v1 = vpop.eup %3677  ;;  %v3184_v3 = vpack.c.bf16 %v1529_v57, %v1527_v56  ;;  %v2846_v7 = vpack.c.bf16 %v809_v61, %v807_v59  ;;  %v813_v60 = vld [vmem:[#allocation8 + $0x3f8] sm:$0xff]  ;;  %v1541_v56 = vld [vmem:[#allocation8 + $0xeb0] sm:$0xff]  ;;  %v819_v57 = vld [vmem:[#allocation8 + $0x428] sm:$0xff] }
 0x1b3   :  { %v3680_v2 = vpop.eup %3679  ;;  %v2850_v28 = vpack.c.bf16 %v813_v60, %v811_v20  ;;  %v821_v59 = vld [vmem:[#allocation8 + $0x438] sm:$0xff]  ;;  %v822_v60 = vld [vmem:[#allocation8 + $0x440] sm:$0xff] }
 0x1b4   :  { %v1546_v61 = vld [vmem:[#allocation8 + $0xed8] sm:$0xff]  ;;  %vm384_vm12 = vcmp.gt.f32.partialorder %v4168_v63, 0.0 }
 0x1b5   :  { %2833 = vmatpush1.bf16.msra.mxu0 %v2832_v17  ;;  %3173 = vmatpush1.bf16.msra.mxu1 %v3172_v18  ;;  %v1531_v17 = vld [vmem:[#allocation8 + $0xe60] sm:$0xff]  ;;  %v2657_v18 = vadd.f32 -1.0, %v3678_v1  ;;  %v2858_v1 = vpack.c.bf16 %v821_v59, %v819_v57  ;;  %v832_v57 = vld [vmem:[#allocation8 + $0x490] sm:$0xff] }
 0x1b6   :  { %2835 = vmatprep.subr.bf16.mxu0 %v2834_v48  ;;  %3175 = vmatprep.subr.bf16.mxu1 %v3174_v0  ;;  %v412_v48 = vmin.f32 %v4168_v63, 0.0  ;;  %v2662_v0 = vadd.f32 -1.0, %v3680_v2  ;;  %v3188_v27 = vpack.c.bf16 %v1533_v19, %v1531_v17  ;;  %v818_v2 = vld [vmem:[#allocation8 + $0x420] sm:$0xff]  ;;  %v1550_v17 = vld [vmem:[#allocation8 + $0xef8] sm:$0xff] }
 0x1b7   :  { %v507_v35 = vsel %vm367_vm9, %v4150_v26, %v2657_v18  ;;  %v814_v26 = vld [vmem:[#allocation8 + $0x400] sm:$0xff] }
 0x1b8   :  { %v457_v41 = vmul.f32 1.442695, %v412_v48  ;;  %v512_v42 = vsel %vm372_vm10, %v4156_v34, %v2662_v0  ;;  %v1544_v34 = vld [vmem:[#allocation8 + $0xec8] sm:$0xff]  ;;  %v2856_v25 = vpack.c.bf16 %v816_v32, %v814_v26  ;;  %v824_v48 = vld [vmem:[#allocation8 + $0x450] sm:$0xff]  ;;  %v1547_v0 = vld [vmem:[#allocation8 + $0xee0] sm:$0xff] }
 0x1b9   :  { %2837 = vmatpush1.bf16.msra.mxu0 %v2836_v29  ;;  %3177 = vmatpush1.bf16.msra.mxu1 %v3176_v30  ;;  %v810_v29 = vld [vmem:[#allocation8 + $0x3e0] sm:$0xff]  ;;  %v812_v30 = vld [vmem:[#allocation8 + $0x3f0] sm:$0xff]  ;;  %v3198_v5 = vpack.c.bf16 %v1546_v61, %v1544_v34 }
 0x1ba   :  { %2839 = vmatprep.subr.bf16.mxu0 %v2838_v36  ;;  %3179 = vmatprep.subr.bf16.mxu1 %v3178_v37  ;;  %v3190_v36 = vpack.c.bf16 %v1538_v22, %v1536_v21  ;;  %v1537_v37 = vld [vmem:[#allocation8 + $0xe90] sm:$0xff]  ;;  %3683 = vpow2.f32 %v457_v41  ;;  %v3202_v21 = vpack.c.bf16 %v1550_v17, %v1548_v16  ;;  %v1632_v59 = vld [vmem:[#allocation8 + $0xf20] sm:$0xff] }
 0x1bb   :  { %v1549_v22 = vld [vmem:[#allocation8 + $0xef0] sm:$0xff]  ;;  %v1636_v17 = vld [vmem:[#allocation8 + $0xf40] sm:$0xff] }
 0x1bc   :  { %v1634_v61 = vld [vmem:[#allocation8 + $0xf30] sm:$0xff] }
 0x1bd   :  { %2841 = vmatpush1.bf16.msra.mxu0 %v2840_v45  ;;  %3181 = vmatpush1.bf16.msra.mxu1 %v3180_v46  ;;  %v2852_v45 = vpack.c.bf16 %v812_v30, %v810_v29  ;;  %v3192_v46 = vpack.c.bf16 %v1537_v37, %v1535_v31  ;;  %v1631_v29 = vld [vmem:[#allocation8 + $0xf18] sm:$0xff]  ;;  %v2864_v31 = vpack.c.bf16 %v824_v48, %v822_v60  ;;  %v826_v37 = vld [vmem:[#allocation8 + $0x460] sm:$0xff]  ;;  %v836_v16 = vld [vmem:[#allocation8 + $0x4b0] sm:$0xff] }
 0x1be   :  { %2843 = vmatprep.subr.bf16.mxu0 %v2842_v49  ;;  %3183 = vmatprep.subr.bf16.mxu1 %v3182_v50  ;;  %v1539_v49 = vld [vmem:[#allocation8 + $0xea0] sm:$0xff]  ;;  %v3194_v50 = vpack.c.bf16 %v1542_v44, %v1540_v43  ;;  %v831_v43 = vld [vmem:[#allocation8 + $0x488] sm:$0xff]  ;;  %v833_v44 = vld [vmem:[#allocation8 + $0x498] sm:$0xff]  ;;  %v2868_v32 = vpack.c.bf16 %v828_v55, %v826_v37  ;;  %v4188_v37 = vadd.f32 %v4102_v4, %v4098_v58 }
 0x1bf   :  { %v3196_v62 = vpack.c.bf16 %v1541_v56, %v1539_v49  ;;  %v830_v56 = vld [vmem:[#allocation8 + $0x480] sm:$0xff]  ;;  %v1641_v60 = vld [vmem:[#allocation8 + $0xf68] sm:$0xff]  ;;  %v1643_v48 = vld [vmem:[#allocation8 + $0xf78] sm:$0xff] }
 0x1c0   :  { %vm371_vm13 = vcmp.gt.f32.partialorder %v4188_v37, 0.0 }
 0x1c1   :  { %2845 = vmatpush1.bf16.msra.mxu0 %v2844_v39  ;;  %3185 = vmatpush1.bf16.msra.mxu1 %v3184_v3  ;;  %v820_v39 = vld [vmem:[#allocation8 + $0x430] sm:$0xff]  ;;  %v1543_v3 = vld [vmem:[#allocation8 + $0xec0] sm:$0xff] }
 0x1c2   :  { %2847 = vmatprep.subr.bf16.mxu0 %v2846_v7  ;;  %3187 = vmatprep.subr.bf16.mxu1 %v3186_v12  ;;  %v1545_v7 = vld [vmem:[#allocation8 + $0xed0] sm:$0xff]  ;;  %v823_v12 = vld [vmem:[#allocation8 + $0x448] sm:$0xff]  ;;  %v2860_v18 = vpack.c.bf16 %v820_v39, %v818_v2  ;;  %v1639_v39 = vld [vmem:[#allocation8 + $0xf58] sm:$0xff] }
 0x1c3   :  { %v3200_v19 = vpack.c.bf16 %v1545_v7, %v1543_v3  ;;  %v2862_v20 = vpack.c.bf16 %v825_v14, %v823_v12  ;;  %v1637_v2 = vld [vmem:[#allocation8 + $0xf48] sm:$0xff]  ;;  %v3212_v7 = vpack.c.bf16 %v1634_v61, %v1632_v59  ;;  %v834_v14 = vld [vmem:[#allocation8 + $0x4a0] sm:$0xff] }
 0x1c4   :  { %799 = vmatmul.mubr.f32.vlgmr.msra.gmra.mrb[28].mxu0 %v507_v35  ;;  %v3204_v35 = vpack.c.bf16 %v1549_v22, %v1547_v0  ;;  %v838_v22 = vld [vmem:[#allocation8 + $0x4c0] sm:$0xff] }
 0x1c5   :  { %2849 = vmatpush1.bf16.msra.mxu0 %v2848_v23  ;;  %2687 = vmatprep.mubr.msk.f32.mxu0 %vm656_vm2, %v512_v42  ;;  %v827_v23 = vld [vmem:[#allocation8 + $0x468] sm:$0xff]  ;;  %v1630_v42 = vld [vmem:[#allocation8 + $0xf10] sm:$0xff]  ;;  %v846_v61 = vld [vmem:[#allocation8 + $0x500] sm:$0xff] }
 0x1c6   :  { %3189 = vmatpush1.bf16.msra.mxu1 %v3188_v27  ;;  %2851 = vmatprep.subr.bf16.mxu0 %v2850_v28  ;;  %v3682_v27 = vpop.eup %3681  ;;  %v1629_v28 = vld [vmem:[#allocation8 + $0xf08] sm:$0xff]  ;;  %v3208_v49 = vpack.c.bf16 %v1630_v42, %v1628_v40  ;;  %v844_v42 = vld [vmem:[#allocation8 + $0x4f0] sm:$0xff] }
 0x1c7   :  { %3191 = vmatprep.subr.bf16.mxu1 %v3190_v36  ;;  %v3684_v30 = vpop.eup %3683  ;;  %v2866_v36 = vpack.c.bf16 %v829_v24, %v827_v23  ;;  %v3206_v41 = vpack.c.bf16 %v1631_v29, %v1629_v28  ;;  %v840_v23 = vld [vmem:[#allocation8 + $0x4d0] sm:$0xff]  ;;  %v1640_v24 = vld [vmem:[#allocation8 + $0xf60] sm:$0xff]  ;;  %v843_v29 = vld [vmem:[#allocation8 + $0x4e8] sm:$0xff] }
 0x1c8   :  { %v2674_v26 = vadd.f32 -1.0, %v3684_v30  ;;  %v1642_v28 = vld [vmem:[#allocation8 + $0xf70] sm:$0xff]  ;;  %v845_v30 = vld [vmem:[#allocation8 + $0x4f8] sm:$0xff] }
 0x1c9   :  { %2853 = vmatpush1.bf16.msra.mxu0 %v2852_v45  ;;  %v2671_v45 = vadd.f32 -1.0, %v3682_v27  ;;  %v3218_v27 = vpack.c.bf16 %v1643_v48, %v1641_v60  ;;  %v3220_v55 = vpack.c.bf16 %v1642_v28, %v1640_v24  ;;  %v2882_v40 = vpack.c.bf16 %v845_v30, %v843_v29  ;;  %v1654_v48 = vld [vmem:[#allocation8 + $0xfd0] sm:$0xff]  ;;  %v854_v28 = vld [vmem:[#allocation8 + $0x540] sm:$0xff] }
 0x1ca   :  { %3193 = vmatpush1.bf16.msra.mxu1 %v3192_v46  ;;  %2855 = vmatprep.subr.bf16.mxu0 %v2854_v6  ;;  %v1633_v46 = vld [vmem:[#allocation8 + $0xf28] sm:$0xff]  ;;  %v1635_v6 = vld [vmem:[#allocation8 + $0xf38] sm:$0xff]  ;;  %v524_v3 = vsel %vm384_vm12, %v4168_v63, %v2674_v26  ;;  %v2876_v63 = vpack.c.bf16 %v836_v16, %v834_v14  ;;  %v856_v29 = vld [vmem:[#allocation8 + $0x550] sm:$0xff] }
 0x1cb   :  { %3195 = vmatprep.subr.bf16.mxu1 %v3194_v50  ;;  %v2870_v50 = vpack.c.bf16 %v833_v44, %v831_v43  ;;  %v3210_v34 = vpack.c.bf16 %v1635_v6, %v1633_v46  ;;  %v1644_v43 = vld [vmem:[#allocation8 + $0xf80] sm:$0xff]  ;;  %v4190_v44 = vpop.f32.mrb[20].mxu0  ;;  %v1646_v6 = vld [vmem:[#allocation8 + $0xf90] sm:$0xff]  ;;  %v847_v26 = vld [vmem:[#allocation8 + $0x508] sm:$0xff] }
 0x1cc   :  { %v4196_v4 = vpop.f32.mrb[21].mxu0  ;;  %v3224_v59 = vpack.c.bf16 %v1646_v6, %v1644_v43  ;;  %v1656_v30 = vld [vmem:[#allocation8 + $0xfe0] sm:$0xff] }
 0x1cd   :  { %2857 = vmatpush1.bf16.msra.mxu0 %v2856_v25  ;;  %v835_v25 = vld [vmem:[#allocation8 + $0x4a8] sm:$0xff]  ;;  %v858_v6 = vld [vmem:[#allocation8 + $0x560] sm:$0xff] }
 0x1ce   :  { %3197 = vmatpush1.bf16.msra.mxu1 %v3196_v62  ;;  %2859 = vmatprep.subr.bf16.mxu0 %v2858_v1  ;;  %v837_v62 = vld [vmem:[#allocation8 + $0x4b8] sm:$0xff]  ;;  %v521_v1 = vsel %vm381_vm11, %v4164_v47, %v2671_v45  ;;  %v839_v47 = vld [vmem:[#allocation8 + $0x4c8] sm:$0xff]  ;;  %v4194_v45 = vadd.f32 %v4108_v9, %v4090_v53  ;;  %v848_v9 = vld [vmem:[#allocation8 + $0x510] sm:$0xff] }
 0x1cf   :  { %3199 = vmatprep.subr.bf16.mxu1 %v3198_v5  ;;  %v2872_v5 = vpack.c.bf16 %v832_v57, %v830_v56  ;;  %v2874_v12 = vpack.c.bf16 %v837_v62, %v835_v25  ;;  %v399_v57 = vmin.f32 %v4188_v37, 0.0  ;;  %v1648_v25 = vld [vmem:[#allocation8 + $0xfa0] sm:$0xff] }
 0x1d0   :  { %v402_v62 = vmin.f32 %v4194_v45, 0.0  ;;  %vm374_vm14 = vcmp.gt.f32.partialorder %v4194_v45, 0.0 }
 0x1d1   :  { %2861 = vmatpush1.bf16.msra.mxu0 %v2860_v18  ;;  %v3214_v18 = vpack.c.bf16 %v1639_v39, %v1637_v2  ;;  %v1650_v2 = vld [vmem:[#allocation8 + $0xfb0] sm:$0xff]  ;;  %v851_v39 = vld [vmem:[#allocation8 + $0x528] sm:$0xff]  ;;  %v431_v14 = vmul.f32 1.442695, %v399_v57  ;;  %v865_v57 = vld [vmem:[#allocation8 + $0x598] sm:$0xff] }
 0x1d2   :  { %3201 = vmatpush1.bf16.msra.mxu1 %v3200_v19  ;;  %2863 = vmatprep.subr.bf16.mxu0 %v2862_v20  ;;  %v1638_v19 = vld [vmem:[#allocation8 + $0xf50] sm:$0xff]  ;;  %v841_v20 = vld [vmem:[#allocation8 + $0x4d8] sm:$0xff]  ;;  %v3228_v16 = vpack.c.bf16 %v1650_v2, %v1648_v25 }
 0x1d3   :  { %3203 = vmatprep.subr.bf16.mxu1 %v3202_v21  ;;  %v3216_v0 = vpack.c.bf16 %v1638_v19, %v1636_v17  ;;  %v2878_v21 = vpack.c.bf16 %v841_v20, %v839_v47  ;;  %v852_v19 = vld [vmem:[#allocation8 + $0x530] sm:$0xff]  ;;  %v1652_v47 = vld [vmem:[#allocation8 + $0xfc0] sm:$0xff]  ;;  %v437_v20 = vmul.f32 1.442695, %v402_v62  ;;  %3685 = vpow2.f32 %v431_v14 }
 0x1d4   :  { %v3232_v24 = vpack.c.bf16 %v1654_v48, %v1652_v47  ;;  %v864_v2 = vld [vmem:[#allocation8 + $0x590] sm:$0xff]  ;;  %v4206_v14 = vadd.f32 %v4158_v38, %v4090_v53  ;;  %v943_v48 = vld [vmem:[#allocation8 + $0x5a0] sm:$0xff] }
 0x1d5   :  { %2865 = vmatpush1.bf16.msra.mxu0 %v2864_v31  ;;  %v1645_v31 = vld [vmem:[#allocation8 + $0xf88] sm:$0xff]  ;;  %3687 = vpow2.f32 %v437_v20  ;;  %v1670_v38 = vld [vmem:[#allocation8 + $0x1050] sm:$0xff] }
 0x1d6   :  { %3205 = vmatpush1.bf16.msra.mxu1 %v3204_v35  ;;  %2867 = vmatprep.subr.bf16.mxu0 %v2866_v36  ;;  %v1647_v35 = vld [vmem:[#allocation8 + $0xf98] sm:$0xff]  ;;  %v2880_v36 = vpack.c.bf16 %v840_v23, %v838_v22  ;;  %vm386_vm0 = vcmp.gt.f32.partialorder %v4206_v14, 0.0 }
 0x1d7   :  { %3207 = vmatprep.subr.bf16.mxu1 %v3206_v41  ;;  %v842_v41 = vld [vmem:[#allocation8 + $0x4e0] sm:$0xff]  ;;  %v3222_v46 = vpack.c.bf16 %v1647_v35, %v1645_v31  ;;  %v1659_v22 = vld [vmem:[#allocation8 + $0xff8] sm:$0xff]  ;;  %v1658_v35 = vld [vmem:[#allocation8 + $0xff0] sm:$0xff] }
 0x1d8   :  { %v2884_v56 = vpack.c.bf16 %v844_v42, %v842_v41  ;;  %v1663_v41 = vld [vmem:[#allocation8 + $0x1018] sm:$0xff]  ;;  %v2896_v42 = vpack.c.bf16 %v856_v29, %v854_v28  ;;  %v3236_v43 = vpack.c.bf16 %v1658_v35, %v1656_v30  ;;  %v1673_v29 = vld [vmem:[#allocation8 + $0x1068] sm:$0xff] }
 0x1d9   :  { %1619 = vmatmul.mubr.f32.vlgmr.msra.gmra.mrb[0].mxu1 %v521_v1  ;;  %2869 = vmatpush1.bf16.msra.mxu0 %v2868_v32  ;;  %v849_v32 = vld [vmem:[#allocation8 + $0x518] sm:$0xff] }
 0x1da   :  { %3209 = vmatpush1.bf16.msra.mxu1 %v3208_v49  ;;  %2871 = vmatprep.subr.bf16.mxu0 %v2870_v50  ;;  %v1649_v49 = vld [vmem:[#allocation8 + $0xfa8] sm:$0xff]  ;;  %v1651_v50 = vld [vmem:[#allocation8 + $0xfb8] sm:$0xff] }
 0x1db   :  { %3211 = vmatprep.subr.bf16.mxu1 %v3210_v34  ;;  %2693 = vmatprep.mubr.msk.f32.mxu1 %vm656_vm2, %v524_v3  ;;  %v2886_v34 = vpack.c.bf16 %v849_v32, %v847_v26  ;;  %v3226_v1 = vpack.c.bf16 %v1651_v50, %v1649_v49  ;;  %v853_v3 = vld [vmem:[#allocation8 + $0x538] sm:$0xff]  ;;  %v860_v26 = vld [vmem:[#allocation8 + $0x570] sm:$0xff]  ;;  %v1660_v32 = vld [vmem:[#allocation8 + $0x1000] sm:$0xff] }
 0x1dc   :  { %v2890_v17 = vpack.c.bf16 %v853_v3, %v851_v39  ;;  %v1662_v50 = vld [vmem:[#allocation8 + $0x1010] sm:$0xff]  ;;  %v1664_v39 = vld [vmem:[#allocation8 + $0x1020] sm:$0xff]  ;;  %v1675_v30 = vld [vmem:[#allocation8 + $0x1078] sm:$0xff] }
 0x1dd   :  { %2873 = vmatpush1.bf16.msra.mxu0 %v2872_v5  ;;  %v1653_v5 = vld [vmem:[#allocation8 + $0xfc8] sm:$0xff]  ;;  %v3240_v25 = vpack.c.bf16 %v1662_v50, %v1660_v32  ;;  %v954_v32 = vld [vmem:[#allocation8 + $0x5f8] sm:$0xff] }
 0x1de   :  { %3213 = vmatpush1.bf16.msra.mxu1 %v3212_v7  ;;  %2875 = vmatprep.subr.bf16.mxu0 %v2874_v12  ;;  %v1655_v7 = vld [vmem:[#allocation8 + $0xfd8] sm:$0xff]  ;;  %v2888_v12 = vpack.c.bf16 %v848_v9, %v846_v61  ;;  %v2900_v61 = vpack.c.bf16 %v860_v26, %v858_v6  ;;  %v4202_v9 = vadd.f32 %v4134_v52, %v4098_v58  ;;  %v1674_v6 = vld [vmem:[#allocation8 + $0x1070] sm:$0xff]  ;;  %v952_v26 = vld [vmem:[#allocation8 + $0x5e8] sm:$0xff] }
 0x1df   :  { %3215 = vmatprep.subr.bf16.mxu1 %v3214_v18  ;;  %v850_v18 = vld [vmem:[#allocation8 + $0x520] sm:$0xff]  ;;  %v3230_v60 = vpack.c.bf16 %v1655_v7, %v1653_v5  ;;  %v1666_v5 = vld [vmem:[#allocation8 + $0x1030] sm:$0xff]  ;;  %v944_v7 = vld [vmem:[#allocation8 + $0x5a8] sm:$0xff] }
 0x1e0   :  { %v2892_v23 = vpack.c.bf16 %v852_v19, %v850_v18  ;;  %v1671_v52 = vld [vmem:[#allocation8 + $0x1058] sm:$0xff]  ;;  %v411_v47 = vmin.f32 %v4202_v9, 0.0  ;;  %v3244_v20 = vpack.c.bf16 %v1666_v5, %v1664_v39  ;;  %v956_v39 = vld [vmem:[#allocation8 + $0x608] sm:$0xff]  ;;  %vm383_vm15 = vcmp.gt.f32.partialorder %v4202_v9, 0.0 }
 0x1e1   :  { %2877 = vmatpush1.bf16.msra.mxu0 %v2876_v63  ;;  %v855_v63 = vld [vmem:[#allocation8 + $0x548] sm:$0xff]  ;;  %v1683_v5 = vld [vmem:[#allocation8 + $0x10b8] sm:$0xff] }
 0x1e2   :  { %3217 = vmatpush1.bf16.msra.mxu1 %v3216_v0  ;;  %2879 = vmatprep.subr.bf16.mxu0 %v2878_v21  ;;  %v857_v0 = vld [vmem:[#allocation8 + $0x558] sm:$0xff]  ;;  %v1657_v21 = vld [vmem:[#allocation8 + $0xfe8] sm:$0xff]  ;;  %v455_v35 = vmul.f32 1.442695, %v411_v47  ;;  %v1682_v47 = vld [vmem:[#allocation8 + $0x10b0] sm:$0xff] }
 0x1e3   :  { %3219 = vmatprep.subr.bf16.mxu1 %v3218_v27  ;;  %v2894_v27 = vpack.c.bf16 %v857_v0, %v855_v63  ;;  %v3234_v31 = vpack.c.bf16 %v1659_v22, %v1657_v21  ;;  %v945_v63 = vld [vmem:[#allocation8 + $0x5b0] sm:$0xff]  ;;  %v1668_v0 = vld [vmem:[#allocation8 + $0x1040] sm:$0xff] }
 0x1e4   :  { %3689 = vpow2.f32 %v455_v35  ;;  %v1766_v35 = vld [vmem:[#allocation8 + $0x10e8] sm:$0xff] }
 0x1e5   :  { %2881 = vmatpush1.bf16.msra.mxu0 %v2880_v36  ;;  %v859_v36 = vld [vmem:[#allocation8 + $0x568] sm:$0xff] }
 0x1e6   :  { %3221 = vmatpush1.bf16.msra.mxu1 %v3220_v55  ;;  %2883 = vmatprep.subr.bf16.mxu0 %v2882_v40  ;;  %v861_v55 = vld [vmem:[#allocation8 + $0x578] sm:$0xff]  ;;  %v1661_v40 = vld [vmem:[#allocation8 + $0x1008] sm:$0xff] }
 0x1e7   :  { %3223 = vmatprep.subr.bf16.mxu1 %v3222_v46  ;;  %v2898_v46 = vpack.c.bf16 %v861_v55, %v859_v36  ;;  %v3238_v49 = vpack.c.bf16 %v1663_v41, %v1661_v40  ;;  %v3248_v36 = vpack.c.bf16 %v1670_v38, %v1668_v0  ;;  %v947_v40 = vld [vmem:[#allocation8 + $0x5c0] sm:$0xff]  ;;  %v949_v41 = vld [vmem:[#allocation8 + $0x5d0] sm:$0xff] }
 0x1e8   :  { %v959_v38 = vld [vmem:[#allocation8 + $0x620] sm:$0xff] }
 0x1e9   :  { %2885 = vmatpush1.bf16.msra.mxu0 %v2884_v56  ;;  %v863_v56 = vld [vmem:[#allocation8 + $0x588] sm:$0xff] }
 0x1ea   :  { %3225 = vmatpush1.bf16.msra.mxu1 %v3224_v59  ;;  %2887 = vmatprep.subr.bf16.mxu0 %v2886_v34  ;;  %v1665_v59 = vld [vmem:[#allocation8 + $0x1028] sm:$0xff]  ;;  %v1667_v34 = vld [vmem:[#allocation8 + $0x1038] sm:$0xff]  ;;  %v2902_v62 = vpack.c.bf16 %v865_v57, %v863_v56 }
 0x1eb   :  { %3227 = vmatprep.subr.bf16.mxu1 %v3226_v1  ;;  %v862_v1 = vld [vmem:[#allocation8 + $0x580] sm:$0xff]  ;;  %v3242_v3 = vpack.c.bf16 %v1667_v34, %v1665_v59  ;;  %v1677_v56 = vld [vmem:[#allocation8 + $0x1088] sm:$0xff]  ;;  %v1679_v57 = vld [vmem:[#allocation8 + $0x1098] sm:$0xff]  ;;  %v2912_v59 = vpack.c.bf16 %v949_v41, %v947_v40 }
 0x1ec   :  { %v2904_v19 = vpack.c.bf16 %v864_v2, %v862_v1  ;;  %v3254_v1 = vpack.c.bf16 %v1679_v57, %v1677_v56  ;;  %v1678_v2 = vld [vmem:[#allocation8 + $0x1090] sm:$0xff]  ;;  %v1770_v57 = vld [vmem:[#allocation8 + $0x1108] sm:$0xff] }
 0x1ed   :  { %2889 = vmatpush1.bf16.msra.mxu0 %v2888_v12  ;;  %v946_v12 = vld [vmem:[#allocation8 + $0x5b8] sm:$0xff] }
 0x1ee   :  { %3229 = vmatpush1.bf16.msra.mxu1 %v3228_v16  ;;  %2891 = vmatprep.subr.bf16.mxu0 %v2890_v17  ;;  %v3686_v16 = vpop.eup %3685  ;;  %v1669_v17 = vld [vmem:[#allocation8 + $0x1048] sm:$0xff] }
 0x1ef   :  { %3231 = vmatprep.subr.bf16.mxu1 %v3230_v60  ;;  %v3688_v18 = vpop.eup %3687  ;;  %v2906_v60 = vpack.c.bf16 %v946_v12, %v944_v7  ;;  %v2661_v21 = vadd.f32 -1.0, %v3686_v16  ;;  %v3246_v22 = vpack.c.bf16 %v1671_v52, %v1669_v17  ;;  %v955_v17 = vld [vmem:[#allocation8 + $0x600] sm:$0xff]  ;;  %v957_v52 = vld [vmem:[#allocation8 + $0x610] sm:$0xff] }
 0x1f0   :  { %v2664_v28 = vadd.f32 -1.0, %v3688_v18  ;;  %v1680_v18 = vld [vmem:[#allocation8 + $0x10a0] sm:$0xff]  ;;  %v2920_v0 = vpack.c.bf16 %v957_v52, %v955_v17 }
 0x1f1   :  { %2893 = vmatpush1.bf16.msra.mxu0 %v2892_v23  ;;  %v948_v23 = vld [vmem:[#allocation8 + $0x5c8] sm:$0xff] }
 0x1f2   :  { %3233 = vmatpush1.bf16.msra.mxu1 %v3232_v24  ;;  %2895 = vmatprep.subr.bf16.mxu0 %v2894_v27  ;;  %v950_v24 = vld [vmem:[#allocation8 + $0x5d8] sm:$0xff]  ;;  %v414_v27 = vmin.f32 %v4206_v14, 0.0  ;;  %v514_v50 = vsel %vm374_vm14, %v4194_v45, %v2664_v28  ;;  %v1681_v45 = vld [vmem:[#allocation8 + $0x10a8] sm:$0xff]  ;;  %v1686_v28 = vld [vmem:[#allocation8 + $0x10d0] sm:$0xff] }
 0x1f3   :  { %3235 = vmatprep.subr.bf16.mxu1 %v3234_v31  ;;  %v2908_v31 = vpack.c.bf16 %v945_v63, %v943_v48  ;;  %v2910_v55 = vpack.c.bf16 %v950_v24, %v948_v23  ;;  %v1685_v48 = vld [vmem:[#allocation8 + $0x10c8] sm:$0xff]  ;;  %v1687_v63 = vld [vmem:[#allocation8 + $0x10d8] sm:$0xff]  ;;  %v961_v23 = vld [vmem:[#allocation8 + $0x630] sm:$0xff] }
 0x1f4   :  { %v1684_v24 = vld [vmem:[#allocation8 + $0x10c0] sm:$0xff]  ;;  %v2924_v40 = vpack.c.bf16 %v961_v23, %v959_v38 }
 0x1f5   :  { %2897 = vmatpush1.bf16.msra.mxu0 %v2896_v42  ;;  %v1672_v42 = vld [vmem:[#allocation8 + $0x1060] sm:$0xff]  ;;  %v3264_v41 = vpack.c.bf16 %v1686_v28, %v1684_v24 }
 0x1f6   :  { %3237 = vmatpush1.bf16.msra.mxu1 %v3236_v43  ;;  %2899 = vmatprep.subr.bf16.mxu0 %v2898_v46  ;;  %v511_v43 = vsel %vm371_vm13, %v4188_v37, %v2661_v21  ;;  %v3250_v46 = vpack.c.bf16 %v1675_v30, %v1673_v29  ;;  %v3252_v34 = vpack.c.bf16 %v1674_v6, %v1672_v42  ;;  %v964_v29 = vld [vmem:[#allocation8 + $0x648] sm:$0xff]  ;;  %v966_v30 = vld [vmem:[#allocation8 + $0x658] sm:$0xff]  ;;  %v1765_v6 = vld [vmem:[#allocation8 + $0x10e0] sm:$0xff] }
 0x1f7   :  { %3239 = vmatprep.subr.bf16.mxu1 %v3238_v49  ;;  %v461_v49 = vmul.f32 1.442695, %v414_v27  ;;  %v2914_v37 = vpack.c.bf16 %v954_v32, %v952_v26  ;;  %v3260_v21 = vpack.c.bf16 %v1682_v47, %v1680_v18  ;;  %v3262_v27 = vpack.c.bf16 %v1687_v63, %v1685_v48  ;;  %v1767_v32 = vld [vmem:[#allocation8 + $0x10f0] sm:$0xff]  ;;  %v971_v47 = vld [vmem:[#allocation8 + $0x680] sm:$0xff] }
 0x1f8   :  { %v2926_v42 = vpack.c.bf16 %v966_v30, %v964_v29  ;;  %v1775_v63 = vld [vmem:[#allocation8 + $0x1130] sm:$0xff]  ;;  %v975_v24 = vld [vmem:[#allocation8 + $0x6a0] sm:$0xff] }
 0x1f9   :  { %2901 = vmatpush1.bf16.msra.mxu0 %v2900_v61  ;;  %v951_v61 = vld [vmem:[#allocation8 + $0x5e0] sm:$0xff]  ;;  %3691 = vpow2.f32 %v461_v49  ;;  %v968_v49 = vld [vmem:[#allocation8 + $0x668] sm:$0xff]  ;;  %v1779_v30 = vld [vmem:[#allocation8 + $0x1150] sm:$0xff] }
 0x1fa   :  { %3241 = vmatpush1.bf16.msra.mxu1 %v3240_v25  ;;  %2903 = vmatprep.subr.bf16.mxu0 %v2902_v62  ;;  %v953_v25 = vld [vmem:[#allocation8 + $0x5f0] sm:$0xff]  ;;  %v1676_v62 = vld [vmem:[#allocation8 + $0x1080] sm:$0xff] }
 0x1fb   :  { %3243 = vmatprep.subr.bf16.mxu1 %v3242_v3  ;;  %v958_v3 = vld [vmem:[#allocation8 + $0x618] sm:$0xff]  ;;  %v2916_v7 = vpack.c.bf16 %v953_v25, %v951_v61  ;;  %v3256_v12 = vpack.c.bf16 %v1678_v2, %v1676_v62  ;;  %v3268_v61 = vpack.c.bf16 %v1767_v32, %v1765_v6  ;;  %v967_v62 = vld [vmem:[#allocation8 + $0x660] sm:$0xff]  ;;  %v981_v6 = vld [vmem:[#allocation8 + $0x6d0] sm:$0xff]  ;;  %v4228_v32 = vpop.f32.mrb[22].mxu0 }
 0x1fc   :  { %v2918_v16 = vpack.c.bf16 %v958_v3, %v956_v39  ;;  %v1769_v2 = vld [vmem:[#allocation8 + $0x1100] sm:$0xff]  ;;  %v1771_v3 = vld [vmem:[#allocation8 + $0x1110] sm:$0xff] }
 0x1fd   :  { %2905 = vmatpush1.bf16.msra.mxu0 %v2904_v19  ;;  %v3258_v19 = vpack.c.bf16 %v1683_v5, %v1681_v45  ;;  %v972_v45 = vld [vmem:[#allocation8 + $0x688] sm:$0xff]  ;;  %v974_v5 = vld [vmem:[#allocation8 + $0x698] sm:$0xff]  ;;  %v3272_v18 = vpack.c.bf16 %v1771_v3, %v1769_v2  ;;  %v1777_v28 = vld [vmem:[#allocation8 + $0x1140] sm:$0xff] }
 0x1fe   :  { %3245 = vmatpush1.bf16.msra.mxu1 %v3244_v20  ;;  %2907 = vmatprep.subr.bf16.mxu0 %v2906_v60  ;;  %v960_v20 = vld [vmem:[#allocation8 + $0x628] sm:$0xff]  ;;  %v962_v60 = vld [vmem:[#allocation8 + $0x638] sm:$0xff]  ;;  %v983_v2 = vld [vmem:[#allocation8 + $0x6e0] sm:$0xff] }
 0x1ff   :  { %3247 = vmatprep.subr.bf16.mxu1 %v3246_v22  ;;  %v2922_v22 = vpack.c.bf16 %v962_v60, %v960_v20  ;;  %v973_v20 = vld [vmem:[#allocation8 + $0x690] sm:$0xff]  ;;  %v1773_v60 = vld [vmem:[#allocation8 + $0x1120] sm:$0xff] }
 0x200   :  { %934 = vmatmul.mubr.f32.vlgmr.msra.gmra.mrb[28].mxu0 %v511_v43  ;;  %v963_v43 = vld [vmem:[#allocation8 + $0x640] sm:$0xff]  ;;  %v3276_v38 = vpack.c.bf16 %v1775_v63, %v1773_v60  ;;  %v989_v60 = vld [vmem:[#allocation8 + $0x710] sm:$0xff] }
 0x201   :  { %2909 = vmatpush1.bf16.msra.mxu0 %v2908_v31  ;;  %2688 = vmatprep.mubr.msk.f32.mxu0 %vm656_vm2, %v514_v50  ;;  %v3690_v31 = vpop.eup %3689  ;;  %v970_v50 = vld [vmem:[#allocation8 + $0x678] sm:$0xff] }
 0x202   :  { %3249 = vmatpush1.bf16.msra.mxu1 %v3248_v36  ;;  %2911 = vmatprep.subr.bf16.mxu0 %v2910_v55  ;;  %v1768_v36 = vld [vmem:[#allocation8 + $0x10f8] sm:$0xff]  ;;  %v2673_v56 = vadd.f32 -1.0, %v3690_v31  ;;  %v2930_v25 = vpack.c.bf16 %v970_v50, %v968_v49  ;;  %v980_v31 = vld [vmem:[#allocation8 + $0x6c8] sm:$0xff]  ;;  %v4232_v49 = vadd.f32 %v4112_v11, %v4090_v53  ;;  %v985_v11 = vld [vmem:[#allocation8 + $0x6f0] sm:$0xff] }
 0x203   :  { %3251 = vmatprep.subr.bf16.mxu1 %v3250_v46  ;;  %v3692_v55 = vpop.eup %3691  ;;  %v965_v46 = vld [vmem:[#allocation8 + $0x650] sm:$0xff]  ;;  %v3266_v26 = vpack.c.bf16 %v1768_v36, %v1766_v35  ;;  %v982_v35 = vld [vmem:[#allocation8 + $0x6d8] sm:$0xff]  ;;  %v1782_v36 = vld [vmem:[#allocation8 + $0x1168] sm:$0xff] }
 0x204   :  { %v404_v3 = vmin.f32 %v4232_v49, 0.0  ;;  %vm376_vm3 = vcmp.gt.f32.partialorder %v4232_v49, 0.0 }
 0x205   :  { %2913 = vmatpush1.bf16.msra.mxu0 %v2912_v59  ;;  %v1772_v59 = vld [vmem:[#allocation8 + $0x1118] sm:$0xff] }
 0x206   :  { %3253 = vmatpush1.bf16.msra.mxu1 %v3252_v34  ;;  %2915 = vmatprep.subr.bf16.mxu0 %v2914_v37  ;;  %v2676_v34 = vadd.f32 -1.0, %v3692_v55  ;;  %v2928_v37 = vpack.c.bf16 %v965_v46, %v963_v43  ;;  %v3270_v39 = vpack.c.bf16 %v1772_v59, %v1770_v57  ;;  %v1784_v55 = vld [vmem:[#allocation8 + $0x1178] sm:$0xff]  ;;  %v2942_v43 = vpack.c.bf16 %v982_v35, %v980_v31  ;;  %v979_v46 = vld [vmem:[#allocation8 + $0x6c0] sm:$0xff]  ;;  %v984_v57 = vld [vmem:[#allocation8 + $0x6e8] sm:$0xff] }
 0x207   :  { %3255 = vmatprep.subr.bf16.mxu1 %v3254_v1  ;;  %v969_v1 = vld [vmem:[#allocation8 + $0x670] sm:$0xff]  ;;  %v3282_v50 = vpack.c.bf16 %v1784_v55, %v1782_v36  ;;  %v986_v59 = vld [vmem:[#allocation8 + $0x6f8] sm:$0xff]  ;;  %v441_v63 = vmul.f32 1.442695, %v404_v3  ;;  %v996_v36 = vld [vmem:[#allocation8 + $0x748] sm:$0xff] }
 0x208   :  { %v526_v17 = vsel %vm386_vm0, %v4206_v14, %v2676_v34  ;;  %v2932_v52 = vpack.c.bf16 %v969_v1, %v967_v62  ;;  %v2936_v14 = vpack.c.bf16 %v973_v20, %v971_v47  ;;  %v1786_v34 = vld [vmem:[#allocation8 + $0x1188] sm:$0xff]  ;;  %v2946_v1 = vpack.c.bf16 %v986_v59, %v984_v57  ;;  %v987_v20 = vld [vmem:[#allocation8 + $0x700] sm:$0xff]  ;;  %v1795_v35 = vld [vmem:[#allocation8 + $0x11d0] sm:$0xff] }
 0x209   :  { %2917 = vmatpush1.bf16.msra.mxu0 %v2916_v7  ;;  %v523_v7 = vsel %vm383_vm15, %v4202_v9, %v2673_v56  ;;  %v976_v9 = vld [vmem:[#allocation8 + $0x6a8] sm:$0xff]  ;;  %v1783_v56 = vld [vmem:[#allocation8 + $0x1170] sm:$0xff]  ;;  %v998_v55 = vld [vmem:[#allocation8 + $0x758] sm:$0xff] }
 0x20a   :  { %3257 = vmatpush1.bf16.msra.mxu1 %v3256_v12  ;;  %2919 = vmatprep.subr.bf16.mxu0 %v2918_v16  ;;  %v1774_v12 = vld [vmem:[#allocation8 + $0x1128] sm:$0xff]  ;;  %v1776_v16 = vld [vmem:[#allocation8 + $0x1138] sm:$0xff]  ;;  %v1799_v59 = vld [vmem:[#allocation8 + $0x11f0] sm:$0xff] }
 0x20b   :  { %3259 = vmatprep.subr.bf16.mxu1 %v3258_v19  ;;  %v2934_v19 = vpack.c.bf16 %v974_v5, %v972_v45  ;;  %v3274_v48 = vpack.c.bf16 %v1776_v16, %v1774_v12  ;;  %v1787_v5 = vld [vmem:[#allocation8 + $0x1190] sm:$0xff]  ;;  %v990_v12 = vld [vmem:[#allocation8 + $0x718] sm:$0xff]  ;;  %v1790_v16 = vld [vmem:[#allocation8 + $0x11a8] sm:$0xff] }
 0x20c   :  { %v1001_v3 = vld [vmem:[#allocation8 + $0x770] sm:$0xff] }
 0x20d   :  { %2921 = vmatpush1.bf16.msra.mxu0 %v2920_v0  ;;  %v978_v0 = vld [vmem:[#allocation8 + $0x6b8] sm:$0xff] }
 0x20e   :  { %3261 = vmatpush1.bf16.msra.mxu1 %v3260_v21  ;;  %2923 = vmatprep.subr.bf16.mxu0 %v2922_v22  ;;  %v1778_v21 = vld [vmem:[#allocation8 + $0x1148] sm:$0xff]  ;;  %v1780_v22 = vld [vmem:[#allocation8 + $0x1158] sm:$0xff]  ;;  %v2938_v23 = vpack.c.bf16 %v978_v0, %v976_v9  ;;  %v1791_v0 = vld [vmem:[#allocation8 + $0x11b0] sm:$0xff] }
 0x20f   :  { %3263 = vmatprep.subr.bf16.mxu1 %v3262_v27  ;;  %v977_v27 = vld [vmem:[#allocation8 + $0x6b0] sm:$0xff]  ;;  %v3278_v29 = vpack.c.bf16 %v1780_v22, %v1778_v21  ;;  %v992_v21 = vld [vmem:[#allocation8 + $0x728] sm:$0xff]  ;;  %v994_v22 = vld [vmem:[#allocation8 + $0x738] sm:$0xff] }
 0x211   :  { %2925 = vmatpush1.bf16.msra.mxu0 %v2924_v40  ;;  %v2940_v40 = vpack.c.bf16 %v977_v27, %v975_v24  ;;  %v2954_v27 = vpack.c.bf16 %v994_v22, %v992_v21 }
 0x212   :  { %3265 = vmatpush1.bf16.msra.mxu1 %v3264_v41  ;;  %2927 = vmatprep.subr.bf16.mxu0 %v2926_v42  ;;  %v4226_v41 = vadd.f32 %v4106_v8, %v4098_v58  ;;  %v3280_v42 = vpack.c.bf16 %v1779_v30, %v1777_v28  ;;  %v4234_v8 = vpop.f32.mrb[23].mxu0  ;;  %v991_v28 = vld [vmem:[#allocation8 + $0x720] sm:$0xff] }
 0x213   :  { %3267 = vmatprep.subr.bf16.mxu1 %v3266_v26  ;;  %v1781_v26 = vld [vmem:[#allocation8 + $0x1160] sm:$0xff] }
 0x214   :  { %v3284_v62 = vpack.c.bf16 %v1783_v56, %v1781_v26  ;;  %v1793_v30 = vld [vmem:[#allocation8 + $0x11c0] sm:$0xff]  ;;  %vm373_vm1 = vcmp.gt.f32.partialorder %v4226_v41, 0.0 }
 0x215   :  { %1756 = vmatmul.mubr.f32.vlgmr.msra.gmra.mrb[0].mxu1 %v523_v7  ;;  %2929 = vmatpush1.bf16.msra.mxu0 %v2928_v37  ;;  %v1788_v37 = vld [vmem:[#allocation8 + $0x1198] sm:$0xff]  ;;  %v988_v7 = vld [vmem:[#allocation8 + $0x708] sm:$0xff]  ;;  %v995_v26 = vld [vmem:[#allocation8 + $0x740] sm:$0xff] }
 0x216   :  { %3269 = vmatpush1.bf16.msra.mxu1 %v3268_v61  ;;  %2931 = vmatprep.subr.bf16.mxu0 %v2930_v25  ;;  %v2944_v61 = vpack.c.bf16 %v981_v6, %v979_v46  ;;  %v401_v25 = vmin.f32 %v4226_v41, 0.0  ;;  %v3286_v45 = vpack.c.bf16 %v1788_v37, %v1786_v34  ;;  %v2950_v47 = vpack.c.bf16 %v990_v12, %v988_v7  ;;  %v1797_v56 = vld [vmem:[#allocation8 + $0x11e0] sm:$0xff]  ;;  %v1000_v34 = vld [vmem:[#allocation8 + $0x768] sm:$0xff]  ;;  %v1002_v37 = vld [vmem:[#allocation8 + $0x778] sm:$0xff] }
 0x217   :  { %3271 = vmatprep.subr.bf16.mxu1 %v3270_v39  ;;  %2694 = vmatprep.mubr.msk.f32.mxu1 %vm656_vm2, %v526_v17  ;;  %v1785_v39 = vld [vmem:[#allocation8 + $0x1180] sm:$0xff]  ;;  %v1792_v17 = vld [vmem:[#allocation8 + $0x11b8] sm:$0xff]  ;;  %v3296_v46 = vpack.c.bf16 %v1795_v35, %v1793_v30  ;;  %v2958_v6 = vpack.c.bf16 %v998_v55, %v996_v36  ;;  %v1803_v7 = vld [vmem:[#allocation8 + $0x1210] sm:$0xff] }
 0x218   :  { %v3290_v9 = vpack.c.bf16 %v1792_v17, %v1790_v16  ;;  %v1081_v12 = vld [vmem:[#allocation8 + $0x788] sm:$0xff]  ;;  %v1083_v16 = vld [vmem:[#allocation8 + $0x798] sm:$0xff]  ;;  %v4244_v17 = vadd.f32 %v4196_v4, %v4090_v53  ;;  %v1807_v4 = vld [vmem:[#allocation8 + $0x1230] sm:$0xff] }
 0x219   :  { %2933 = vmatpush1.bf16.msra.mxu0 %v2932_v52  ;;  %v2948_v52 = vpack.c.bf16 %v985_v11, %v983_v2  ;;  %v3300_v2 = vpack.c.bf16 %v1799_v59, %v1797_v56  ;;  %v2962_v11 = vpack.c.bf16 %v1002_v37, %v1000_v34  ;;  %v1084_v36 = vld [vmem:[#allocation8 + $0x7a0] sm:$0xff]  ;;  %v1086_v55 = vld [vmem:[#allocation8 + $0x7b0] sm:$0xff]  ;;  %v1816_v59 = vld [vmem:[#allocation8 + $0x1278] sm:$0xff] }
 0x21a   :  { %3273 = vmatpush1.bf16.msra.mxu1 %v3272_v18  ;;  %2935 = vmatprep.subr.bf16.mxu0 %v2934_v19  ;;  %v435_v18 = vmul.f32 1.442695, %v401_v25  ;;  %v3288_v19 = vpack.c.bf16 %v1787_v5, %v1785_v39  ;;  %v1804_v25 = vld [vmem:[#allocation8 + $0x1218] sm:$0xff]  ;;  %v999_v39 = vld [vmem:[#allocation8 + $0x760] sm:$0xff]  ;;  %v2972_v34 = vpack.c.bf16 %v1086_v55, %v1084_v36  ;;  %vm388_vm5 = vcmp.gt.f32.partialorder %v4244_v17, 0.0 }
 0x21b   :  { %3275 = vmatprep.subr.bf16.mxu1 %v3274_v48  ;;  %v1789_v48 = vld [vmem:[#allocation8 + $0x11a0] sm:$0xff] }
 0x21c   :  { %3693 = vpow2.f32 %v435_v18  ;;  %v3292_v24 = vpack.c.bf16 %v1791_v0, %v1789_v48  ;;  %v1806_v18 = vld [vmem:[#allocation8 + $0x1228] sm:$0xff]  ;;  %v2966_v48 = vpack.c.bf16 %v1083_v16, %v1081_v12  ;;  %v1805_v0 = vld [vmem:[#allocation8 + $0x1220] sm:$0xff] }
 0x21d   :  { %2937 = vmatpush1.bf16.msra.mxu0 %v2936_v14  ;;  %v1794_v14 = vld [vmem:[#allocation8 + $0x11c8] sm:$0xff]  ;;  %3695 = vpow2.f32 %v441_v63  ;;  %v1080_v63 = vld [vmem:[#allocation8 + $0x780] sm:$0xff] }
 0x21e   :  { %3277 = vmatpush1.bf16.msra.mxu1 %v3276_v38  ;;  %2939 = vmatprep.subr.bf16.mxu0 %v2938_v23  ;;  %v1796_v38 = vld [vmem:[#allocation8 + $0x11d8] sm:$0xff]  ;;  %v2952_v23 = vpack.c.bf16 %v989_v60, %v987_v20  ;;  %v1092_v16 = vld [vmem:[#allocation8 + $0x7e0] sm:$0xff] }
 0x21f   :  { %3279 = vmatprep.subr.bf16.mxu1 %v3278_v29  ;;  %v993_v29 = vld [vmem:[#allocation8 + $0x730] sm:$0xff]  ;;  %v3294_v31 = vpack.c.bf16 %v1796_v38, %v1794_v14  ;;  %v1085_v14 = vld [vmem:[#allocation8 + $0x7a8] sm:$0xff]  ;;  %v1087_v38 = vld [vmem:[#allocation8 + $0x7b8] sm:$0xff] }
 0x220   :  { %v2970_v35 = vpack.c.bf16 %v1087_v38, %v1085_v14  ;;  %v1823_v38 = vld [vmem:[#allocation8 + $0x12b0] sm:$0xff]  ;;  %v1100_v55 = vld [vmem:[#allocation8 + $0x820] sm:$0xff] }
 0x221   :  { %2941 = vmatpush1.bf16.msra.mxu0 %v2940_v40  ;;  %v1798_v40 = vld [vmem:[#allocation8 + $0x11e8] sm:$0xff] }
 0x222   :  { %3281 = vmatpush1.bf16.msra.mxu1 %v3280_v42  ;;  %2943 = vmatprep.subr.bf16.mxu0 %v2942_v43  ;;  %v1800_v42 = vld [vmem:[#allocation8 + $0x11f8] sm:$0xff]  ;;  %v2956_v43 = vpack.c.bf16 %v993_v29, %v991_v28 }
 0x223   :  { %3283 = vmatprep.subr.bf16.mxu1 %v3282_v50  ;;  %v997_v50 = vld [vmem:[#allocation8 + $0x750] sm:$0xff]  ;;  %v3298_v57 = vpack.c.bf16 %v1800_v42, %v1798_v40  ;;  %v1812_v28 = vld [vmem:[#allocation8 + $0x1258] sm:$0xff]  ;;  %v1809_v40 = vld [vmem:[#allocation8 + $0x1240] sm:$0xff] }
 0x225   :  { %2945 = vmatpush1.bf16.msra.mxu0 %v2944_v61  ;;  %v1802_v61 = vld [vmem:[#allocation8 + $0x1208] sm:$0xff] }
 0x226   :  { %3285 = vmatpush1.bf16.msra.mxu1 %v3284_v62  ;;  %2947 = vmatprep.subr.bf16.mxu0 %v2946_v1  ;;  %v2960_v62 = vpack.c.bf16 %v997_v50, %v995_v26  ;;  %v4240_v1 = vadd.f32 %v4152_v33, %v4098_v58  ;;  %v3302_v5 = vpack.c.bf16 %v1804_v25, %v1802_v61  ;;  %v1808_v33 = vld [vmem:[#allocation8 + $0x1238] sm:$0xff]  ;;  %v1088_v61 = vld [vmem:[#allocation8 + $0x7c0] sm:$0xff]  ;;  %v1090_v25 = vld [vmem:[#allocation8 + $0x7d0] sm:$0xff] }
 0x227   :  { %3287 = vmatprep.subr.bf16.mxu1 %v3286_v45  ;;  %v1801_v45 = vld [vmem:[#allocation8 + $0x1200] sm:$0xff]  ;;  %v3306_v22 = vpack.c.bf16 %v1808_v33, %v1806_v18  ;;  %v1091_v26 = vld [vmem:[#allocation8 + $0x7d8] sm:$0xff] }
 0x228   :  { %v413_v20 = vmin.f32 %v4240_v1, 0.0  ;;  %v3304_v60 = vpack.c.bf16 %v1803_v7, %v1801_v45  ;;  %v1820_v45 = vld [vmem:[#allocation8 + $0x1298] sm:$0xff]  ;;  %v1817_v18 = vld [vmem:[#allocation8 + $0x1280] sm:$0xff]  ;;  %vm385_vm4 = vcmp.gt.f32.partialorder %v4240_v1, 0.0 }
 0x229   :  { %2949 = vmatpush1.bf16.msra.mxu0 %v2948_v52  ;;  %v3694_v52 = vpop.eup %3693 }
 0x22a   :  { %3289 = vmatpush1.bf16.msra.mxu1 %v3288_v19  ;;  %2951 = vmatprep.subr.bf16.mxu0 %v2950_v47  ;;  %v3696_v19 = vpop.eup %3695  ;;  %v2964_v47 = vpack.c.bf16 %v1001_v3, %v999_v39  ;;  %v2663_v21 = vadd.f32 -1.0, %v3694_v52  ;;  %v459_v30 = vmul.f32 1.442695, %v413_v20  ;;  %v1093_v39 = vld [vmem:[#allocation8 + $0x7e8] sm:$0xff]  ;;  %v1095_v3 = vld [vmem:[#allocation8 + $0x7f8] sm:$0xff]  ;;  %v1094_v52 = vld [vmem:[#allocation8 + $0x7f0] sm:$0xff] }
 0x22b   :  { %3291 = vmatprep.subr.bf16.mxu1 %v3290_v9  ;;  %v1082_v9 = vld [vmem:[#allocation8 + $0x790] sm:$0xff]  ;;  %v2978_v12 = vpack.c.bf16 %v1095_v3, %v1093_v39  ;;  %v1099_v20 = vld [vmem:[#allocation8 + $0x818] sm:$0xff]  ;;  %v1109_v3 = vld [vmem:[#allocation8 + $0x868] sm:$0xff] }
 0x22c   :  { %v2968_v29 = vpack.c.bf16 %v1082_v9, %v1080_v63  ;;  %v513_v42 = vsel %vm373_vm1, %v4226_v41, %v2663_v21  ;;  %3697 = vpow2.f32 %v459_v30  ;;  %v2980_v63 = vpack.c.bf16 %v1094_v52, %v1092_v16  ;;  %v1096_v21 = vld [vmem:[#allocation8 + $0x800] sm:$0xff]  ;;  %v1908_v39 = vld [vmem:[#allocation8 + $0x12f0] sm:$0xff] }
 0x22d   :  { %2953 = vmatpush1.bf16.msra.mxu0 %v2952_v23  ;;  %v416_v23 = vmin.f32 %v4244_v17, 0.0 }
 0x22e   :  { %3293 = vmatpush1.bf16.msra.mxu1 %v3292_v24  ;;  %2955 = vmatprep.subr.bf16.mxu0 %v2954_v27  ;;  %v2666_v24 = vadd.f32 -1.0, %v3696_v19  ;;  %v1810_v27 = vld [vmem:[#allocation8 + $0x1248] sm:$0xff]  ;;  %v1819_v19 = vld [vmem:[#allocation8 + $0x1290] sm:$0xff] }
 0x22f   :  { %3295 = vmatprep.subr.bf16.mxu1 %v3294_v31  ;;  %v3308_v31 = vpack.c.bf16 %v1807_v4, %v1805_v0  ;;  %v465_v50 = vmul.f32 1.442695, %v416_v23  ;;  %v3320_v9 = vpack.c.bf16 %v1819_v19, %v1817_v18  ;;  %v1821_v4 = vld [vmem:[#allocation8 + $0x12a0] sm:$0xff]  ;;  %v1101_v23 = vld [vmem:[#allocation8 + $0x828] sm:$0xff] }
 0x230   :  { %v516_v56 = vsel %vm376_vm3, %v4232_v49, %v2666_v24  ;;  %v1818_v49 = vld [vmem:[#allocation8 + $0x1288] sm:$0xff]  ;;  %v1103_v24 = vld [vmem:[#allocation8 + $0x838] sm:$0xff]  ;;  %v1108_v19 = vld [vmem:[#allocation8 + $0x860] sm:$0xff] }
 0x231   :  { %2957 = vmatpush1.bf16.msra.mxu0 %v2956_v43  ;;  %v3310_v43 = vpack.c.bf16 %v1812_v28, %v1810_v27  ;;  %3699 = vpow2.f32 %v465_v50  ;;  %v3318_v33 = vpack.c.bf16 %v1820_v45, %v1818_v49  ;;  %v1903_v28 = vld [vmem:[#allocation8 + $0x12c8] sm:$0xff]  ;;  %v2986_v36 = vpack.c.bf16 %v1103_v24, %v1101_v23  ;;  %v1111_v49 = vld [vmem:[#allocation8 + $0x878] sm:$0xff]  ;;  %v1114_v23 = vld [vmem:[#allocation8 + $0x890] sm:$0xff] }
 0x232   :  { %3297 = vmatpush1.bf16.msra.mxu1 %v3296_v46  ;;  %2959 = vmatprep.subr.bf16.mxu0 %v2958_v6  ;;  %v1811_v46 = vld [vmem:[#allocation8 + $0x1250] sm:$0xff]  ;;  %v1089_v6 = vld [vmem:[#allocation8 + $0x7c8] sm:$0xff]  ;;  %v1914_v24 = vld [vmem:[#allocation8 + $0x1320] sm:$0xff] }
 0x233   :  { %3299 = vmatprep.subr.bf16.mxu1 %v3298_v57  ;;  %v1814_v57 = vld [vmem:[#allocation8 + $0x1268] sm:$0xff]  ;;  %v3312_v37 = vpack.c.bf16 %v1811_v46, %v1809_v40  ;;  %v2974_v41 = vpack.c.bf16 %v1091_v26, %v1089_v6  ;;  %v1102_v40 = vld [vmem:[#allocation8 + $0x830] sm:$0xff]  ;;  %v1107_v26 = vld [vmem:[#allocation8 + $0x858] sm:$0xff] }
 0x234   :  { %v1904_v46 = vld [vmem:[#allocation8 + $0x12d0] sm:$0xff]  ;;  %v1105_v6 = vld [vmem:[#allocation8 + $0x848] sm:$0xff] }
 0x235   :  { %2961 = vmatpush1.bf16.msra.mxu0 %v2960_v62  ;;  %v1813_v62 = vld [vmem:[#allocation8 + $0x1260] sm:$0xff] }
 0x236   :  { %3301 = vmatpush1.bf16.msra.mxu1 %v3300_v2  ;;  %2963 = vmatprep.subr.bf16.mxu0 %v2962_v11  ;;  %v3314_v2 = vpack.c.bf16 %v1816_v59, %v1814_v57  ;;  %v1815_v11 = vld [vmem:[#allocation8 + $0x1270] sm:$0xff]  ;;  %v3698_v27 = vpop.eup %3697  ;;  %v1909_v57 = vld [vmem:[#allocation8 + $0x12f8] sm:$0xff] }
 0x237   :  { %3303 = vmatprep.subr.bf16.mxu1 %v3302_v5  ;;  %v2976_v5 = vpack.c.bf16 %v1090_v25, %v1088_v61  ;;  %v3316_v7 = vpack.c.bf16 %v1815_v11, %v1813_v62  ;;  %v2675_v50 = vadd.f32 -1.0, %v3698_v27  ;;  %v1104_v61 = vld [vmem:[#allocation8 + $0x840] sm:$0xff]  ;;  %v1106_v25 = vld [vmem:[#allocation8 + $0x850] sm:$0xff] }
 0x238   :  { %v1906_v62 = vld [vmem:[#allocation8 + $0x12e0] sm:$0xff]  ;;  %v2992_v52 = vpack.c.bf16 %v1106_v25, %v1104_v61 }
 0x239   :  { %2965 = vmatpush1.bf16.msra.mxu0 %v2964_v47  ;;  %v1097_v47 = vld [vmem:[#allocation8 + $0x808] sm:$0xff]  ;;  %v3332_v18 = vpack.c.bf16 %v1908_v39, %v1906_v62  ;;  %v1120_v62 = vld [vmem:[#allocation8 + $0x8c0] sm:$0xff] }
 0x23a   :  { %3305 = vmatpush1.bf16.msra.mxu1 %v3304_v60  ;;  %2967 = vmatprep.subr.bf16.mxu0 %v2966_v48  ;;  %v1822_v60 = vld [vmem:[#allocation8 + $0x12a8] sm:$0xff]  ;;  %v1824_v48 = vld [vmem:[#allocation8 + $0x12b8] sm:$0xff]  ;;  %v2982_v0 = vpack.c.bf16 %v1099_v20, %v1097_v47  ;;  %v1110_v47 = vld [vmem:[#allocation8 + $0x870] sm:$0xff] }
 0x23b   :  { %3307 = vmatprep.subr.bf16.mxu1 %v3306_v22  ;;  %v1098_v22 = vld [vmem:[#allocation8 + $0x810] sm:$0xff]  ;;  %v3322_v14 = vpack.c.bf16 %v1824_v48, %v1822_v60  ;;  %v3700_v30 = vpop.eup %3699  ;;  %v1910_v20 = vld [vmem:[#allocation8 + $0x1300] sm:$0xff] }
 0x23c   :  { %1071 = vmatmul.mubr.f32.vlgmr.msra.gmra.mrb[28].mxu0 %v513_v42  ;;  %v1902_v42 = vld [vmem:[#allocation8 + $0x12c0] sm:$0xff]  ;;  %v2678_v59 = vadd.f32 -1.0, %v3700_v30  ;;  %v1912_v48 = vld [vmem:[#allocation8 + $0x1310] sm:$0xff]  ;;  %v1119_v30 = vld [vmem:[#allocation8 + $0x8b8] sm:$0xff] }
 0x23d   :  { %2969 = vmatpush1.bf16.msra.mxu0 %v2968_v29  ;;  %2689 = vmatprep.mubr.msk.f32.mxu0 %vm656_vm2, %v516_v56  ;;  %v1905_v29 = vld [vmem:[#allocation8 + $0x12d8] sm:$0xff]  ;;  %v1907_v56 = vld [vmem:[#allocation8 + $0x12e8] sm:$0xff]  ;;  %v1922_v39 = vld [vmem:[#allocation8 + $0x1360] sm:$0xff] }
 0x23e   :  { %3309 = vmatpush1.bf16.msra.mxu1 %v3308_v31  ;;  %2971 = vmatprep.subr.bf16.mxu0 %v2970_v35  ;;  %v2984_v31 = vpack.c.bf16 %v1098_v22, %v1096_v21  ;;  %v3324_v35 = vpack.c.bf16 %v1823_v38, %v1821_v4  ;;  %v3330_v11 = vpack.c.bf16 %v1909_v57, %v1907_v56  ;;  %v1917_v21 = vld [vmem:[#allocation8 + $0x1338] sm:$0xff]  ;;  %v1112_v38 = vld [vmem:[#allocation8 + $0x880] sm:$0xff]  ;;  %v1920_v56 = vld [vmem:[#allocation8 + $0x1350] sm:$0xff] }
 0x23f   :  { %3311 = vmatprep.subr.bf16.mxu1 %v3310_v43  ;;  %v3326_v43 = vpack.c.bf16 %v1905_v29, %v1903_v28  ;;  %v528_v16 = vsel %vm388_vm5, %v4244_v17, %v2678_v59  ;;  %v2996_v22 = vpack.c.bf16 %v1110_v47, %v1108_v19  ;;  %v3336_v4 = vpack.c.bf16 %v1912_v48, %v1910_v20  ;;  %v1916_v28 = vld [vmem:[#allocation8 + $0x1330] sm:$0xff]  ;;  %v1117_v29 = vld [vmem:[#allocation8 + $0x8a8] sm:$0xff]  ;;  %v1123_v59 = vld [vmem:[#allocation8 + $0x8d8] sm:$0xff] }
 0x240   :  { %v1121_v57 = vld [vmem:[#allocation8 + $0x8c8] sm:$0xff]  ;;  %v1124_v47 = vld [vmem:[#allocation8 + $0x8e0] sm:$0xff]  ;;  %v1126_v20 = vld [vmem:[#allocation8 + $0x8f0] sm:$0xff] }
 0x241   :  { %2973 = vmatpush1.bf16.msra.mxu0 %v2972_v34  ;;  %v2988_v34 = vpack.c.bf16 %v1102_v40, %v1100_v55  ;;  %v4272_v55 = vadd.f32 %v4110_v10, %v4098_v58  ;;  %v3340_v40 = vpack.c.bf16 %v1916_v28, %v1914_v24  ;;  %v3006_v25 = vpack.c.bf16 %v1123_v59, %v1121_v57  ;;  %v1128_v24 = vld [vmem:[#allocation8 + $0x900] sm:$0xff]  ;;  %v1936_v59 = vld [vmem:[#allocation8 + $0x13d0] sm:$0xff] }
 0x242   :  { %3313 = vmatpush1.bf16.msra.mxu1 %v3312_v37  ;;  %2975 = vmatprep.subr.bf16.mxu0 %v2974_v41  ;;  %v3328_v37 = vpack.c.bf16 %v1904_v46, %v1902_v42  ;;  %v2990_v41 = vpack.c.bf16 %v1107_v26, %v1105_v6  ;;  %v3002_v42 = vpack.c.bf16 %v1119_v30, %v1117_v29  ;;  %v1118_v46 = vld [vmem:[#allocation8 + $0x8b0] sm:$0xff]  ;;  %v1918_v6 = vld [vmem:[#allocation8 + $0x1340] sm:$0xff] }
 0x243   :  { %3315 = vmatprep.subr.bf16.mxu1 %v3314_v2  ;;  %v4255_v2 = vpop.f32.mrb[24].mxu0  ;;  %v4276_v26 = vadd.f32 %v4116_v15, %v4090_v53  ;;  %v3344_v61 = vpack.c.bf16 %v1920_v56, %v1918_v6  ;;  %v1930_v28 = vld [vmem:[#allocation8 + $0x13a0] sm:$0xff]  ;;  %v1932_v30 = vld [vmem:[#allocation8 + $0x13b0] sm:$0xff]  ;;  %vm375_vm6 = vcmp.gt.f32.partialorder %v4272_v55, 0.0 }
 0x244   :  { %v4257_v45 = vpop.f32.mrb[25].mxu0  ;;  %v1132_v6 = vld [vmem:[#allocation8 + $0x920] sm:$0xff] }
 0x245   :  { %2977 = vmatpush1.bf16.msra.mxu0 %v2976_v5  ;;  %v525_v5 = vsel %vm385_vm4, %v4240_v1, %v2675_v50  ;;  %v4265_v60 = vpop.f32.mrb[26].mxu0  ;;  %v406_v15 = vmin.f32 %v4276_v26, 0.0  ;;  %v1934_v56 = vld [vmem:[#allocation8 + $0x13c0] sm:$0xff]  ;;  %vm378_vm7 = vcmp.gt.f32.partialorder %v4276_v26, 0.0 }
 0x246   :  { %3317 = vmatpush1.bf16.msra.mxu1 %v3316_v7  ;;  %2979 = vmatprep.subr.bf16.mxu0 %v2978_v12  ;;  %v1911_v7 = vld [vmem:[#allocation8 + $0x1308] sm:$0xff]  ;;  %v1913_v12 = vld [vmem:[#allocation8 + $0x1318] sm:$0xff]  ;;  %v4268_v17 = vpop.f32.mrb[27].mxu0 }
 0x247   :  { %3319 = vmatprep.subr.bf16.mxu1 %v3318_v33  ;;  %v2994_v33 = vpack.c.bf16 %v1111_v49, %v1109_v3  ;;  %v3334_v1 = vpack.c.bf16 %v1913_v12, %v1911_v7  ;;  %v1924_v49 = vld [vmem:[#allocation8 + $0x1370] sm:$0xff]  ;;  %v1127_v7 = vld [vmem:[#allocation8 + $0x8f8] sm:$0xff]  ;;  %v1927_v12 = vld [vmem:[#allocation8 + $0x1388] sm:$0xff]  ;;  %v445_v48 = vmul.f32 1.442695, %v406_v15 }
 0x248   :  { %v1138_v15 = vld [vmem:[#allocation8 + $0x950] sm:$0xff] }
 0x249   :  { %2981 = vmatpush1.bf16.msra.mxu0 %v2980_v63  ;;  %v1113_v63 = vld [vmem:[#allocation8 + $0x888] sm:$0xff] }
 0x24a   :  { %3321 = vmatpush1.bf16.msra.mxu1 %v3320_v9  ;;  %2983 = vmatprep.subr.bf16.mxu0 %v2982_v0  ;;  %v1115_v9 = vld [vmem:[#allocation8 + $0x898] sm:$0xff]  ;;  %v1915_v0 = vld [vmem:[#allocation8 + $0x1328] sm:$0xff] }
 0x24b   :  { %3323 = vmatprep.subr.bf16.mxu1 %v3322_v14  ;;  %v2998_v14 = vpack.c.bf16 %v1115_v9, %v1113_v63  ;;  %v3338_v27 = vpack.c.bf16 %v1917_v21, %v1915_v0  ;;  %v1928_v9 = vld [vmem:[#allocation8 + $0x1390] sm:$0xff]  ;;  %v1129_v0 = vld [vmem:[#allocation8 + $0x908] sm:$0xff]  ;;  %v1131_v21 = vld [vmem:[#allocation8 + $0x918] sm:$0xff] }
 0x24d   :  { %2985 = vmatpush1.bf16.msra.mxu0 %v2984_v31  ;;  %v1919_v31 = vld [vmem:[#allocation8 + $0x1348] sm:$0xff] }
 0x24e   :  { %3325 = vmatpush1.bf16.msra.mxu1 %v3324_v35  ;;  %2987 = vmatprep.subr.bf16.mxu0 %v2986_v36  ;;  %v1921_v35 = vld [vmem:[#allocation8 + $0x1358] sm:$0xff]  ;;  %v3000_v36 = vpack.c.bf16 %v1114_v23, %v1112_v38  ;;  %v3014_v23 = vpack.c.bf16 %v1131_v21, %v1129_v0 }
 0x24f   :  { %3327 = vmatprep.subr.bf16.mxu1 %v3326_v43  ;;  %v1116_v43 = vld [vmem:[#allocation8 + $0x8a0] sm:$0xff]  ;;  %v3342_v50 = vpack.c.bf16 %v1921_v35, %v1919_v31  ;;  %v1133_v31 = vld [vmem:[#allocation8 + $0x928] sm:$0xff]  ;;  %v1135_v35 = vld [vmem:[#allocation8 + $0x938] sm:$0xff] }
 0x250   :  { %v3004_v10 = vpack.c.bf16 %v1118_v46, %v1116_v43  ;;  %v3356_v43 = vpack.c.bf16 %v1932_v30, %v1930_v28  ;;  %v3018_v46 = vpack.c.bf16 %v1135_v35, %v1133_v31  ;;  %v1221_v31 = vld [vmem:[#allocation8 + $0x980] sm:$0xff]  ;;  %v1223_v35 = vld [vmem:[#allocation8 + $0x990] sm:$0xff] }
 0x251   :  { %1893 = vmatmul.mubr.f32.vlgmr.msra.gmra.mrb[0].mxu1 %v525_v5  ;;  %2989 = vmatpush1.bf16.msra.mxu0 %v2988_v34  ;;  %v1923_v34 = vld [vmem:[#allocation8 + $0x1368] sm:$0xff] }
 0x252   :  { %3329 = vmatpush1.bf16.msra.mxu1 %v3328_v37  ;;  %2991 = vmatprep.subr.bf16.mxu0 %v2990_v41  ;;  %v1925_v37 = vld [vmem:[#allocation8 + $0x1378] sm:$0xff]  ;;  %v403_v41 = vmin.f32 %v4272_v55, 0.0  ;;  %v1125_v5 = vld [vmem:[#allocation8 + $0x8e8] sm:$0xff] }
 0x253   :  { %3331 = vmatprep.subr.bf16.mxu1 %v3330_v11  ;;  %2695 = vmatprep.mubr.msk.f32.mxu1 %vm656_vm2, %v528_v16  ;;  %v1122_v11 = vld [vmem:[#allocation8 + $0x8d0] sm:$0xff]  ;;  %v3346_v3 = vpack.c.bf16 %v1925_v37, %v1923_v34  ;;  %v1929_v16 = vld [vmem:[#allocation8 + $0x1398] sm:$0xff]  ;;  %v3010_v19 = vpack.c.bf16 %v1127_v7, %v1125_v5  ;;  %v1137_v34 = vld [vmem:[#allocation8 + $0x948] sm:$0xff] }
 0x254   :  { %v3350_v63 = vpack.c.bf16 %v1929_v16, %v1927_v12  ;;  %v1139_v37 = vld [vmem:[#allocation8 + $0x958] sm:$0xff]  ;;  %v1940_v5 = vld [vmem:[#allocation8 + $0x13f0] sm:$0xff]  ;;  %v1218_v7 = vld [vmem:[#allocation8 + $0x968] sm:$0xff]  ;;  %v4286_v16 = vadd.f32 %v4234_v8, %v4090_v53 }
 0x255   :  { %2993 = vmatpush1.bf16.msra.mxu0 %v2992_v52  ;;  %v3008_v52 = vpack.c.bf16 %v1122_v11, %v1120_v62  ;;  %v3360_v62 = vpack.c.bf16 %v1936_v59, %v1934_v56  ;;  %v3022_v11 = vpack.c.bf16 %v1139_v37, %v1137_v34  ;;  %v1220_v12 = vld [vmem:[#allocation8 + $0x978] sm:$0xff]  ;;  %v1944_v8 = vld [vmem:[#allocation8 + $0x1410] sm:$0xff]  ;;  %v3032_v34 = vpack.c.bf16 %v1223_v35, %v1221_v31  ;;  %v1237_v35 = vld [vmem:[#allocation8 + $0xa00] sm:$0xff] }
 0x256   :  { %3333 = vmatpush1.bf16.msra.mxu1 %v3332_v18  ;;  %2995 = vmatprep.subr.bf16.mxu0 %v2994_v33  ;;  %v439_v18 = vmul.f32 1.442695, %v403_v41  ;;  %v3348_v33 = vpack.c.bf16 %v1924_v49, %v1922_v39  ;;  %v1941_v41 = vld [vmem:[#allocation8 + $0x13f8] sm:$0xff]  ;;  %v1136_v39 = vld [vmem:[#allocation8 + $0x940] sm:$0xff]  ;;  %vm390_vm9 = vcmp.gt.f32.partialorder %v4286_v16, 0.0 }
 0x257   :  { %3335 = vmatprep.subr.bf16.mxu1 %v3334_v1  ;;  %v1926_v1 = vld [vmem:[#allocation8 + $0x1380] sm:$0xff]  ;;  %v1953_v59 = vld [vmem:[#allocation8 + $0x1458] sm:$0xff] }
 0x258   :  { %3701 = vpow2.f32 %v439_v18  ;;  %v3352_v38 = vpack.c.bf16 %v1928_v9, %v1926_v1  ;;  %v1943_v18 = vld [vmem:[#allocation8 + $0x1408] sm:$0xff]  ;;  %v3026_v1 = vpack.c.bf16 %v1220_v12, %v1218_v7  ;;  %v1942_v9 = vld [vmem:[#allocation8 + $0x1400] sm:$0xff] }
 0x259   :  { %2997 = vmatpush1.bf16.msra.mxu0 %v2996_v22  ;;  %v1931_v22 = vld [vmem:[#allocation8 + $0x13a8] sm:$0xff]  ;;  %3703 = vpow2.f32 %v445_v48  ;;  %v1217_v48 = vld [vmem:[#allocation8 + $0x960] sm:$0xff] }
 0x25a   :  { %3337 = vmatpush1.bf16.msra.mxu1 %v3336_v4  ;;  %2999 = vmatprep.subr.bf16.mxu0 %v2998_v14  ;;  %v1933_v4 = vld [vmem:[#allocation8 + $0x13b8] sm:$0xff]  ;;  %v3012_v14 = vpack.c.bf16 %v1126_v20, %v1124_v47  ;;  %v1229_v12 = vld [vmem:[#allocation8 + $0x9c0] sm:$0xff] }
 0x25b   :  { %3339 = vmatprep.subr.bf16.mxu1 %v3338_v27  ;;  %v1130_v27 = vld [vmem:[#allocation8 + $0x910] sm:$0xff]  ;;  %v3354_v29 = vpack.c.bf16 %v1933_v4, %v1931_v22  ;;  %v1222_v22 = vld [vmem:[#allocation8 + $0x988] sm:$0xff]  ;;  %v1224_v4 = vld [vmem:[#allocation8 + $0x998] sm:$0xff] }
 0x25c   :  { %v3030_v30 = vpack.c.bf16 %v1224_v4, %v1222_v22  ;;  %v1960_v4 = vld [vmem:[#allocation8 + $0x1490] sm:$0xff] }
 0x25d   :  { %3001 = vmatpush1.bf16.msra.mxu0 %v3000_v36  ;;  %v1935_v36 = vld [vmem:[#allocation8 + $0x13c8] sm:$0xff] }
 0x25e   :  { %3341 = vmatpush1.bf16.msra.mxu1 %v3340_v40  ;;  %3003 = vmatprep.subr.bf16.mxu0 %v3002_v42  ;;  %v1937_v40 = vld [vmem:[#allocation8 + $0x13d8] sm:$0xff]  ;;  %v3016_v42 = vpack.c.bf16 %v1130_v27, %v1128_v24 }
 0x25f   :  { %3343 = vmatprep.subr.bf16.mxu1 %v3342_v50  ;;  %v1134_v50 = vld [vmem:[#allocation8 + $0x930] sm:$0xff]  ;;  %v3358_v57 = vpack.c.bf16 %v1937_v40, %v1935_v36  ;;  %v1949_v24 = vld [vmem:[#allocation8 + $0x1438] sm:$0xff]  ;;  %v1946_v36 = vld [vmem:[#allocation8 + $0x1420] sm:$0xff] }
 0x261   :  { %3005 = vmatpush1.bf16.msra.mxu0 %v3004_v10  ;;  %v1939_v10 = vld [vmem:[#allocation8 + $0x13e8] sm:$0xff] }
 0x262   :  { %3345 = vmatpush1.bf16.msra.mxu1 %v3344_v61  ;;  %3007 = vmatprep.subr.bf16.mxu0 %v3006_v25  ;;  %v3020_v61 = vpack.c.bf16 %v1134_v50, %v1132_v6  ;;  %v4282_v25 = vadd.f32 %v4190_v44, %v4098_v58  ;;  %v3362_v49 = vpack.c.bf16 %v1941_v41, %v1939_v10  ;;  %v1945_v44 = vld [vmem:[#allocation8 + $0x1418] sm:$0xff]  ;;  %v1225_v10 = vld [vmem:[#allocation8 + $0x9a0] sm:$0xff]  ;;  %v1227_v41 = vld [vmem:[#allocation8 + $0x9b0] sm:$0xff] }
 0x263   :  { %3347 = vmatprep.subr.bf16.mxu1 %v3346_v3  ;;  %v1938_v3 = vld [vmem:[#allocation8 + $0x13e0] sm:$0xff]  ;;  %v3366_v21 = vpack.c.bf16 %v1945_v44, %v1943_v18  ;;  %v1228_v6 = vld [vmem:[#allocation8 + $0x9b8] sm:$0xff] }
 0x264   :  { %v415_v47 = vmin.f32 %v4282_v25, 0.0  ;;  %v3364_v20 = vpack.c.bf16 %v1940_v5, %v1938_v3  ;;  %v1957_v3 = vld [vmem:[#allocation8 + $0x1478] sm:$0xff]  ;;  %v1954_v18 = vld [vmem:[#allocation8 + $0x1460] sm:$0xff]  ;;  %vm387_vm8 = vcmp.gt.f32.partialorder %v4282_v25, 0.0 }
 0x265   :  { %3009 = vmatpush1.bf16.msra.mxu0 %v3008_v52  ;;  %v3702_v52 = vpop.eup %3701 }
 0x266   :  { %3349 = vmatpush1.bf16.msra.mxu1 %v3348_v33  ;;  %3011 = vmatprep.subr.bf16.mxu0 %v3010_v19  ;;  %v3704_v33 = vpop.eup %3703  ;;  %v3024_v19 = vpack.c.bf16 %v1138_v15, %v1136_v39  ;;  %v2665_v0 = vadd.f32 -1.0, %v3702_v52  ;;  %v463_v28 = vmul.f32 1.442695, %v415_v47  ;;  %v1230_v39 = vld [vmem:[#allocation8 + $0x9c8] sm:$0xff]  ;;  %v1232_v15 = vld [vmem:[#allocation8 + $0x9d8] sm:$0xff]  ;;  %v1231_v52 = vld [vmem:[#allocation8 + $0x9d0] sm:$0xff] }
 0x267   :  { %3351 = vmatprep.subr.bf16.mxu1 %v3350_v63  ;;  %v1219_v63 = vld [vmem:[#allocation8 + $0x970] sm:$0xff]  ;;  %v3038_v7 = vpack.c.bf16 %v1232_v15, %v1230_v39  ;;  %v1236_v47 = vld [vmem:[#allocation8 + $0x9f8] sm:$0xff]  ;;  %v1246_v39 = vld [vmem:[#allocation8 + $0xa48] sm:$0xff] }
 0x268   :  { %v3028_v27 = vpack.c.bf16 %v1219_v63, %v1217_v48  ;;  %v515_v40 = vsel %vm375_vm6, %v4272_v55, %v2665_v0  ;;  %3705 = vpow2.f32 %v463_v28  ;;  %v3040_v48 = vpack.c.bf16 %v1231_v52, %v1229_v12  ;;  %v1233_v0 = vld [vmem:[#allocation8 + $0x9e0] sm:$0xff]  ;;  %v1248_v15 = vld [vmem:[#allocation8 + $0xa58] sm:$0xff] }
 0x269   :  { %3013 = vmatpush1.bf16.msra.mxu0 %v3012_v14  ;;  %v418_v14 = vmin.f32 %v4286_v16, 0.0  ;;  %v3054_v52 = vpack.c.bf16 %v1248_v15, %v1246_v39  ;;  %v2066_v39 = vld [vmem:[#allocation8 + $0x1578] sm:$0xff] }
 0x26a   :  { %3353 = vmatpush1.bf16.msra.mxu1 %v3352_v38  ;;  %3015 = vmatprep.subr.bf16.mxu0 %v3014_v23  ;;  %v2668_v38 = vadd.f32 -1.0, %v3704_v33  ;;  %v1947_v23 = vld [vmem:[#allocation8 + $0x1428] sm:$0xff]  ;;  %v1956_v33 = vld [vmem:[#allocation8 + $0x1470] sm:$0xff] }
 0x26b   :  { %3355 = vmatprep.subr.bf16.mxu1 %v3354_v29  ;;  %v3368_v29 = vpack.c.bf16 %v1944_v8, %v1942_v9  ;;  %v469_v50 = vmul.f32 1.442695, %v418_v14  ;;  %v3380_v63 = vpack.c.bf16 %v1956_v33, %v1954_v18  ;;  %v1958_v8 = vld [vmem:[#allocation8 + $0x1480] sm:$0xff]  ;;  %v1238_v14 = vld [vmem:[#allocation8 + $0xa08] sm:$0xff] }
 0x26c   :  { %v518_v56 = vsel %vm378_vm7, %v4276_v26, %v2668_v38  ;;  %v1955_v26 = vld [vmem:[#allocation8 + $0x1468] sm:$0xff]  ;;  %v1240_v38 = vld [vmem:[#allocation8 + $0xa18] sm:$0xff]  ;;  %v1245_v18 = vld [vmem:[#allocation8 + $0xa40] sm:$0xff] }
 0x26d   :  { %3017 = vmatpush1.bf16.msra.mxu0 %v3016_v42  ;;  %v3370_v42 = vpack.c.bf16 %v1949_v24, %v1947_v23  ;;  %3707 = vpow2.f32 %v469_v50  ;;  %v3378_v44 = vpack.c.bf16 %v1957_v3, %v1955_v26  ;;  %v2040_v24 = vld [vmem:[#allocation8 + $0x14a8] sm:$0xff]  ;;  %v3046_v31 = vpack.c.bf16 %v1240_v38, %v1238_v14  ;;  %v2047_v33 = vld [vmem:[#allocation8 + $0x14e0] sm:$0xff]  ;;  %v1256_v38 = vld [vmem:[#allocation8 + $0xa98] sm:$0xff] }
 0x26e   :  { %3357 = vmatpush1.bf16.msra.mxu1 %v3356_v43  ;;  %3019 = vmatprep.subr.bf16.mxu0 %v3018_v46  ;;  %v1948_v43 = vld [vmem:[#allocation8 + $0x1430] sm:$0xff]  ;;  %v1226_v46 = vld [vmem:[#allocation8 + $0x9a8] sm:$0xff] }
 0x26f   :  { %3359 = vmatprep.subr.bf16.mxu1 %v3358_v57  ;;  %v1951_v57 = vld [vmem:[#allocation8 + $0x1448] sm:$0xff]  ;;  %v3372_v37 = vpack.c.bf16 %v1948_v43, %v1946_v36  ;;  %v3034_v55 = vpack.c.bf16 %v1228_v6, %v1226_v46  ;;  %v1239_v36 = vld [vmem:[#allocation8 + $0xa10] sm:$0xff]  ;;  %v1244_v6 = vld [vmem:[#allocation8 + $0xa38] sm:$0xff] }
 0x270   :  { %v2041_v43 = vld [vmem:[#allocation8 + $0x14b0] sm:$0xff]  ;;  %v1242_v46 = vld [vmem:[#allocation8 + $0xa28] sm:$0xff] }
 0x271   :  { %3021 = vmatpush1.bf16.msra.mxu0 %v3020_v61  ;;  %v1950_v61 = vld [vmem:[#allocation8 + $0x1440] sm:$0xff]  ;;  %v2048_v3 = vld [vmem:[#allocation8 + $0x14e8] sm:$0xff] }
 0x272   :  { %3361 = vmatpush1.bf16.msra.mxu1 %v3360_v62  ;;  %3023 = vmatprep.subr.bf16.mxu0 %v3022_v11  ;;  %v3374_v62 = vpack.c.bf16 %v1953_v59, %v1951_v57  ;;  %v1952_v11 = vld [vmem:[#allocation8 + $0x1450] sm:$0xff]  ;;  %v3706_v23 = vpop.eup %3705  ;;  %v2046_v57 = vld [vmem:[#allocation8 + $0x14d8] sm:$0xff]  ;;  %v1254_v14 = vld [vmem:[#allocation8 + $0xa88] sm:$0xff] }
 0x273   :  { %3363 = vmatprep.subr.bf16.mxu1 %v3362_v49  ;;  %v3036_v49 = vpack.c.bf16 %v1227_v41, %v1225_v10  ;;  %v3376_v5 = vpack.c.bf16 %v1952_v11, %v1950_v61  ;;  %v2677_v50 = vadd.f32 -1.0, %v3706_v23  ;;  %v1241_v10 = vld [vmem:[#allocation8 + $0xa20] sm:$0xff]  ;;  %v1243_v41 = vld [vmem:[#allocation8 + $0xa30] sm:$0xff]  ;;  %v2056_v23 = vld [vmem:[#allocation8 + $0x1528] sm:$0xff] }
 0x274   :  { %v2043_v61 = vld [vmem:[#allocation8 + $0x14c0] sm:$0xff]  ;;  %v2045_v11 = vld [vmem:[#allocation8 + $0x14d0] sm:$0xff] }
 0x275   :  { %3025 = vmatpush1.bf16.msra.mxu0 %v3024_v19  ;;  %v1234_v19 = vld [vmem:[#allocation8 + $0x9e8] sm:$0xff]  ;;  %v527_v26 = vsel %vm387_vm8, %v4282_v25, %v2677_v50  ;;  %v3392_v12 = vpack.c.bf16 %v2045_v11, %v2043_v61  ;;  %v2062_v50 = vld [vmem:[#allocation8 + $0x1558] sm:$0xff] }
 0x276   :  { %3365 = vmatpush1.bf16.msra.mxu1 %v3364_v20  ;;  %3027 = vmatprep.subr.bf16.mxu0 %v3026_v1  ;;  %v1959_v20 = vld [vmem:[#allocation8 + $0x1488] sm:$0xff]  ;;  %v1961_v1 = vld [vmem:[#allocation8 + $0x1498] sm:$0xff]  ;;  %v3042_v9 = vpack.c.bf16 %v1236_v47, %v1234_v19  ;;  %v2049_v47 = vld [vmem:[#allocation8 + $0x14f0] sm:$0xff] }
 0x277   :  { %3367 = vmatprep.subr.bf16.mxu1 %v3366_v21  ;;  %v1235_v21 = vld [vmem:[#allocation8 + $0x9f0] sm:$0xff]  ;;  %v3382_v22 = vpack.c.bf16 %v1961_v1, %v1959_v20  ;;  %v3708_v28 = vpop.eup %3707  ;;  %v1250_v25 = vld [vmem:[#allocation8 + $0xa68] sm:$0xff]  ;;  %v1252_v20 = vld [vmem:[#allocation8 + $0xa78] sm:$0xff] }
 0x278   :  { %1208 = vmatmul.mubr.f32.vlgmr.msra.gmra.mrb[28].mxu0 %v515_v40  ;;  %v2039_v40 = vld [vmem:[#allocation8 + $0x14a0] sm:$0xff]  ;;  %v2680_v59 = vadd.f32 -1.0, %v3708_v28  ;;  %v2052_v1 = vld [vmem:[#allocation8 + $0x1508] sm:$0xff]  ;;  %v4306_v28 = vadd.f32 %v4114_v13, %v4098_v58 }
 0x279   :  { %3029 = vmatpush1.bf16.msra.mxu0 %v3028_v27  ;;  %2690 = vmatprep.mubr.msk.f32.mxu0 %vm656_vm2, %v518_v56  ;;  %v2042_v27 = vld [vmem:[#allocation8 + $0x14b8] sm:$0xff]  ;;  %v2044_v56 = vld [vmem:[#allocation8 + $0x14c8] sm:$0xff] }
 0x27a   :  { %3369 = vmatpush1.bf16.msra.mxu1 %v3368_v29  ;;  %3031 = vmatprep.subr.bf16.mxu0 %v3030_v30  ;;  %v3044_v29 = vpack.c.bf16 %v1235_v21, %v1233_v0  ;;  %v3384_v30 = vpack.c.bf16 %v1960_v4, %v1958_v8  ;;  %v1249_v0 = vld [vmem:[#allocation8 + $0xa60] sm:$0xff]  ;;  %v1251_v21 = vld [vmem:[#allocation8 + $0xa70] sm:$0xff]  ;;  %v1262_v61 = vld [vmem:[#allocation8 + $0xac8] sm:$0xff]  ;;  %vm377_vm10 = vcmp.gt.f32.partialorder %v4306_v28, 0.0 }
 0x27b   :  { %3371 = vmatprep.subr.bf16.mxu1 %v3370_v42  ;;  %v3386_v42 = vpack.c.bf16 %v2042_v27, %v2040_v24  ;;  %v2051_v8 = vld [vmem:[#allocation8 + $0x1500] sm:$0xff]  ;;  %v2053_v4 = vld [vmem:[#allocation8 + $0x1510] sm:$0xff]  ;;  %v2058_v24 = vld [vmem:[#allocation8 + $0x1538] sm:$0xff]  ;;  %v3060_v27 = vpack.c.bf16 %v1251_v21, %v1249_v0 }
 0x27c   :  { %v2064_v11 = vld [vmem:[#allocation8 + $0x1568] sm:$0xff]  ;;  %v2069_v0 = vld [vmem:[#allocation8 + $0x1590] sm:$0xff] }
 0x27d   :  { %3033 = vmatpush1.bf16.msra.mxu0 %v3032_v34  ;;  %v3048_v34 = vpack.c.bf16 %v1239_v36, %v1237_v35  ;;  %v1255_v35 = vld [vmem:[#allocation8 + $0xa90] sm:$0xff]  ;;  %v2055_v36 = vld [vmem:[#allocation8 + $0x1520] sm:$0xff]  ;;  %v1270_v21 = vld [vmem:[#allocation8 + $0xb08] sm:$0xff] }
 0x27e   :  { %3373 = vmatpush1.bf16.msra.mxu1 %v3372_v37  ;;  %3035 = vmatprep.subr.bf16.mxu0 %v3034_v55  ;;  %v3388_v37 = vpack.c.bf16 %v2041_v43, %v2039_v40  ;;  %v3050_v55 = vpack.c.bf16 %v1244_v6, %v1242_v46  ;;  %v3402_v40 = vpack.c.bf16 %v2058_v24, %v2056_v23  ;;  %v1258_v43 = vld [vmem:[#allocation8 + $0xaa8] sm:$0xff]  ;;  %v1260_v46 = vld [vmem:[#allocation8 + $0xab8] sm:$0xff]  ;;  %v1269_v24 = vld [vmem:[#allocation8 + $0xb00] sm:$0xff] }
 0x27f   :  { %3375 = vmatprep.subr.bf16.mxu1 %v3374_v62  ;;  %v3390_v62 = vpack.c.bf16 %v2046_v57, %v2044_v56  ;;  %v2060_v6 = vld [vmem:[#allocation8 + $0x1548] sm:$0xff]  ;;  %v405_v57 = vmin.f32 %v4306_v28, 0.0 }
 0x281   :  { %3037 = vmatpush1.bf16.msra.mxu0 %v3036_v49  ;;  %v2050_v49 = vld [vmem:[#allocation8 + $0x14f8] sm:$0xff] }
 0x282   :  { %3377 = vmatpush1.bf16.msra.mxu1 %v3376_v5  ;;  %3039 = vmatprep.subr.bf16.mxu0 %v3038_v7  ;;  %v530_v5 = vsel %vm390_vm9, %v4286_v16, %v2680_v59  ;;  %v3052_v7 = vpack.c.bf16 %v1243_v41, %v1241_v10  ;;  %v3394_v19 = vpack.c.bf16 %v2050_v49, %v2048_v3  ;;  %v2061_v41 = vld [vmem:[#allocation8 + $0x1550] sm:$0xff] }
 0x283   :  { %3379 = vmatprep.subr.bf16.mxu1 %v3378_v44  ;;  %v1247_v44 = vld [vmem:[#allocation8 + $0xa50] sm:$0xff]  ;;  %v3066_v59 = vpack.c.bf16 %v1260_v46, %v1258_v43  ;;  %v3406_v10 = vpack.c.bf16 %v2062_v50, %v2060_v6  ;;  %v1273_v50 = vld [vmem:[#allocation8 + $0xb20] sm:$0xff] }
 0x284   :  { %v3056_v16 = vpack.c.bf16 %v1247_v44, %v1245_v18  ;;  %v2065_v18 = vld [vmem:[#allocation8 + $0x1570] sm:$0xff]  ;;  %v1266_v44 = vld [vmem:[#allocation8 + $0xae8] sm:$0xff] }
 0x285   :  { %3041 = vmatpush1.bf16.msra.mxu0 %v3040_v48  ;;  %v2054_v48 = vld [vmem:[#allocation8 + $0x1518] sm:$0xff] }
 0x286   :  { %3381 = vmatpush1.bf16.msra.mxu1 %v3380_v63  ;;  %3043 = vmatprep.subr.bf16.mxu0 %v3042_v9  ;;  %v3396_v63 = vpack.c.bf16 %v2049_v47, %v2047_v33  ;;  %v3058_v9 = vpack.c.bf16 %v1252_v20, %v1250_v25  ;;  %v1268_v33 = vld [vmem:[#allocation8 + $0xaf8] sm:$0xff] }
 0x287   :  { %3383 = vmatprep.subr.bf16.mxu1 %v3382_v22  ;;  %v3398_v22 = vpack.c.bf16 %v2054_v48, %v2052_v1  ;;  %v2070_v47 = vld [vmem:[#allocation8 + $0x1598] sm:$0xff]  ;;  %v3074_v1 = vpack.c.bf16 %v1268_v33, %v1266_v44  ;;  %v1265_v48 = vld [vmem:[#allocation8 + $0xae0] sm:$0xff]  ;;  %v2085_v33 = vld [vmem:[#allocation8 + $0x1610] sm:$0xff] }
 0x288   :  { %v2083_v44 = vld [vmem:[#allocation8 + $0x1600] sm:$0xff] }
 0x289   :  { %3045 = vmatpush1.bf16.msra.mxu0 %v3044_v29  ;;  %v3400_v29 = vpack.c.bf16 %v2053_v4, %v2051_v8  ;;  %v1272_v8 = vld [vmem:[#allocation8 + $0xb18] sm:$0xff] }
 0x28a   :  { %3385 = vmatpush1.bf16.msra.mxu1 %v3384_v30  ;;  %3047 = vmatprep.subr.bf16.mxu0 %v3046_v31  ;;  %v3062_v30 = vpack.c.bf16 %v1256_v38, %v1254_v14  ;;  %v1253_v31 = vld [vmem:[#allocation8 + $0xa80] sm:$0xff]  ;;  %v2074_v4 = vld [vmem:[#allocation8 + $0x15b8] sm:$0xff]  ;;  %v3078_v23 = vpack.c.bf16 %v1272_v8, %v1270_v21  ;;  %v2093_v21 = vld [vmem:[#allocation8 + $0x1650] sm:$0xff] }
 0x28b   :  { %3387 = vmatprep.subr.bf16.mxu1 %v3386_v42  ;;  %v2057_v42 = vld [vmem:[#allocation8 + $0x1530] sm:$0xff]  ;;  %v3064_v56 = vpack.c.bf16 %v1255_v35, %v1253_v31  ;;  %v1274_v35 = vld [vmem:[#allocation8 + $0xb28] sm:$0xff] }
 0x28c   :  { %v3404_v13 = vpack.c.bf16 %v2057_v42, %v2055_v36  ;;  %v2073_v31 = vld [vmem:[#allocation8 + $0x15b0] sm:$0xff]  ;;  %v1276_v36 = vld [vmem:[#allocation8 + $0xb38] sm:$0xff]  ;;  %v2096_v8 = vld [vmem:[#allocation8 + $0x1668] sm:$0xff] }
 0x28d   :  { %2030 = vmatmul.mubr.f32.vlgmr.msra.gmra.mrb[0].mxu1 %v527_v26  ;;  %3049 = vmatpush1.bf16.msra.mxu0 %v3048_v34  ;;  %v1257_v34 = vld [vmem:[#allocation8 + $0xaa0] sm:$0xff]  ;;  %v443_v26 = vmul.f32 1.442695, %v405_v57  ;;  %v2078_v42 = vld [vmem:[#allocation8 + $0x15d8] sm:$0xff]  ;;  %v3082_v6 = vpack.c.bf16 %v1276_v36, %v1274_v35  ;;  %v4311_v57 = vadd.f32 %v4257_v45, %v4090_v53 }
 0x28e   :  { %3389 = vmatpush1.bf16.msra.mxu1 %v3388_v37  ;;  %3051 = vmatprep.subr.bf16.mxu0 %v3050_v55  ;;  %v1259_v37 = vld [vmem:[#allocation8 + $0xab0] sm:$0xff]  ;;  %v2059_v55 = vld [vmem:[#allocation8 + $0x1540] sm:$0xff] }
 0x28f   :  { %3391 = vmatprep.subr.bf16.mxu1 %v3390_v62  ;;  %2696 = vmatprep.mubr.msk.f32.mxu1 %vm656_vm2, %v530_v5  ;;  %v1264_v62 = vld [vmem:[#allocation8 + $0xad8] sm:$0xff]  ;;  %v3068_v15 = vpack.c.bf16 %v1259_v37, %v1257_v34  ;;  %v3408_v3 = vpack.c.bf16 %v2061_v41, %v2059_v55  ;;  %v1261_v5 = vld [vmem:[#allocation8 + $0xac0] sm:$0xff]  ;;  %3709 = vpow2.f32 %v443_v26  ;;  %v2077_v37 = vld [vmem:[#allocation8 + $0x15d0] sm:$0xff]  ;;  %vm392_vm11 = vcmp.gt.f32.partialorder %v4311_v57, 0.0 }
 0x290   :  { %v3070_v49 = vpack.c.bf16 %v1264_v62, %v1262_v61  ;;  %v2075_v34 = vld [vmem:[#allocation8 + $0x15c0] sm:$0xff]  ;;  %v2082_v41 = vld [vmem:[#allocation8 + $0x15f8] sm:$0xff]  ;;  %v2081_v26 = vld [vmem:[#allocation8 + $0x15f0] sm:$0xff] }
 0x291   :  { %3053 = vmatpush1.bf16.msra.mxu0 %v3052_v7  ;;  %v1263_v7 = vld [vmem:[#allocation8 + $0xad0] sm:$0xff]  ;;  %v3424_v62 = vpack.c.bf16 %v2077_v37, %v2075_v34  ;;  %v2176_v36 = vld [vmem:[#allocation8 + $0x1680] sm:$0xff] }
 0x292   :  { %3393 = vmatpush1.bf16.msra.mxu1 %v3392_v12  ;;  %3055 = vmatprep.subr.bf16.mxu0 %v3054_v52  ;;  %v2063_v12 = vld [vmem:[#allocation8 + $0x1560] sm:$0xff]  ;;  %v3410_v52 = vpack.c.bf16 %v2066_v39, %v2064_v11  ;;  %v3072_v25 = vpack.c.bf16 %v1263_v7, %v1261_v5  ;;  %v420_v11 = vmin.f32 %v4311_v57, 0.0  ;;  %v2182_v34 = vld [vmem:[#allocation8 + $0x16b0] sm:$0xff] }
 0x293   :  { %3395 = vmatprep.subr.bf16.mxu1 %v3394_v19  ;;  %v2068_v19 = vld [vmem:[#allocation8 + $0x1588] sm:$0xff]  ;;  %v3412_v20 = vpack.c.bf16 %v2065_v18, %v2063_v12 }
 0x294   :  { %v473_v7 = vmul.f32 1.442695, %v420_v11  ;;  %v2184_v11 = vld [vmem:[#allocation8 + $0x16c0] sm:$0xff] }
 0x295   :  { %3057 = vmatpush1.bf16.msra.mxu0 %v3056_v16  ;;  %v1267_v16 = vld [vmem:[#allocation8 + $0xaf0] sm:$0xff] }
 0x296   :  { %3397 = vmatpush1.bf16.msra.mxu1 %v3396_v63  ;;  %3059 = vmatprep.subr.bf16.mxu0 %v3058_v9  ;;  %v2067_v63 = vld [vmem:[#allocation8 + $0x1580] sm:$0xff]  ;;  %v3414_v9 = vpack.c.bf16 %v2070_v47, %v2068_v19  ;;  %v3076_v14 = vpack.c.bf16 %v1267_v16, %v1265_v48  ;;  %v2088_v19 = vld [vmem:[#allocation8 + $0x1628] sm:$0xff]  ;;  %v2090_v47 = vld [vmem:[#allocation8 + $0x1638] sm:$0xff]  ;;  %3711 = vpow2.f32 %v473_v7 }
 0x297   :  { %3399 = vmatprep.subr.bf16.mxu1 %v3398_v22  ;;  %v2072_v22 = vld [vmem:[#allocation8 + $0x15a8] sm:$0xff]  ;;  %v3416_v38 = vpack.c.bf16 %v2069_v0, %v2067_v63  ;;  %v2089_v48 = vld [vmem:[#allocation8 + $0x1630] sm:$0xff]  ;;  %v2094_v63 = vld [vmem:[#allocation8 + $0x1658] sm:$0xff] }
 0x298   :  { %v2092_v16 = vld [vmem:[#allocation8 + $0x1648] sm:$0xff]  ;;  %v2091_v0 = vld [vmem:[#allocation8 + $0x1640] sm:$0xff] }
 0x299   :  { %3061 = vmatpush1.bf16.msra.mxu0 %v3060_v27  ;;  %v1271_v27 = vld [vmem:[#allocation8 + $0xb10] sm:$0xff]  ;;  %v3710_v55 = vpop.eup %3709 }
 0x29a   :  { %3401 = vmatpush1.bf16.msra.mxu1 %v3400_v29  ;;  %3063 = vmatprep.subr.bf16.mxu0 %v3062_v30  ;;  %v2071_v29 = vld [vmem:[#allocation8 + $0x15a0] sm:$0xff]  ;;  %v3418_v30 = vpack.c.bf16 %v2074_v4, %v2072_v22  ;;  %v3080_v43 = vpack.c.bf16 %v1271_v27, %v1269_v24  ;;  %v2667_v39 = vadd.f32 -1.0, %v3710_v55  ;;  %v2098_v22 = vld [vmem:[#allocation8 + $0x1678] sm:$0xff]  ;;  %v3440_v4 = vpack.c.bf16 %v2093_v21, %v2091_v0  ;;  %v2177_v27 = vld [vmem:[#allocation8 + $0x1688] sm:$0xff] }
 0x29b   :  { %3403 = vmatprep.subr.bf16.mxu1 %v3402_v40  ;;  %v2076_v40 = vld [vmem:[#allocation8 + $0x15c8] sm:$0xff]  ;;  %v3420_v46 = vpack.c.bf16 %v2073_v31, %v2071_v29  ;;  %v2179_v29 = vld [vmem:[#allocation8 + $0x1698] sm:$0xff] }
 0x29c   :  { %v3446_v35 = vpack.c.bf16 %v2179_v29, %v2177_v27  ;;  %v2207_v0 = vld [vmem:[#allocation8 + $0x1778] sm:$0xff]  ;;  %v2208_v27 = vld [vmem:[#allocation8 + $0x1780] sm:$0xff]  ;;  %v2210_v29 = vld [vmem:[#allocation8 + $0x1790] sm:$0xff] }
 0x29d   :  { %3065 = vmatpush1.bf16.msra.mxu0 %v3064_v56  ;;  %v1275_v56 = vld [vmem:[#allocation8 + $0xb30] sm:$0xff] }
 0x29e   :  { %3405 = vmatpush1.bf16.msra.mxu1 %v3404_v13  ;;  %3067 = vmatprep.subr.bf16.mxu0 %v3066_v59  ;;  %v4315_v13 = vadd.f32 %v4228_v32, %v4098_v58  ;;  %v3422_v59 = vpack.c.bf16 %v2078_v42, %v2076_v40  ;;  %v3084_v61 = vpack.c.bf16 %v1275_v56, %v1273_v50  ;;  %v2178_v40 = vld [vmem:[#allocation8 + $0x1690] sm:$0xff] }
 0x29f   :  { %3407 = vmatprep.subr.bf16.mxu1 %v3406_v10  ;;  %v2080_v10 = vld [vmem:[#allocation8 + $0x15e8] sm:$0xff]  ;;  %v3448_v50 = vpack.c.bf16 %v2178_v40, %v2176_v36  ;;  %v4328_v36 = vadd.f32 %v4255_v2, %v4098_v58 }
 0x2a0   :  { %v417_v45 = vmin.f32 %v4315_v13, 0.0  ;;  %v3426_v32 = vpack.c.bf16 %v2082_v41, %v2080_v10  ;;  %v3712_v24 = vpop.eup %3711  ;;  %vm389_vm12 = vcmp.gt.f32.partialorder %v4315_v13, 0.0  ;;  %v2185_v10 = vld [vmem:[#allocation8 + $0x16c8] sm:$0xff]  ;;  %v2187_v41 = vld [vmem:[#allocation8 + $0x16d8] sm:$0xff] }
 0x2a1   :  { %3069 = vmatpush1.bf16.msra.mxu0 %v3068_v15  ;;  %v2079_v15 = vld [vmem:[#allocation8 + $0x15e0] sm:$0xff]  ;;  %v2682_v42 = vadd.f32 -1.0, %v3712_v24  ;;  %vm391_vm13 = vcmp.gt.f32.partialorder %v4328_v36, 0.0 }
 0x2a2   :  { %3409 = vmatpush1.bf16.msra.mxu1 %v3408_v3  ;;  %3071 = vmatprep.subr.bf16.mxu0 %v3070_v49  ;;  %v2084_v3 = vld [vmem:[#allocation8 + $0x1608] sm:$0xff]  ;;  %v2086_v49 = vld [vmem:[#allocation8 + $0x1618] sm:$0xff]  ;;  %v3428_v5 = vpack.c.bf16 %v2081_v26, %v2079_v15  ;;  %v467_v12 = vmul.f32 1.442695, %v417_v45  ;;  %v2186_v45 = vld [vmem:[#allocation8 + $0x16d0] sm:$0xff] }
 0x2a3   :  { %3411 = vmatprep.subr.bf16.mxu1 %v3410_v52  ;;  %v517_v52 = vsel %vm377_vm10, %v4306_v28, %v2667_v39  ;;  %v3430_v18 = vpack.c.bf16 %v2086_v49, %v2084_v3  ;;  %v3438_v28 = vpack.c.bf16 %v2094_v63, %v2092_v16  ;;  %v532_v37 = vsel %vm392_vm11, %v4311_v57, %v2682_v42  ;;  %v2189_v39 = vld [vmem:[#allocation8 + $0x16e8] sm:$0xff]  ;;  %v2188_v57 = vld [vmem:[#allocation8 + $0x16e0] sm:$0xff]  ;;  %v2190_v3 = vld [vmem:[#allocation8 + $0x16f0] sm:$0xff] }
 0x2a4   :  { %3713 = vpow2.f32 %v467_v12  ;;  %v3456_v15 = vpack.c.bf16 %v2186_v45, %v2184_v11  ;;  %v2195_v49 = vld [vmem:[#allocation8 + $0x1718] sm:$0xff]  ;;  %v2192_v12 = vld [vmem:[#allocation8 + $0x1700] sm:$0xff]  ;;  %v2222_v11 = vld [vmem:[#allocation8 + $0x17f0] sm:$0xff] }
 0x2a5   :  { %3073 = vmatpush1.bf16.msra.mxu0 %v3072_v25  ;;  %v3432_v25 = vpack.c.bf16 %v2085_v33, %v2083_v44  ;;  %v2199_v44 = vld [vmem:[#allocation8 + $0x1738] sm:$0xff]  ;;  %v2200_v63 = vld [vmem:[#allocation8 + $0x1740] sm:$0xff] }
 0x2a6   :  { %3413 = vmatpush1.bf16.msra.mxu1 %v3412_v20  ;;  %3075 = vmatprep.subr.bf16.mxu0 %v3074_v1  ;;  %v3434_v20 = vpack.c.bf16 %v2090_v47, %v2088_v19  ;;  %v2087_v1 = vld [vmem:[#allocation8 + $0x1620] sm:$0xff] }
 0x2a7   :  { %3415 = vmatprep.subr.bf16.mxu1 %v3414_v9  ;;  %v3436_v9 = vpack.c.bf16 %v2089_v48, %v2087_v1  ;;  %v2196_v47 = vld [vmem:[#allocation8 + $0x1720] sm:$0xff]  ;;  %v2203_v1 = vld [vmem:[#allocation8 + $0x1758] sm:$0xff] }
 0x2a8   :  { %v2212_v42 = vld [vmem:[#allocation8 + $0x17a0] sm:$0xff] }
 0x2a9   :  { %3077 = vmatpush1.bf16.msra.mxu0 %v3076_v14  ;;  %v3442_v14 = vpack.c.bf16 %v2098_v22, %v2096_v8  ;;  %v2204_v22 = vld [vmem:[#allocation8 + $0x1760] sm:$0xff] }
 0x2aa   :  { %3417 = vmatpush1.bf16.msra.mxu1 %v3416_v38  ;;  %3079 = vmatprep.subr.bf16.mxu0 %v3078_v23  ;;  %v2095_v38 = vld [vmem:[#allocation8 + $0x1660] sm:$0xff]  ;;  %v2097_v23 = vld [vmem:[#allocation8 + $0x1670] sm:$0xff] }
 0x2ab   :  { %3419 = vmatprep.subr.bf16.mxu1 %v3418_v30  ;;  %v3444_v31 = vpack.c.bf16 %v2097_v23, %v2095_v38  ;;  %v2211_v38 = vld [vmem:[#allocation8 + $0x1798] sm:$0xff] }
 0x2ad   :  { %3081 = vmatpush1.bf16.msra.mxu0 %v3080_v43 }
 0x2ae   :  { %3421 = vmatpush1.bf16.msra.mxu1 %v3420_v46  ;;  %3083 = vmatprep.subr.bf16.mxu0 %v3082_v6  ;;  %v3714_v30 = vpop.eup %3713  ;;  %v2181_v46 = vld [vmem:[#allocation8 + $0x16a8] sm:$0xff]  ;;  %v2183_v6 = vld [vmem:[#allocation8 + $0x16b8] sm:$0xff] }
 0x2af   :  { %3423 = vmatprep.subr.bf16.mxu1 %v3422_v59  ;;  %v2679_v43 = vadd.f32 -1.0, %v3714_v30  ;;  %v3450_v56 = vpack.c.bf16 %v2183_v6, %v2181_v46  ;;  %v2180_v59 = vld [vmem:[#allocation8 + $0x16a0] sm:$0xff]  ;;  %v2213_v30 = vld [vmem:[#allocation8 + $0x17a8] sm:$0xff]  ;;  %v4332_v46 = vadd.f32 %v4268_v17, %v4090_v53 }
 0x2b0   :  { %v2217_v6 = vld [vmem:[#allocation8 + $0x17c8] sm:$0xff]  ;;  %v2220_v17 = vld [vmem:[#allocation8 + $0x17e0] sm:$0xff] }
 0x2b1   :  { %3085 = vmatpush1.bf16.msra.mxu0 %v3084_v61  ;;  %v529_v55 = vsel %vm389_vm12, %v4315_v13, %v2679_v43  ;;  %v3452_v61 = vpack.c.bf16 %v2182_v34, %v2180_v59  ;;  %v2193_v13 = vld [vmem:[#allocation8 + $0x1708] sm:$0xff]  ;;  %v2214_v43 = vld [vmem:[#allocation8 + $0x17b0] sm:$0xff]  ;;  %v419_v59 = vmin.f32 %v4328_v36, 0.0  ;;  %v422_v2 = vmin.f32 %v4332_v46, 0.0 }
 0x2b2   :  { %3425 = vmatpush1.bf16.msra.mxu1 %v3424_v62  ;;  %v3454_v62 = vpack.c.bf16 %v2187_v41, %v2185_v10  ;;  %v3462_v7 = vpack.c.bf16 %v2195_v49, %v2193_v13  ;;  %v2221_v10 = vld [vmem:[#allocation8 + $0x17e8] sm:$0xff]  ;;  %v2223_v41 = vld [vmem:[#allocation8 + $0x17f8] sm:$0xff]  ;;  %vm394_vm14 = vcmp.gt.f32.partialorder %v4332_v46, 0.0 }
 0x2b3   :  { %3427 = vmatprep.subr.bf16.mxu1 %v3426_v32  ;;  %v2191_v32 = vld [vmem:[#allocation8 + $0x16f8] sm:$0xff]  ;;  %v3490_v53 = vpack.c.bf16 %v2223_v41, %v2221_v10  ;;  %v477_v45 = vmul.f32 1.442695, %v422_v2  ;;  %v2229_v13 = vld [vmem:[#allocation8 + $0x1828] sm:$0xff] }
 0x2b4   :  { %1345 = vmatmul.mubr.f32.vlgmr.msra.gmra.mrb[28].mxu0 %v517_v52  ;;  %v3458_v26 = vpack.c.bf16 %v2191_v32, %v2189_v39  ;;  %v2194_v52 = vld [vmem:[#allocation8 + $0x1710] sm:$0xff]  ;;  %v2225_v39 = vld [vmem:[#allocation8 + $0x1808] sm:$0xff]  ;;  %v2227_v32 = vld [vmem:[#allocation8 + $0x1818] sm:$0xff] }
 0x2b5   :  { %v3464_v33 = vpack.c.bf16 %v2194_v52, %v2192_v12  ;;  %v2231_v49 = vld [vmem:[#allocation8 + $0x1838] sm:$0xff]  ;;  %v2228_v12 = vld [vmem:[#allocation8 + $0x1820] sm:$0xff]  ;;  %v2230_v52 = vld [vmem:[#allocation8 + $0x1830] sm:$0xff] }
 0x2b6   :  { %3429 = vmatpush1.bf16.msra.mxu1 %v3428_v5  ;;  %v3460_v5 = vpack.c.bf16 %v2190_v3, %v2188_v57  ;;  %v2224_v57 = vld [vmem:[#allocation8 + $0x1800] sm:$0xff]  ;;  %v2226_v3 = vld [vmem:[#allocation8 + $0x1810] sm:$0xff] }
 0x2b7   :  { %3431 = vmatprep.subr.bf16.mxu1 %v3430_v18  ;;  %v2197_v18 = vld [vmem:[#allocation8 + $0x1728] sm:$0xff]  ;;  %v2482_v2 = vld [vmem:[#allocation11 + $0x38] sm:$0xff] }
 0x2b8   :  { %v3466_v19 = vpack.c.bf16 %v2199_v44, %v2197_v18  ;;  %v2233_v18 = vld [vmem:[#allocation8 + $0x1848] sm:$0xff]  ;;  %v2235_v44 = vld [vmem:[#allocation8 + $0x1858] sm:$0xff] }
 0x2ba   :  { %3433 = vmatpush1.bf16.msra.mxu1 %v3432_v25  ;;  %v2198_v25 = vld [vmem:[#allocation8 + $0x1730] sm:$0xff] }
 0x2bb   :  { %3435 = vmatprep.subr.bf16.mxu1 %v3434_v20  ;;  %v2201_v20 = vld [vmem:[#allocation8 + $0x1748] sm:$0xff]  ;;  %v3468_v48 = vpack.c.bf16 %v2198_v25, %v2196_v47  ;;  %v2232_v47 = vld [vmem:[#allocation8 + $0x1840] sm:$0xff]  ;;  %v2234_v25 = vld [vmem:[#allocation8 + $0x1850] sm:$0xff] }
 0x2bc   :  { %v3470_v16 = vpack.c.bf16 %v2203_v1, %v2201_v20  ;;  %v2314_v20 = vld [vmem:[#allocation8 + $0x1868] sm:$0xff]  ;;  %v2316_v1 = vld [vmem:[#allocation8 + $0x1878] sm:$0xff] }
 0x2be   :  { %3437 = vmatpush1.bf16.msra.mxu1 %v3436_v9  ;;  %v2202_v9 = vld [vmem:[#allocation8 + $0x1750] sm:$0xff] }
 0x2bf   :  { %3439 = vmatprep.subr.bf16.mxu1 %v3438_v28  ;;  %v2205_v28 = vld [vmem:[#allocation8 + $0x1768] sm:$0xff]  ;;  %v3472_v21 = vpack.c.bf16 %v2202_v9, %v2200_v63  ;;  %v3504_v63 = vpack.c.bf16 %v2234_v25, %v2232_v47  ;;  %v3506_v9 = vpack.c.bf16 %v2316_v1, %v2314_v20  ;;  %v2489_v20 = vld [vmem:[#allocation11 + $0x70] sm:$0xff] }
 0x2c0   :  { %v3474_v8 = vpack.c.bf16 %v2207_v0, %v2205_v28  ;;  %v2313_v28 = vld [vmem:[#allocation8 + $0x1860] sm:$0xff]  ;;  %v2315_v0 = vld [vmem:[#allocation8 + $0x1870] sm:$0xff] }
 0x2c1   :  { %v2487_v25 = vld [vmem:[#allocation11 + $0x60] sm:$0xff] }
 0x2c2   :  { %3441 = vmatpush1.bf16.msra.mxu1 %v3440_v4  ;;  %v2206_v4 = vld [vmem:[#allocation8 + $0x1770] sm:$0xff] }
 0x2c3   :  { %3443 = vmatprep.subr.bf16.mxu1 %v3442_v14  ;;  %v2209_v14 = vld [vmem:[#allocation8 + $0x1788] sm:$0xff]  ;;  %v3476_v23 = vpack.c.bf16 %v2206_v4, %v2204_v22  ;;  %v2320_v22 = vld [vmem:[#allocation8 + $0x1898] sm:$0xff] }
 0x2c4   :  { %v3478_v24 = vpack.c.bf16 %v2211_v38, %v2209_v14  ;;  %v3508_v14 = vpack.c.bf16 %v2315_v0, %v2313_v28  ;;  %v2335_v28 = vld [vmem:[#allocation8 + $0x1910] sm:$0xff]  ;;  %v2338_v0 = vld [vmem:[#allocation8 + $0x1928] sm:$0xff] }
 0x2c6   :  { %3445 = vmatpush1.bf16.msra.mxu1 %v3444_v31  ;;  %v2215_v31 = vld [vmem:[#allocation8 + $0x17b8] sm:$0xff] }
 0x2c7   :  { %3447 = vmatprep.subr.bf16.mxu1 %v3446_v35  ;;  %v3480_v35 = vpack.c.bf16 %v2210_v29, %v2208_v27  ;;  %v3482_v40 = vpack.c.bf16 %v2215_v31, %v2213_v30  ;;  %v2322_v29 = vld [vmem:[#allocation8 + $0x18a8] sm:$0xff]  ;;  %v2324_v30 = vld [vmem:[#allocation8 + $0x18b8] sm:$0xff] }
 0x2c9   :  { %2167 = vmatmul.mubr.f32.vlgmr.msra.gmra.mrb[0].mxu1 %v529_v55  ;;  %v2218_v55 = vld [vmem:[#allocation8 + $0x17d0] sm:$0xff] }
 0x2ca   :  { %3449 = vmatpush1.bf16.msra.mxu1 %v3448_v50  ;;  %2697 = vmatprep.mubr.msk.f32.mxu1 %vm656_vm2, %v532_v37  ;;  %v2219_v50 = vld [vmem:[#allocation8 + $0x17d8] sm:$0xff]  ;;  %v2216_v37 = vld [vmem:[#allocation8 + $0x17c0] sm:$0xff] }
 0x2cb   :  { %3451 = vmatprep.subr.bf16.mxu1 %v3450_v56  ;;  %v3484_v56 = vpack.c.bf16 %v2214_v43, %v2212_v42  ;;  %v3486_v34 = vpack.c.bf16 %v2219_v50, %v2217_v6  ;;  %v3514_v42 = vpack.c.bf16 %v2324_v30, %v2322_v29  ;;  %v2323_v43 = vld [vmem:[#allocation8 + $0x18b0] sm:$0xff]  ;;  %v2326_v6 = vld [vmem:[#allocation8 + $0x18c8] sm:$0xff]  ;;  %v2328_v50 = vld [vmem:[#allocation8 + $0x18d8] sm:$0xff] }
 0x2cc   :  { %v2337_v29 = vld [vmem:[#allocation8 + $0x1920] sm:$0xff]  ;;  %v2339_v30 = vld [vmem:[#allocation8 + $0x1930] sm:$0xff] }
 0x2ce   :  { %3453 = vmatpush1.bf16.msra.mxu1 %v3452_v61  ;;  %v3488_v61 = vpack.c.bf16 %v2218_v55, %v2216_v37  ;;  %v2480_v55 = vld [vmem:[#allocation11 + $0x28] sm:$0xff] }
 0x2cf   :  { %3455 = vmatprep.subr.bf16.mxu1 %v3454_v62  ;;  %v471_v62 = vmul.f32 1.442695, %v419_v59  ;;  %v2478_v59 = vld [vmem:[#allocation11 + $0x18] sm:$0xff]  ;;  %v3570_v41 = vpack.c.bf16 %v2482_v2, %v2480_v55  ;;  %v2346_v55 = vld [vmem:[#allocation8 + $0x1968] sm:$0xff] }
 0x2d0   :  { %v2348_v2 = vld [vmem:[#allocation8 + $0x1978] sm:$0xff] }
 0x2d1   :  { %3715 = vpow2.f32 %v471_v62  ;;  %v2481_v62 = vld [vmem:[#allocation11 + $0x30] sm:$0xff] }
 0x2d2   :  { %3457 = vmatpush1.bf16.msra.mxu1 %v3456_v15  ;;  %v3492_v15 = vpack.c.bf16 %v2222_v11, %v2220_v17  ;;  %3717 = vpow2.f32 %v477_v45  ;;  %v3518_v17 = vpack.c.bf16 %v2328_v50, %v2326_v6  ;;  %v2325_v11 = vld [vmem:[#allocation8 + $0x18c0] sm:$0xff]  ;;  %v2327_v45 = vld [vmem:[#allocation8 + $0x18d0] sm:$0xff]  ;;  %v3532_v50 = vpack.c.bf16 %v2339_v30, %v2337_v29 }
 0x2d3   :  { %3459 = vmatprep.subr.bf16.mxu1 %v3458_v26  ;;  %v3494_v26 = vpack.c.bf16 %v2227_v32, %v2225_v39  ;;  %v2486_v39 = vld [vmem:[#allocation11 + $0x58] sm:$0xff]  ;;  %v2330_v32 = vld [vmem:[#allocation8 + $0x18e8] sm:$0xff]  ;;  %v2497_v6 = vld [vmem:[#allocation11 + $0xb0] sm:$0xff] }
 0x2d4   :  { %v2361_v29 = vld [vmem:[#allocation8 + $0x19e0] sm:$0xff]  ;;  %v2363_v30 = vld [vmem:[#allocation8 + $0x19f0] sm:$0xff] }
 0x2d6   :  { %3461 = vmatpush1.bf16.msra.mxu1 %v3460_v5  ;;  %v3496_v5 = vpack.c.bf16 %v2226_v3, %v2224_v57  ;;  %v2483_v3 = vld [vmem:[#allocation11 + $0x40] sm:$0xff] }
 0x2d7   :  { %3463 = vmatprep.subr.bf16.mxu1 %v3462_v7  ;;  %v3498_v7 = vpack.c.bf16 %v2231_v49, %v2229_v13  ;;  %v2485_v13 = vld [vmem:[#allocation11 + $0x50] sm:$0xff]  ;;  %v3520_v49 = vpack.c.bf16 %v2327_v45, %v2325_v11  ;;  %v3538_v11 = vpack.c.bf16 %v2348_v2, %v2346_v55  ;;  %v2345_v45 = vld [vmem:[#allocation8 + $0x1960] sm:$0xff] }
 0x2da   :  { %3465 = vmatpush1.bf16.msra.mxu1 %v3464_v33  ;;  %v3500_v33 = vpack.c.bf16 %v2230_v52, %v2228_v12  ;;  %v2329_v52 = vld [vmem:[#allocation8 + $0x18e0] sm:$0xff] }
 0x2db   :  { %3467 = vmatprep.subr.bf16.mxu1 %v3466_v19  ;;  %v3502_v19 = vpack.c.bf16 %v2235_v44, %v2233_v18  ;;  %v2331_v18 = vld [vmem:[#allocation8 + $0x18f0] sm:$0xff]  ;;  %v2334_v44 = vld [vmem:[#allocation8 + $0x1908] sm:$0xff] }
 0x2dc   :  { %v3524_v1 = vpack.c.bf16 %v2331_v18, %v2329_v52  ;;  %v2349_v18 = vld [vmem:[#allocation8 + $0x1980] sm:$0xff] }
 0x2de   :  { %3469 = vmatpush1.bf16.msra.mxu1 %v3468_v48  ;;  %v3716_v48 = vpop.eup %3715 }
 0x2df   :  { %3471 = vmatprep.subr.bf16.mxu1 %v3470_v16  ;;  %v3718_v16 = vpop.eup %3717 }
 0x2e0   :  { %v2684_v4 = vadd.f32 -1.0, %v3718_v16  ;;  %v2494_v16 = vld [vmem:[#allocation11 + $0x98] sm:$0xff] }
 0x2e2   :  { %3473 = vmatpush1.bf16.msra.mxu1 %v3472_v21  ;;  %v2681_v21 = vadd.f32 -1.0, %v3716_v48  ;;  %v534_v31 = vsel %vm394_vm14, %v4332_v46, %v2684_v4  ;;  %v2492_v48 = vld [vmem:[#allocation11 + $0x88] sm:$0xff]  ;;  %v2491_v4 = vld [vmem:[#allocation11 + $0x80] sm:$0xff] }
 0x2e3   :  { %3475 = vmatprep.subr.bf16.mxu1 %v3474_v8  ;;  %v2318_v8 = vld [vmem:[#allocation8 + $0x1888] sm:$0xff] }
 0x2e4   :  { %v3510_v38 = vpack.c.bf16 %v2320_v22, %v2318_v8  ;;  %v531_v27 = vsel %vm391_vm13, %v4328_v36, %v2681_v21  ;;  %v2477_v36 = vld [vmem:[#allocation11 + $0x10] sm:$0xff]  ;;  %v3580_v8 = vpack.c.bf16 %v2489_v20, %v2487_v25  ;;  %v3582_v22 = vpack.c.bf16 %v2494_v16, %v2492_v48  ;;  %v2507_v20 = vld [vmem:[#allocation11 + $0x100] sm:$0xff] }
 0x2e5   :  { %v2340_v21 = vld [vmem:[#allocation8 + $0x1938] sm:$0xff] }
 0x2e6   :  { %3477 = vmatpush1.bf16.msra.mxu1 %v3476_v23  ;;  %v2317_v23 = vld [vmem:[#allocation8 + $0x1880] sm:$0xff] }
 0x2e7   :  { %3479 = vmatprep.subr.bf16.mxu1 %v3478_v24  ;;  %v2319_v24 = vld [vmem:[#allocation8 + $0x1890] sm:$0xff] }
 0x2ea   :  { %3481 = vmatpush1.bf16.msra.mxu1 %v3480_v35  ;;  %v3512_v35 = vpack.c.bf16 %v2319_v24, %v2317_v23  ;;  %v2496_v23 = vld [vmem:[#allocation11 + $0xa8] sm:$0xff]  ;;  %v2498_v24 = vld [vmem:[#allocation11 + $0xb8] sm:$0xff] }
 0x2eb   :  { %3483 = vmatprep.subr.bf16.mxu1 %v3482_v40  ;;  %v2321_v40 = vld [vmem:[#allocation8 + $0x18a0] sm:$0xff] }
 0x2ec   :  { %v3516_v10 = vpack.c.bf16 %v2323_v43, %v2321_v40  ;;  %v2495_v43 = vld [vmem:[#allocation11 + $0xa0] sm:$0xff] }
 0x2ee   :  { %3485 = vmatpush1.bf16.msra.mxu1 %v3484_v56  ;;  %v2476_v56 = vld [vmem:[#allocation11 + $0x8] sm:$0xff] }
 0x2ef   :  { %3487 = vmatprep.subr.bf16.mxu1 %v3486_v34  ;;  %v2475_v34 = vld [vmem:[#allocation11] sm:$0xff]  ;;  %v3566_v37 = vpack.c.bf16 %v2478_v59, %v2476_v56  ;;  %v2500_v56 = vld [vmem:[#allocation11 + $0xc8] sm:$0xff]  ;;  %v2502_v59 = vld [vmem:[#allocation11 + $0xd8] sm:$0xff] }
 0x2f0   :  { %v3568_v46 = vpack.c.bf16 %v2477_v36, %v2475_v34  ;;  %v2343_v36 = vld [vmem:[#allocation8 + $0x1950] sm:$0xff] }
 0x2f1   :  { %3567 = vmatprep.subr.bf16.mxu0 %v3566_v37  ;;  %v2341_v37 = vld [vmem:[#allocation8 + $0x1940] sm:$0xff] }
 0x2f2   :  { %3489 = vmatpush1.bf16.msra.mxu1 %v3488_v61  ;;  %v2479_v61 = vld [vmem:[#allocation11 + $0x20] sm:$0xff]  ;;  %3569 = vmatpush1.bf16.msra.mxu0 %v3568_v46  ;;  %v3590_v46 = vpack.c.bf16 %v2502_v59, %v2500_v56  ;;  %v2372_v56 = vld [vmem:[#allocation8 + $0x1a38] sm:$0xff] }
 0x2f3   :  { %3491 = vmatprep.subr.bf16.mxu1 %v3490_v53  ;;  %v2484_v53 = vld [vmem:[#allocation11 + $0x48] sm:$0xff]  ;;  %3571 = vmatprep.subr.bf16.mxu0 %v3570_v41  ;;  %v2499_v41 = vld [vmem:[#allocation11 + $0xc0] sm:$0xff] }
 0x2f4   :  { %v3574_v57 = vpack.c.bf16 %v2486_v39, %v2484_v53  ;;  %v2504_v53 = vld [vmem:[#allocation11 + $0xe8] sm:$0xff] }
 0x2f5   :  { %v2347_v39 = vld [vmem:[#allocation8 + $0x1970] sm:$0xff] }
 0x2f6   :  { %3493 = vmatpush1.bf16.msra.mxu1 %v3492_v15  ;;  %v2332_v15 = vld [vmem:[#allocation8 + $0x18f8] sm:$0xff] }
 0x2f7   :  { %3495 = vmatprep.subr.bf16.mxu1 %v3494_v26  ;;  %v3572_v26 = vpack.c.bf16 %v2481_v62, %v2479_v61  ;;  %v3522_v12 = vpack.c.bf16 %v2332_v15, %v2330_v32  ;;  %v2501_v61 = vld [vmem:[#allocation11 + $0xd0] sm:$0xff]  ;;  %v3536_v62 = vpack.c.bf16 %v2343_v36, %v2341_v37  ;;  %v2350_v32 = vld [vmem:[#allocation8 + $0x1988] sm:$0xff]  ;;  %v2369_v37 = vld [vmem:[#allocation8 + $0x1a20] sm:$0xff] }
 0x2f8   :  { %v2352_v15 = vld [vmem:[#allocation8 + $0x1998] sm:$0xff]  ;;  %v2371_v36 = vld [vmem:[#allocation8 + $0x1a30] sm:$0xff] }
 0x2f9   :  { %3573 = vmatpush1.bf16.msra.mxu0 %v3572_v26  ;;  %v3592_v26 = vpack.c.bf16 %v2501_v61, %v2499_v41  ;;  %v3542_v52 = vpack.c.bf16 %v2352_v15, %v2350_v32  ;;  %v3564_v2 = vpack.c.bf16 %v2371_v36, %v2369_v37  ;;  %v2516_v32 = vld [vmem:[#allocation11 + $0x148] sm:$0xff]  ;;  %v2518_v15 = vld [vmem:[#allocation11 + $0x158] sm:$0xff]  ;;  %v2535_v36 = vld [vmem:[#allocation13] sm:$0x3] }
 0x2fa   :  { %3497 = vmatpush1.bf16.msra.mxu1 %v3496_v5  ;;  %v2488_v5 = vld [vmem:[#allocation11 + $0x68] sm:$0xff]  ;;  %3575 = vmatprep.subr.bf16.mxu0 %v3574_v57 }
 0x2fb   :  { %3499 = vmatprep.subr.bf16.mxu1 %v3498_v7  ;;  %v2490_v7 = vld [vmem:[#allocation11 + $0x78] sm:$0xff] }
 0x2fc   :  { %v3578_v47 = vpack.c.bf16 %v2490_v7, %v2488_v5  ;;  %v2508_v5 = vld [vmem:[#allocation11 + $0x108] sm:$0xff]  ;;  %v2510_v7 = vld [vmem:[#allocation11 + $0x118] sm:$0xff] }
 0x2fd   :  { %v3598_v25 = vpack.c.bf16 %v2510_v7, %v2508_v5 }
 0x2fe   :  { %3501 = vmatpush1.bf16.msra.mxu1 %v3500_v33  ;;  %v2336_v33 = vld [vmem:[#allocation8 + $0x1918] sm:$0xff] }
 0x2ff   :  { %3503 = vmatprep.subr.bf16.mxu1 %v3502_v19  ;;  %v3576_v19 = vpack.c.bf16 %v2485_v13, %v2483_v3  ;;  %v2503_v3 = vld [vmem:[#allocation11 + $0xe0] sm:$0xff]  ;;  %v2505_v13 = vld [vmem:[#allocation11 + $0xf0] sm:$0xff] }
 0x301   :  { %3577 = vmatpush1.bf16.msra.mxu0 %v3576_v19  ;;  %v2356_v19 = vld [vmem:[#allocation8 + $0x19b8] sm:$0xff] }
 0x302   :  { %3505 = vmatpush1.bf16.msra.mxu1 %v3504_v63  ;;  %v3526_v63 = vpack.c.bf16 %v2336_v33, %v2334_v44  ;;  %3579 = vmatprep.subr.bf16.mxu0 %v3578_v47  ;;  %v2351_v44 = vld [vmem:[#allocation8 + $0x1990] sm:$0xff]  ;;  %v2354_v33 = vld [vmem:[#allocation8 + $0x19a8] sm:$0xff]  ;;  %v3596_v47 = vpack.c.bf16 %v2505_v13, %v2503_v3 }
 0x303   :  { %3507 = vmatprep.subr.bf16.mxu1 %v3506_v9  ;;  %v2333_v9 = vld [vmem:[#allocation8 + $0x1900] sm:$0xff]  ;;  %v3544_v48 = vpack.c.bf16 %v2351_v44, %v2349_v18  ;;  %v2517_v3 = vld [vmem:[#allocation11 + $0x150] sm:$0xff]  ;;  %v2520_v13 = vld [vmem:[#allocation11 + $0x168] sm:$0xff] }
 0x304   :  { %v2524_v18 = vld [vmem:[#allocation11 + $0x188] sm:$0xff]  ;;  %v2526_v44 = vld [vmem:[#allocation11 + $0x198] sm:$0xff] }
 0x305   :  { %2304 = vmatmul.mubr.f32.vlgmr.msra.gmra.mrb[0].mxu1 %v531_v27  ;;  %v3530_v27 = vpack.c.bf16 %v2340_v21, %v2338_v0  ;;  %3581 = vmatpush1.bf16.msra.mxu0 %v3580_v8 }
 0x306   :  { %3509 = vmatpush1.bf16.msra.mxu1 %v3508_v14  ;;  %2698 = vmatprep.mubr.msk.f32.mxu1 %vm656_vm2, %v534_v31  ;;  %v2493_v14 = vld [vmem:[#allocation11 + $0x90] sm:$0xff]  ;;  %v2342_v31 = vld [vmem:[#allocation8 + $0x1948] sm:$0xff] }
 0x307   :  { %3511 = vmatprep.subr.bf16.mxu1 %v3510_v38  ;;  %v3528_v38 = vpack.c.bf16 %v2335_v28, %v2333_v9  ;;  %v3584_v40 = vpack.c.bf16 %v2493_v14, %v2491_v4  ;;  %3583 = vmatprep.subr.bf16.mxu0 %v3582_v22  ;;  %v2358_v9 = vld [vmem:[#allocation8 + $0x19c8] sm:$0xff]  ;;  %v2360_v28 = vld [vmem:[#allocation8 + $0x19d8] sm:$0xff]  ;;  %v2357_v4 = vld [vmem:[#allocation8 + $0x19c0] sm:$0xff] }
 0x308   :  { %v3550_v22 = vpack.c.bf16 %v2360_v28, %v2358_v9  ;;  %v2359_v14 = vld [vmem:[#allocation8 + $0x19d0] sm:$0xff]  ;;  %v2534_v9 = vld [vmem:[#allocation11 + $0x1d8] sm:$0xff] }
 0x309   :  { %3585 = vmatpush1.bf16.msra.mxu0 %v3584_v40  ;;  %v3556_v40 = vpack.c.bf16 %v2363_v30, %v2361_v29 }
 0x30a   :  { %3513 = vmatpush1.bf16.msra.mxu1 %v3512_v35  ;;  %v2344_v35 = vld [vmem:[#allocation8 + $0x1958] sm:$0xff] }
 0x30b   :  { %3515 = vmatprep.subr.bf16.mxu1 %v3514_v42  ;;  %v3586_v42 = vpack.c.bf16 %v2498_v24, %v2496_v23  ;;  %v3534_v34 = vpack.c.bf16 %v2344_v35, %v2342_v31  ;;  %v2364_v23 = vld [vmem:[#allocation8 + $0x19f8] sm:$0xff]  ;;  %v3552_v24 = vpack.c.bf16 %v2359_v14, %v2357_v4  ;;  %v2366_v31 = vld [vmem:[#allocation8 + $0x1a08] sm:$0xff]  ;;  %v2449_v4 = vld [vmem:[#allocation10] sm:$0x3] }
 0x30c   :  { %v2368_v35 = vld [vmem:[#allocation8 + $0x1a18] sm:$0xff]  ;;  %v2454_v14 = vrot.slane %v2449_v4, %v4092_v54 }
 0x30d   :  { %3587 = vmatprep.subr.bf16.mxu0 %v3586_v42  ;;  %v3558_v42 = vpack.c.bf16 %v2368_v35, %v2366_v31 }
 0x30e   :  { %3517 = vmatpush1.bf16.msra.mxu1 %v3516_v10  ;;  %v3588_v10 = vpack.c.bf16 %v2497_v6, %v2495_v43  ;;  %v2365_v43 = vld [vmem:[#allocation8 + $0x1a00] sm:$0xff]  ;;  %v2367_v6 = vld [vmem:[#allocation8 + $0x1a10] sm:$0xff] }
 0x30f   :  { %3519 = vmatprep.subr.bf16.mxu1 %v3518_v17  ;;  %v2506_v17 = vld [vmem:[#allocation11 + $0xf8] sm:$0xff]  ;;  %v3560_v59 = vpack.c.bf16 %v2367_v6, %v2365_v43 }
 0x310   :  { %3589 = vmatpush1.bf16.msra.mxu0 %v3588_v10  ;;  %v3594_v57 = vpack.c.bf16 %v2506_v17, %v2504_v53  ;;  %v2514_v53 = vld [vmem:[#allocation11 + $0x138] sm:$0xff] }
 0x311   :  { %3591 = vmatprep.subr.bf16.mxu0 %v3590_v46 }
 0x312   :  { %3521 = vmatpush1.bf16.msra.mxu1 %v3520_v49  ;;  %v3540_v49 = vpack.c.bf16 %v2347_v39, %v2345_v45  ;;  %v2513_v45 = vld [vmem:[#allocation11 + $0x130] sm:$0xff] }
 0x313   :  { %3523 = vmatprep.subr.bf16.mxu1 %v3522_v12  ;;  %v4343_v12 = vadd.f32 %v4265_v60, %v4098_v58  ;;  %v2353_v58 = vld [vmem:[#allocation8 + $0x19a0] sm:$0xff]  ;;  %v2355_v60 = vld [vmem:[#allocation8 + $0x19b0] sm:$0xff] }
 0x314   :  { %3593 = vmatpush1.bf16.msra.mxu0 %v3592_v26  ;;  %v3548_v21 = vpack.c.bf16 %v2355_v60, %v2353_v58  ;;  %v2515_v26 = vld [vmem:[#allocation11 + $0x140] sm:$0xff]  ;;  %v2529_v58 = vld [vmem:[#allocation11 + $0x1b0] sm:$0xff]  ;;  %v2532_v60 = vld [vmem:[#allocation11 + $0x1c8] sm:$0xff] }
 0x315   :  { %3595 = vmatprep.subr.bf16.mxu0 %v3594_v57  ;;  %v421_v16 = vmin.f32 %v4343_v12, 0.0  ;;  %vm393_vm15 = vcmp.gt.f32.partialorder %v4343_v12, 0.0  ;;  %v3606_v57 = vpack.c.bf16 %v2518_v15, %v2516_v32  ;;  %v3608_v5 = vpack.c.bf16 %v2517_v3, %v2515_v26 }
 0x316   :  { %3525 = vmatpush1.bf16.msra.mxu1 %v3524_v1  ;;  %v2509_v1 = vld [vmem:[#allocation11 + $0x110] sm:$0xff] }
 0x317   :  { %3527 = vmatprep.subr.bf16.mxu1 %v3526_v63  ;;  %v3546_v63 = vpack.c.bf16 %v2356_v19, %v2354_v33  ;;  %v3600_v0 = vpack.c.bf16 %v2509_v1, %v2507_v20  ;;  %v475_v8 = vmul.f32 1.442695, %v421_v16  ;;  %v3614_v19 = vpack.c.bf16 %v2526_v44, %v2524_v18  ;;  %v2528_v20 = vld [vmem:[#allocation11 + $0x1a8] sm:$0xff]  ;;  %v2530_v1 = vld [vmem:[#allocation11 + $0x1b8] sm:$0xff] }
 0x318   :  { %3597 = vmatpush1.bf16.msra.mxu0 %v3596_v47  ;;  %v2523_v47 = vld [vmem:[#allocation11 + $0x180] sm:$0xff]  ;;  %v3618_v16 = vpack.c.bf16 %v2530_v1, %v2528_v20 }
 0x319   :  { %3599 = vmatprep.subr.bf16.mxu0 %v3598_v25  ;;  %3719 = vpow2.f32 %v475_v8  ;;  %v2525_v25 = vld [vmem:[#allocation11 + $0x190] sm:$0xff] }
 0x31a   :  { %3529 = vmatpush1.bf16.msra.mxu1 %v3528_v38  ;;  %v2362_v38 = vld [vmem:[#allocation8 + $0x19e8] sm:$0xff]  ;;  %v2533_v8 = vld [vmem:[#allocation11 + $0x1d0] sm:$0xff] }
 0x31b   :  { %3531 = vmatprep.subr.bf16.mxu1 %v3530_v27  ;;  %v3554_v27 = vpack.c.bf16 %v2364_v23, %v2362_v38  ;;  %v2458_v23 = vrot.slane %v2449_v4, %v4087_v51 }
 0x31c   :  { %3601 = vmatpush1.bf16.msra.mxu0 %v3600_v0  ;;  %v3622_v0 = vpack.c.bf16 %v2534_v9, %v2532_v60 }
 0x31e   :  { %3533 = vmatpush1.bf16.msra.mxu1 %v3532_v50  ;;  %v2370_v50 = vld [vmem:[#allocation8 + $0x1a28] sm:$0xff] }
 0x31f   :  { %3535 = vmatprep.subr.bf16.mxu1 %v3534_v34  ;;  %v3562_v34 = vpack.c.bf16 %v2372_v56, %v2370_v50 }
 0x322   :  { %3537 = vmatpush1.bf16.msra.mxu1 %v3536_v62  ;;  %v2512_v62 = vld [vmem:[#allocation11 + $0x128] sm:$0xff] }
 0x323   :  { %3539 = vmatprep.subr.bf16.mxu1 %v3538_v11  ;;  %v3720_v55 = vpop.eup %3719  ;;  %v3602_v17 = vpack.c.bf16 %v2514_v53, %v2512_v62  ;;  %v2511_v11 = vld [vmem:[#allocation11 + $0x120] sm:$0xff] }
 0x324   :  { %v2683_v10 = vadd.f32 -1.0, %v3720_v55  ;;  %v3604_v39 = vpack.c.bf16 %v2513_v45, %v2511_v11  ;;  %v2540_v55 = vrot.slane %v2535_v36, %v4092_v54 }
 0x325   :  { %3603 = vmatprep.subr.bf16.mxu0 %v3602_v17 }
 0x326   :  { %3541 = vmatpush1.bf16.msra.mxu1 %v3540_v49  ;;  %v533_v46 = vsel %vm393_vm15, %v4343_v12, %v2683_v10  ;;  %3605 = vmatpush1.bf16.msra.mxu0 %v3604_v39  ;;  %v2522_v49 = vld [vmem:[#allocation11 + $0x178] sm:$0xff]  ;;  %v2519_v12 = vld [vmem:[#allocation11 + $0x160] sm:$0xff] }
 0x327   :  { %3543 = vmatprep.subr.bf16.mxu1 %v3542_v52  ;;  %v3610_v7 = vpack.c.bf16 %v2522_v49, %v2520_v13  ;;  %v2521_v52 = vld [vmem:[#allocation11 + $0x170] sm:$0xff]  ;;  %3607 = vmatprep.subr.bf16.mxu0 %v3606_v57 }
 0x328   :  { %v3612_v33 = vpack.c.bf16 %v2521_v52, %v2519_v12 }
 0x32a   :  { %3545 = vmatpush1.bf16.msra.mxu1 %v3544_v48  ;;  %3609 = vmatpush1.bf16.msra.mxu0 %v3608_v5  ;;  %v3616_v48 = vpack.c.bf16 %v2525_v25, %v2523_v47 }
 0x32b   :  { %3547 = vmatprep.subr.bf16.mxu1 %v3546_v63  ;;  %3611 = vmatprep.subr.bf16.mxu0 %v3610_v7  ;;  %v2527_v63 = vld [vmem:[#allocation11 + $0x1a0] sm:$0xff] }
 0x32c   :  { %v3620_v28 = vpack.c.bf16 %v2529_v58, %v2527_v63 }
 0x32e   :  { %3549 = vmatpush1.bf16.msra.mxu1 %v3548_v21  ;;  %3613 = vmatpush1.bf16.msra.mxu0 %v3612_v33  ;;  %v2531_v21 = vld [vmem:[#allocation11 + $0x1c0] sm:$0xff] }
 0x32f   :  { %3551 = vmatprep.subr.bf16.mxu1 %v3550_v22  ;;  %3615 = vmatprep.subr.bf16.mxu0 %v3614_v19  ;;  %v3624_v22 = vpack.c.bf16 %v2533_v8, %v2531_v21 }
 0x332   :  { %3553 = vmatpush1.bf16.msra.mxu1 %v3552_v24  ;;  %3617 = vmatpush1.bf16.msra.mxu0 %v3616_v48 }
 0x333   :  { %3555 = vmatprep.subr.bf16.mxu1 %v3554_v27  ;;  %3619 = vmatprep.subr.bf16.mxu0 %v3618_v16 }
 0x336   :  { %3557 = vmatpush1.bf16.msra.mxu1 %v3556_v40  ;;  %3621 = vmatpush1.bf16.msra.mxu0 %v3620_v28 }
 0x337   :  { %3559 = vmatprep.subr.bf16.mxu1 %v3558_v42  ;;  %3623 = vmatprep.subr.bf16.mxu0 %v3622_v0 }
 0x33a   :  { %3561 = vmatpush1.bf16.msra.mxu1 %v3560_v59  ;;  %3625 = vmatpush1.bf16.msra.mxu0 %v3624_v22 }
 0x33b   :  { %3563 = vmatprep.subr.bf16.mxu1 %v3562_v34 }
 0x33e   :  { %3565 = vmatpush1.bf16.msra.mxu1 %v3564_v2  ;;  %v2544_v2 = vrot.slane %v2535_v36, %v4087_v51 }
 0x341   :  { %2441 = vmatmul.mubr.f32.vlgmr.msra.gmra.mrb[0].mxu1 %v533_v46 }
 0x387   :  { %v1346_v41 = vpop.f32.mrb[28].mxu0 }
 0x388   :  { %v1348_v61 = vpop.f32.mrb[29].mxu0 }
 0x414   :  { %v2442_v38 = vpop.f32.mrb[0].mxu1 }
 0x415   :  { %v3626_v24 = vadd.f32 %v2442_v38, %v1346_v41  ;;  %v2444_v27 = vpop.f32.mrb[1].mxu1 }
 0x416   :  { %v3627_v29 = vadd.f32 %v2444_v27, %v1348_v61 }
 0x417   :  { %v2461_v30 = vadd.f32 %v3626_v24, %v2454_v14 }
 0x418   :  { %v2462_v31 = vadd.f32 %v3627_v29, %v2458_v23 }
 0x419   :  { %v2465_v35 = vmin.f32 %v2461_v30, 0.0  ;;  %vm2463_vm1 = vcmp.gt.f32.partialorder %v2461_v30, 0.0 }
 0x41a   :  { %v2466_v40 = vmin.f32 %v2462_v31, 0.0  ;;  %vm2464_vm0 = vcmp.gt.f32.partialorder %v2462_v31, 0.0 }
 0x41b   :  { %v2467_v42 = vmul.f32 1.442695, %v2465_v35 }
 0x41c   :  { %v2469_v43 = vmul.f32 1.442695, %v2466_v40 }
 0x41d   :  { %3721 = vpow2.f32 %v2467_v42 }
 0x41e   :  { %3723 = vpow2.f32 %v2469_v43 }
 0x427   :  { %v3722_v6 = vpop.eup %3721 }
 0x428   :  { %v3724_v50 = vpop.eup %3723  ;;  %v2699_v56 = vadd.f32 -1.0, %v3722_v6 }
 0x429   :  { %v2700_v59 = vadd.f32 -1.0, %v3724_v50 }
 0x42a   :  { %v2473_v37 = vsel %vm2463_vm1, %v2461_v30, %v2699_v56 }
 0x42b   :  { %v2474_v34 = vsel %vm2464_vm0, %v2462_v31, %v2700_v59 }
 0x42c   :  { %2701 = vmatprep.mubr.msk.f32.mxu0 %vm656_vm2, %v2474_v34 }
 0x42d   :  { %2615 = vmatmul.mubr.f32.vlgmr.msra.gmra.mrb[30].mxu0 %v2473_v37 }
 0x500   :  { %v2616_v10 = vpop.f32.mrb[30].mxu0 }
 0x501   :  { %v2617_v46 = vadd.f32 %v2616_v10, %v2540_v55  ;;  %v2618_v41 = vpop.f32.mrb[31].mxu0 }
 0x502   :  { %v2619_v61 = vadd.f32 %v2618_v41, %v2544_v2 }
 0x503   :  { %2621 = vst [vmem:[#allocation14] sm:$0xff] %v2617_v46 }
 0x504   :  { %2622 = vst.msk [vmem:[#allocation14 + $0x8] sm:$0xff] %vm656_vm2, %v2619_v61 }
 0x505   :  { %3890 = shalt.err (!%p3887_p4)
}
 0x506   :  { %s3891_s0 = scalar_lea.hbm %s4373_s7, 256 }
 0x507   :  { %p3892_p5 = scmp.ne.s32.totalorder %s4373_s7, %s3891_s0  ;;  %p3895_p6 = scmp.lt.u32.totalorder %s3891_s0, %s4373_s7 }
 0x509   :  { %p3897_p7 = pnand %p3895_p6, %p3892_p5 }
 0x50b   :  { %3900 = shalt.err (!%p3897_p7)
}
 0x50c   :  { %2632 = dma.vmem_to_hbm [thread:$0]  %s2630_s10, 256, %s4373_s7, [#allocation4]  }
 0x50d   :  { %3909 = dma.done.wait [#allocation4], 256  }
 0x50e   :  { %3910 = vsyncadd [#allocation4], 4294967040 }
 0x50f   :  { %2636 = vsyncpa [#allocation3], 1 }
 0x510   :  { %2637 = vsyncpa [#allocation6], 1 }
 0x511   :  { %2638 = vsyncpa [#allocation9], 1 }
 0x512   :  { %2639 = vsyncpa [#allocation12], 1 }
 0x513   :  { %2640 = vsyncpa [#allocation4], 1 }

</bundles_post_ra>
